<compile_context>
chip_gen: v7x
topology: tpu7x:2x2x1
jax: 0.10.0
libtpu: 0.0.40
codegen_flags: <defaults>
</compile_context>

<pallas_src>
import jax
import jax.numpy as jnp
from jax.experimental import pallas as pl
from jax.experimental.pallas import tpu as pltpu


LEAKY_SLOPE = 0.2
BN_EPS = 1e-5


# ----------------------------- Pallas kernels -----------------------------

def _conv_leaky_kernel(p_ref, w_ref, o_ref):
    """One M-tile of LeakyReLU(patches @ weight)."""
    y = jnp.dot(p_ref[...], w_ref[...], preferred_element_type=jnp.float32)
    o_ref[...] = jnp.where(y > 0, y, LEAKY_SLOPE * y)


def conv_leaky(p, w, tile_m=1024):
    """out = LeakyReLU(p @ w); p: (M, K), w: (K, C)."""
    M, K = p.shape
    _, C = w.shape
    tm = min(tile_m, M)
    if M % tm != 0:           # fall back to single block if not divisible
        tm = M
    return pl.pallas_call(
        _conv_leaky_kernel,
        out_shape=jax.ShapeDtypeStruct((M, C), jnp.float32),
        grid_spec=pltpu.PrefetchScalarGridSpec(
            num_scalar_prefetch=0,
            grid=(M // tm,),
            in_specs=[pl.BlockSpec((tm, K), lambda i: (i, 0)),
                      pl.BlockSpec((K, C), lambda i: (0, 0))],
            out_specs=pl.BlockSpec((tm, C), lambda i: (i, 0))),
        compiler_params=pltpu.CompilerParams(
            dimension_semantics=("parallel",)),
    )(p, w)


def _conv_bn_leaky_kernel(p_ref, w_ref, g_ref, b_ref, o_ref):
    """Fully fused layer: conv-matmul -> train-mode BatchNorm -> LeakyReLU.

    The whole layer output lives in VMEM, so batch stats are a single
    in-kernel pass using sum((x-mean)^2) (no E[x^2]-mean^2 cancellation and no
    HBM round trips between matmul / stats / normalize).
    """
    y = jnp.dot(p_ref[...], w_ref[...], preferred_element_type=jnp.float32)
    mean = jnp.mean(y, axis=0, keepdims=True)
    var = jnp.mean(jnp.square(y - mean), axis=0, keepdims=True)  # biased (train mode)
    scale = g_ref[...] * jax.lax.rsqrt(var + BN_EPS)
    shift = b_ref[...] - mean * scale
    z = y * scale + shift
    o_ref[...] = jnp.where(z > 0, z, LEAKY_SLOPE * z)


def conv_bn_leaky(p, w, gamma, beta):
    """p: (M, K) patches, w: (K, C), gamma/beta: (C,). Single-block kernel."""
    M, K = p.shape
    _, C = w.shape
    return pl.pallas_call(
        _conv_bn_leaky_kernel,
        out_shape=jax.ShapeDtypeStruct((M, C), jnp.float32),
    )(p, w, gamma.reshape(1, C), beta.reshape(1, C))


def _head_kernel(x_ref, a_ref, wl_ref, bl_ref, o_ref):
    """(Conv5 + global spatial mean) folded into one matmul, then Linear+Sigmoid.

    The last conv is linear with no bias, so the spatial mean commutes with the
    conv; the fold is precomputed as matrix A in the wrapper.
    """
    feat = jnp.dot(x_ref[...], a_ref[...], preferred_element_type=jnp.float32)
    z = jnp.dot(feat, wl_ref[...], preferred_element_type=jnp.float32) + bl_ref[...]
    o_ref[...] = 1.0 / (1.0 + jnp.exp(-z))


def head(x_flat, a_eff, wl, bl):
    """x_flat: (N, H*W*Cin), a_eff: (H*W*Cin, C5), wl: (C5, 1), bl: (1, 1)."""
    N = x_flat.shape[0]
    return pl.pallas_call(
        _head_kernel,
        out_shape=jax.ShapeDtypeStruct((N, 1), jnp.float32),
    )(x_flat, a_eff, wl, bl)


# ------------------------------- JAX glue ----------------------------------

def im2col(x_nhwc, kh, kw, stride, pad):
    """Extract patches -> (N*Ho*Wo, kh*kw*Cin), row order (kh, kw, cin)."""
    # TODO(synk): patch extraction stays in XLA; in-kernel strided gather is a
    # Mosaic lowering risk and the patch matrices here are <= 384 KB.
    N, H, W, C = x_nhwc.shape
    xp = jnp.pad(x_nhwc, ((0, 0), (pad, pad), (pad, pad), (0, 0)))
    Ho = (H + 2 * pad - kh) // stride + 1
    Wo = (W + 2 * pad - kw) // stride + 1
    cols = []
    for i in range(kh):
        for j in range(kw):
            cols.append(xp[:, i:i + stride * Ho:stride, j:j + stride * Wo:stride, :])
    patches = jnp.stack(cols, axis=3)            # (N, Ho, Wo, kh*kw, C)
    return patches.reshape(N * Ho * Wo, kh * kw * C), (N, Ho, Wo)


def conv_weight_to_matrix(w_oihw):
    """PyTorch (Cout, Cin, KH, KW) -> (KH*KW*Cin, Cout), matching im2col order."""
    Cout, Cin, KH, KW = w_oihw.shape
    return jnp.transpose(w_oihw, (2, 3, 1, 0)).reshape(KH * KW * Cin, Cout)


def head_matrix(w_oihw, h_in, w_in, stride=2, pad=1):
    """Fold Conv(k, s, p, bias=False) followed by a global spatial mean into
    a single matrix A of shape (h_in*w_in*Cin, Cout) such that

        mean_{spatial}(conv(x, w))[n, co] == (x_nhwc.reshape(N, -1) @ A)[n, co]

    Valid because the conv is linear with zero padding and no bias.
    """
    Co, Ci, KH, KW = w_oihw.shape
    Ho = (h_in + 2 * pad - KH) // stride + 1
    Wo = (w_in + 2 * pad - KW) // stride + 1
    Hp, Wp = h_in + 2 * pad, w_in + 2 * pad
    w = w_oihw.astype(jnp.float32)
    B = jnp.zeros((Co, Ci, Hp, Wp), jnp.float32)
    for ho in range(Ho):
        for wo in range(Wo):
            B = B.at[:, :, stride * ho:stride * ho + KH,
                     stride * wo:stride * wo + KW].add(w)
    Bint = B[:, :, pad:pad + h_in, pad:pad + w_in]        # (Co, Ci, H, W)
    A = jnp.transpose(Bint, (2, 3, 1, 0)).reshape(h_in * w_in * Ci, Co)
    return A / float(Ho * Wo)


def classifier_forward(params, image_nchw):
    x = jnp.transpose(image_nchw, (0, 2, 3, 1)).astype(jnp.float32)  # -> NHWC

    # layer 1: Conv(k=4, s=2, p=1) + LeakyReLU(0.2)
    p, (N, Ho, Wo) = im2col(x, 4, 4, 2, 1)
    y = conv_leaky(p, conv_weight_to_matrix(params["w1"]))
    x = y.reshape(N, Ho, Wo, -1)

    # layers 2..4: Conv -> BatchNorm(train-mode batch stats) -> LeakyReLU, fused
    for wk, gk, bk in (("w2", "g2", "b2"), ("w3", "g3", "b3"), ("w4", "g4", "b4")):
        p, (N, Ho, Wo) = im2col(x, 4, 4, 2, 1)
        y = conv_bn_leaky(p, conv_weight_to_matrix(params[wk]), params[gk], params[bk])
        x = y.reshape(N, Ho, Wo, -1)

    # layer 5 Conv(k=4,s=2,p=1, no bias) + mean(2).mean(2) folded into one
    # matrix, then Linear + Sigmoid, all in one kernel.
    a_eff = head_matrix(params["w5"], Ho, Wo)
    wl = jnp.transpose(params["wl"]).astype(jnp.float32)   # PyTorch Linear (1,C) -> (C,1)
    bl = params["bl"].reshape(1, 1).astype(jnp.float32)
    out = head(x.reshape(N, -1), a_eff, wl, bl)
    return out.reshape(-1)                                  # torch.squeeze


# ------------------------- pure-JAX reference ------------------------------

def reference_forward(params, image):
    dn = ("NCHW", "OIHW", "NCHW")
    prec = jax.lax.Precision.HIGHEST

    def conv(x, w):
        return jax.lax.conv_general_dilated(
            x, w, (2, 2), [(1, 1), (1, 1)], dimension_numbers=dn, precision=prec)

    def leaky(v):
        return jnp.where(v > 0, v, 0.2 * v)

    def bn(v, g, b, eps=BN_EPS):
        mean = jnp.mean(v, axis=(0, 2, 3), keepdims=True)
        var = jnp.mean((v - mean) ** 2, axis=(0, 2, 3), keepdims=True)
        return ((v - mean) / jnp.sqrt(var + eps)
                * g.reshape(1, -1, 1, 1) + b.reshape(1, -1, 1, 1))

    x = leaky(conv(image, params["w1"]))
    x = leaky(bn(conv(x, params["w2"]), params["g2"], params["b2"]))
    x = leaky(bn(conv(x, params["w3"]), params["g3"], params["b3"]))
    x = leaky(bn(conv(x, params["w4"]), params["g4"], params["b4"]))
    x = conv(x, params["w5"])
    feat = jnp.mean(x, axis=(2, 3))                          # (N, 16*nh)
    z = feat @ params["wl"].T + params["bl"]
    return jax.nn.sigmoid(z).reshape(-1)


# --------------------------------- main -------------------------------------

if __name__ == "__main__":
    num_hidden = 8      # nn.Conv2d channel base
    nc = 3              # num_input_channel
    N = 2               # batch

    key = jax.random.PRNGKey(0)
    ks = jax.random.split(key, 14)

    def winit(k, shape):
        return 0.02 * jax.random.normal(k, shape, dtype=jnp.float32)

    params = {
        "w1": winit(ks[0], (num_hidden, nc, 4, 4)),
        "w2": winit(ks[1], (num_hidden * 2, num_hidden, 4, 4)),
        "g2": 1.0 + 0.1 * jax.random.normal(ks[2], (num_hidden * 2,), jnp.float32),
        "b2": 0.1 * jax.random.normal(ks[3], (num_hidden * 2,), jnp.float32),
        "w3": winit(ks[4], (num_hidden * 4, num_hidden * 2, 4, 4)),
        "g3": 1.0 + 0.1 * jax.random.normal(ks[5], (num_hidden * 4,), jnp.float32),
        "b3": 0.1 * jax.random.normal(ks[6], (num_hidden * 4,), jnp.float32),
        "w4": winit(ks[7], (num_hidden * 8, num_hidden * 4, 4, 4)),
        "g4": 1.0 + 0.1 * jax.random.normal(ks[8], (num_hidden * 8,), jnp.float32),
        "b4": 0.1 * jax.random.normal(ks[9], (num_hidden * 8,), jnp.float32),
        "w5": winit(ks[10], (num_hidden * 16, num_hidden * 8, 4, 4)),
        "wl": winit(ks[11], (1, num_hidden * 16)),
        "bl": 0.1 * jax.random.normal(ks[12], (1,), jnp.float32),
    }

    # 64x64 input => 2x2 feature map after the five stride-2 convs.
    image = jax.random.normal(ks[13], (N, nc, 64, 64), dtype=jnp.float32)

    aprob = jax.jit(classifier_forward)(params, image)
    jax.block_until_ready(aprob)
    assert aprob.shape == (N,)

    ref = reference_forward(params, image)
    assert jnp.allclose(aprob, ref, atol=2e-3, rtol=2e-3)

    print("KERNEL_OK")
</pallas_src>

<mosaic_0001>
module attributes {stable_mosaic.version = 11 : i64} {
  func.func @_conv_leaky_kernel(%arg0: i32, %arg1: memref<1024x48xf32, #tpu.memory_space<vmem>>, %arg2: memref<48x8xf32, #tpu.memory_space<vmem>>, %arg3: memref<1024x8xf32, #tpu.memory_space<vmem>>) attributes {dimension_semantics = [#tpu.dimension_semantics<parallel>], iteration_bounds = array<i64: 2>, scalar_prefetch = 0 : i64, scratch_operands = 0 : i64, tpu.core_type = #tpu.core_type<tc>, window_params = [{transform_indices = @transform_0, window_bounds = array<i64: 1024, 48>}, {pipeline_mode = #tpu.pipeline_mode<synchronous>, transform_indices = @transform_1, window_bounds = array<i64: 48, 8>}, {transform_indices = @transform_2, window_bounds = array<i64: 1024, 8>}]} {
    %c0 = arith.constant 0 : index
    %c0_0 = arith.constant 0 : index
    %0 = vector.load %arg1[%c0, %c0_0] : memref<1024x48xf32, #tpu.memory_space<vmem>>, vector<1024x48xf32>
    %c0_1 = arith.constant 0 : index
    %c0_2 = arith.constant 0 : index
    %1 = vector.load %arg2[%c0_1, %c0_2] : memref<48x8xf32, #tpu.memory_space<vmem>>, vector<48x8xf32>
    %cst = arith.constant dense<0.000000e+00> : vector<1024x8xf32>
    %2 = tpu.matmul %0, %1, %cst {dimension_numbers = #tpu.dot_dimension_numbers<[1], [0], [0], [1], [0, 0, 1, 1], [], []>} : vector<1024x48xf32>, vector<48x8xf32>, vector<1024x8xf32> -> vector<1024x8xf32>
    %cst_3 = arith.constant 0.000000e+00 : f32
    %3 = vector.broadcast %cst_3 : f32 to vector<1024x8xf32>
    %4 = arith.cmpf ogt, %2, %3 : vector<1024x8xf32>
    %cst_4 = arith.constant 2.000000e-01 : f32
    %5 = vector.broadcast %cst_4 : f32 to vector<1024x8xf32>
    %6 = arith.mulf %5, %2 : vector<1024x8xf32>
    %7 = arith.select %4, %2, %6 : vector<1024x8xi1>, vector<1024x8xf32>
    %c0_5 = arith.constant 0 : index
    %c0_6 = arith.constant 0 : index
    %8 = vector.load %arg3[%c0_5, %c0_6] : memref<1024x8xf32, #tpu.memory_space<vmem>>, vector<1024x8xf32>
    tpu.vector_store %arg3[%c0_5, %c0_6], %7 {strides = array<i32>} : memref<1024x8xf32, #tpu.memory_space<vmem>>, vector<1024x8xf32>,
    return
  }
  func.func @transform_0(%arg0: i32) -> (i32, i32) {
    %c0_i32 = arith.constant 0 : i32
    %c0_i32_0 = arith.constant 0 : i32
    return %arg0, %c0_i32 : i32, i32
  }
  func.func @transform_1(%arg0: i32) -> (i32, i32) {
    %c0_i32 = arith.constant 0 : i32
    %c0_i32_0 = arith.constant 0 : i32
    %c0_i32_1 = arith.constant 0 : i32
    return %c0_i32, %c0_i32_0 : i32, i32
  }
  func.func @transform_2(%arg0: i32) -> (i32, i32) {
    %c0_i32 = arith.constant 0 : i32
    %c0_i32_0 = arith.constant 0 : i32
    return %arg0, %c0_i32 : i32, i32
  }
}

module attributes {stable_mosaic.version = 11 : i64} {
  func.func @_conv_bn_leaky_kernel(%arg0: memref<512x128xf32, #tpu.memory_space<vmem>>, %arg1: memref<128x16xf32, #tpu.memory_space<vmem>>, %arg2: memref<1x16xf32, #tpu.memory_space<vmem>>, %arg3: memref<1x16xf32, #tpu.memory_space<vmem>>, %arg4: memref<512x16xf32, #tpu.memory_space<vmem>>) attributes {dimension_semantics = [], scalar_prefetch = 0 : i64, scratch_operands = 0 : i64, tpu.core_type = #tpu.core_type<tc>} {
    %c0 = arith.constant 0 : index
    %c0_0 = arith.constant 0 : index
    %0 = vector.load %arg0[%c0, %c0_0] : memref<512x128xf32, #tpu.memory_space<vmem>>, vector<512x128xf32>
    %c0_1 = arith.constant 0 : index
    %c0_2 = arith.constant 0 : index
    %1 = vector.load %arg1[%c0_1, %c0_2] : memref<128x16xf32, #tpu.memory_space<vmem>>, vector<128x16xf32>
    %cst = arith.constant dense<0.000000e+00> : vector<512x16xf32>
    %2 = tpu.matmul %0, %1, %cst {dimension_numbers = #tpu.dot_dimension_numbers<[1], [0], [0], [1], [0, 0, 1, 1], [], []>} : vector<512x128xf32>, vector<128x16xf32>, vector<512x16xf32> -> vector<512x16xf32>
    %cst_3 = arith.constant dense<0.000000e+00> : vector<16xf32>
    %3 = vector.multi_reduction <add>, %2, %cst_3 [0] : vector<512x16xf32> to vector<16xf32>
    %4 = vector.shape_cast %3 : vector<16xf32> to vector<1x16xf32>
    %cst_4 = arith.constant 5.120000e+02 : f32
    %5 = vector.broadcast %cst_4 : f32 to vector<1x16xf32>
    %6 = arith.divf %4, %5 : vector<1x16xf32>
    %7 = vector.broadcast %6 : vector<1x16xf32> to vector<512x16xf32>
    %8 = arith.subf %2, %7 : vector<512x16xf32>
    %9 = arith.mulf %8, %8 : vector<512x16xf32>
    %cst_5 = arith.constant dense<0.000000e+00> : vector<16xf32>
    %10 = vector.multi_reduction <add>, %9, %cst_5 [0] : vector<512x16xf32> to vector<16xf32>
    %11 = vector.shape_cast %10 : vector<16xf32> to vector<1x16xf32>
    %cst_6 = arith.constant 5.120000e+02 : f32
    %12 = vector.broadcast %cst_6 : f32 to vector<1x16xf32>
    %13 = arith.divf %11, %12 : vector<1x16xf32>
    %c0_7 = arith.constant 0 : index
    %c0_8 = arith.constant 0 : index
    %14 = vector.load %arg2[%c0_7, %c0_8] : memref<1x16xf32, #tpu.memory_space<vmem>>, vector<1x16xf32>
    %cst_9 = arith.constant 9.99999974E-6 : f32
    %15 = vector.broadcast %cst_9 : f32 to vector<1x16xf32>
    %16 = arith.addf %13, %15 : vector<1x16xf32>
    %17 = math.rsqrt %16 : vector<1x16xf32>
    %18 = arith.mulf %14, %17 : vector<1x16xf32>
    %c0_10 = arith.constant 0 : index
    %c0_11 = arith.constant 0 : index
    %19 = vector.load %arg3[%c0_10, %c0_11] : memref<1x16xf32, #tpu.memory_space<vmem>>, vector<1x16xf32>
    %20 = arith.mulf %6, %18 : vector<1x16xf32>
    %21 = arith.subf %19, %20 : vector<1x16xf32>
    %22 = vector.broadcast %18 : vector<1x16xf32> to vector<512x16xf32>
    %23 = arith.mulf %2, %22 : vector<512x16xf32>
    %24 = vector.broadcast %21 : vector<1x16xf32> to vector<512x16xf32>
    %25 = arith.addf %23, %24 : vector<512x16xf32>
    %cst_12 = arith.constant 0.000000e+00 : f32
    %26 = vector.broadcast %cst_12 : f32 to vector<512x16xf32>
    %27 = arith.cmpf ogt, %25, %26 : vector<512x16xf32>
    %cst_13 = arith.constant 2.000000e-01 : f32
    %28 = vector.broadcast %cst_13 : f32 to vector<512x16xf32>
    %29 = arith.mulf %28, %25 : vector<512x16xf32>
    %30 = arith.select %27, %25, %29 : vector<512x16xi1>, vector<512x16xf32>
    %c0_14 = arith.constant 0 : index
    %c0_15 = arith.constant 0 : index
    %31 = vector.load %arg4[%c0_14, %c0_15] : memref<512x16xf32, #tpu.memory_space<vmem>>, vector<512x16xf32>
    tpu.vector_store %arg4[%c0_14, %c0_15], %30 {strides = array<i32>} : memref<512x16xf32, #tpu.memory_space<vmem>>, vector<512x16xf32>,
    return
  }
}

module attributes {stable_mosaic.version = 11 : i64} {
  func.func @_conv_bn_leaky_kernel(%arg0: memref<128x256xf32, #tpu.memory_space<vmem>>, %arg1: memref<256x32xf32, #tpu.memory_space<vmem>>, %arg2: memref<1x32xf32, #tpu.memory_space<vmem>>, %arg3: memref<1x32xf32, #tpu.memory_space<vmem>>, %arg4: memref<128x32xf32, #tpu.memory_space<vmem>>) attributes {dimension_semantics = [], scalar_prefetch = 0 : i64, scratch_operands = 0 : i64, tpu.core_type = #tpu.core_type<tc>} {
    %c0 = arith.constant 0 : index
    %c0_0 = arith.constant 0 : index
    %0 = vector.load %arg0[%c0, %c0_0] : memref<128x256xf32, #tpu.memory_space<vmem>>, vector<128x256xf32>
    %c0_1 = arith.constant 0 : index
    %c0_2 = arith.constant 0 : index
    %1 = vector.load %arg1[%c0_1, %c0_2] : memref<256x32xf32, #tpu.memory_space<vmem>>, vector<256x32xf32>
    %cst = arith.constant dense<0.000000e+00> : vector<128x32xf32>
    %2 = tpu.matmul %0, %1, %cst {dimension_numbers = #tpu.dot_dimension_numbers<[1], [0], [0], [1], [0, 0, 1, 1], [], []>} : vector<128x256xf32>, vector<256x32xf32>, vector<128x32xf32> -> vector<128x32xf32>
    %cst_3 = arith.constant dense<0.000000e+00> : vector<32xf32>
    %3 = vector.multi_reduction <add>, %2, %cst_3 [0] : vector<128x32xf32> to vector<32xf32>
    %4 = vector.shape_cast %3 : vector<32xf32> to vector<1x32xf32>
    %cst_4 = arith.constant 1.280000e+02 : f32
    %5 = vector.broadcast %cst_4 : f32 to vector<1x32xf32>
    %6 = arith.divf %4, %5 : vector<1x32xf32>
    %7 = vector.broadcast %6 : vector<1x32xf32> to vector<128x32xf32>
    %8 = arith.subf %2, %7 : vector<128x32xf32>
    %9 = arith.mulf %8, %8 : vector<128x32xf32>
    %cst_5 = arith.constant dense<0.000000e+00> : vector<32xf32>
    %10 = vector.multi_reduction <add>, %9, %cst_5 [0] : vector<128x32xf32> to vector<32xf32>
    %11 = vector.shape_cast %10 : vector<32xf32> to vector<1x32xf32>
    %cst_6 = arith.constant 1.280000e+02 : f32
    %12 = vector.broadcast %cst_6 : f32 to vector<1x32xf32>
    %13 = arith.divf %11, %12 : vector<1x32xf32>
    %c0_7 = arith.constant 0 : index
    %c0_8 = arith.constant 0 : index
    %14 = vector.load %arg2[%c0_7, %c0_8] : memref<1x32xf32, #tpu.memory_space<vmem>>, vector<1x32xf32>
    %cst_9 = arith.constant 9.99999974E-6 : f32
    %15 = vector.broadcast %cst_9 : f32 to vector<1x32xf32>
    %16 = arith.addf %13, %15 : vector<1x32xf32>
    %17 = math.rsqrt %16 : vector<1x32xf32>
    %18 = arith.mulf %14, %17 : vector<1x32xf32>
    %c0_10 = arith.constant 0 : index
    %c0_11 = arith.constant 0 : index
    %19 = vector.load %arg3[%c0_10, %c0_11] : memref<1x32xf32, #tpu.memory_space<vmem>>, vector<1x32xf32>
    %20 = arith.mulf %6, %18 : vector<1x32xf32>
    %21 = arith.subf %19, %20 : vector<1x32xf32>
    %22 = vector.broadcast %18 : vector<1x32xf32> to vector<128x32xf32>
    %23 = arith.mulf %2, %22 : vector<128x32xf32>
    %24 = vector.broadcast %21 : vector<1x32xf32> to vector<128x32xf32>
    %25 = arith.addf %23, %24 : vector<128x32xf32>
    %cst_12 = arith.constant 0.000000e+00 : f32
    %26 = vector.broadcast %cst_12 : f32 to vector<128x32xf32>
    %27 = arith.cmpf ogt, %25, %26 : vector<128x32xf32>
    %cst_13 = arith.constant 2.000000e-01 : f32
    %28 = vector.broadcast %cst_13 : f32 to vector<128x32xf32>
    %29 = arith.mulf %28, %25 : vector<128x32xf32>
    %30 = arith.select %27, %25, %29 : vector<128x32xi1>, vector<128x32xf32>
    %c0_14 = arith.constant 0 : index
    %c0_15 = arith.constant 0 : index
    %31 = vector.load %arg4[%c0_14, %c0_15] : memref<128x32xf32, #tpu.memory_space<vmem>>, vector<128x32xf32>
    tpu.vector_store %arg4[%c0_14, %c0_15], %30 {strides = array<i32>} : memref<128x32xf32, #tpu.memory_space<vmem>>, vector<128x32xf32>,
    return
  }
}

module attributes {stable_mosaic.version = 11 : i64} {
  func.func @_conv_bn_leaky_kernel(%arg0: memref<32x512xf32, #tpu.memory_space<vmem>>, %arg1: memref<512x64xf32, #tpu.memory_space<vmem>>, %arg2: memref<1x64xf32, #tpu.memory_space<vmem>>, %arg3: memref<1x64xf32, #tpu.memory_space<vmem>>, %arg4: memref<32x64xf32, #tpu.memory_space<vmem>>) attributes {dimension_semantics = [], scalar_prefetch = 0 : i64, scratch_operands = 0 : i64, tpu.core_type = #tpu.core_type<tc>} {
    %c0 = arith.constant 0 : index
    %c0_0 = arith.constant 0 : index
    %0 = vector.load %arg0[%c0, %c0_0] : memref<32x512xf32, #tpu.memory_space<vmem>>, vector<32x512xf32>
    %c0_1 = arith.constant 0 : index
    %c0_2 = arith.constant 0 : index
    %1 = vector.load %arg1[%c0_1, %c0_2] : memref<512x64xf32, #tpu.memory_space<vmem>>, vector<512x64xf32>
    %cst = arith.constant dense<0.000000e+00> : vector<32x64xf32>
    %2 = tpu.matmul %0, %1, %cst {dimension_numbers = #tpu.dot_dimension_numbers<[1], [0], [0], [1], [0, 0, 1, 1], [], []>} : vector<32x512xf32>, vector<512x64xf32>, vector<32x64xf32> -> vector<32x64xf32>
    %cst_3 = arith.constant dense<0.000000e+00> : vector<64xf32>
    %3 = vector.multi_reduction <add>, %2, %cst_3 [0] : vector<32x64xf32> to vector<64xf32>
    %4 = vector.shape_cast %3 : vector<64xf32> to vector<1x64xf32>
    %cst_4 = arith.constant 3.200000e+01 : f32
    %5 = vector.broadcast %cst_4 : f32 to vector<1x64xf32>
    %6 = arith.divf %4, %5 : vector<1x64xf32>
    %7 = vector.broadcast %6 : vector<1x64xf32> to vector<32x64xf32>
    %8 = arith.subf %2, %7 : vector<32x64xf32>
    %9 = arith.mulf %8, %8 : vector<32x64xf32>
    %cst_5 = arith.constant dense<0.000000e+00> : vector<64xf32>
    %10 = vector.multi_reduction <add>, %9, %cst_5 [0] : vector<32x64xf32> to vector<64xf32>
    %11 = vector.shape_cast %10 : vector<64xf32> to vector<1x64xf32>
    %cst_6 = arith.constant 3.200000e+01 : f32
    %12 = vector.broadcast %cst_6 : f32 to vector<1x64xf32>
    %13 = arith.divf %11, %12 : vector<1x64xf32>
    %c0_7 = arith.constant 0 : index
    %c0_8 = arith.constant 0 : index
    %14 = vector.load %arg2[%c0_7, %c0_8] : memref<1x64xf32, #tpu.memory_space<vmem>>, vector<1x64xf32>
    %cst_9 = arith.constant 9.99999974E-6 : f32
    %15 = vector.broadcast %cst_9 : f32 to vector<1x64xf32>
    %16 = arith.addf %13, %15 : vector<1x64xf32>
    %17 = math.rsqrt %16 : vector<1x64xf32>
    %18 = arith.mulf %14, %17 : vector<1x64xf32>
    %c0_10 = arith.constant 0 : index
    %c0_11 = arith.constant 0 : index
    %19 = vector.load %arg3[%c0_10, %c0_11] : memref<1x64xf32, #tpu.memory_space<vmem>>, vector<1x64xf32>
    %20 = arith.mulf %6, %18 : vector<1x64xf32>
    %21 = arith.subf %19, %20 : vector<1x64xf32>
    %22 = vector.broadcast %18 : vector<1x64xf32> to vector<32x64xf32>
    %23 = arith.mulf %2, %22 : vector<32x64xf32>
    %24 = vector.broadcast %21 : vector<1x64xf32> to vector<32x64xf32>
    %25 = arith.addf %23, %24 : vector<32x64xf32>
    %cst_12 = arith.constant 0.000000e+00 : f32
    %26 = vector.broadcast %cst_12 : f32 to vector<32x64xf32>
    %27 = arith.cmpf ogt, %25, %26 : vector<32x64xf32>
    %cst_13 = arith.constant 2.000000e-01 : f32
    %28 = vector.broadcast %cst_13 : f32 to vector<32x64xf32>
    %29 = arith.mulf %28, %25 : vector<32x64xf32>
    %30 = arith.select %27, %25, %29 : vector<32x64xi1>, vector<32x64xf32>
    %c0_14 = arith.constant 0 : index
    %c0_15 = arith.constant 0 : index
    %31 = vector.load %arg4[%c0_14, %c0_15] : memref<32x64xf32, #tpu.memory_space<vmem>>, vector<32x64xf32>
    tpu.vector_store %arg4[%c0_14, %c0_15], %30 {strides = array<i32>} : memref<32x64xf32, #tpu.memory_space<vmem>>, vector<32x64xf32>,
    return
  }
}

module attributes {stable_mosaic.version = 11 : i64} {
  func.func @_head_kernel(%arg0: memref<2x1024xf32, #tpu.memory_space<vmem>>, %arg1: memref<1024x128xf32, #tpu.memory_space<vmem>>, %arg2: memref<128x1xf32, #tpu.memory_space<vmem>>, %arg3: memref<1x1xf32, #tpu.memory_space<vmem>>, %arg4: memref<2x1xf32, #tpu.memory_space<vmem>>) attributes {dimension_semantics = [], scalar_prefetch = 0 : i64, scratch_operands = 0 : i64, tpu.core_type = #tpu.core_type<tc>} {
    %c0 = arith.constant 0 : index
    %c0_0 = arith.constant 0 : index
    %0 = vector.load %arg0[%c0, %c0_0] : memref<2x1024xf32, #tpu.memory_space<vmem>>, vector<2x1024xf32>
    %c0_1 = arith.constant 0 : index
    %c0_2 = arith.constant 0 : index
    %1 = vector.load %arg1[%c0_1, %c0_2] : memref<1024x128xf32, #tpu.memory_space<vmem>>, vector<1024x128xf32>
    %cst = arith.constant dense<0.000000e+00> : vector<2x128xf32>
    %2 = tpu.matmul %0, %1, %cst {dimension_numbers = #tpu.dot_dimension_numbers<[1], [0], [0], [1], [0, 0, 1, 1], [], []>} : vector<2x1024xf32>, vector<1024x128xf32>, vector<2x128xf32> -> vector<2x128xf32>
    %c0_3 = arith.constant 0 : index
    %c0_4 = arith.constant 0 : index
    %3 = vector.load %arg2[%c0_3, %c0_4] : memref<128x1xf32, #tpu.memory_space<vmem>>, vector<128x1xf32>
    %cst_5 = arith.constant dense<0.000000e+00> : vector<2x1xf32>
    %4 = tpu.matmul %2, %3, %cst_5 {dimension_numbers = #tpu.dot_dimension_numbers<[1], [0], [0], [1], [0, 0, 1, 1], [], []>} : vector<2x128xf32>, vector<128x1xf32>, vector<2x1xf32> -> vector<2x1xf32>
    %c0_6 = arith.constant 0 : index
    %c0_7 = arith.constant 0 : index
    %5 = vector.load %arg3[%c0_6, %c0_7] : memref<1x1xf32, #tpu.memory_space<vmem>>, vector<1x1xf32>
    %6 = vector.broadcast %5 : vector<1x1xf32> to vector<2x1xf32>
    %7 = arith.addf %4, %6 : vector<2x1xf32>
    %cst_8 = arith.constant 0.000000e+00 : f32
    %8 = vector.broadcast %cst_8 : f32 to vector<2x1xf32>
    %9 = arith.subf %8, %7 : vector<2x1xf32>
    %10 = math.exp %9 : vector<2x1xf32>
    %cst_9 = arith.constant 1.000000e+00 : f32
    %11 = vector.broadcast %cst_9 : f32 to vector<2x1xf32>
    %12 = arith.addf %11, %10 : vector<2x1xf32>
    %cst_10 = arith.constant 1.000000e+00 : f32
    %13 = vector.broadcast %cst_10 : f32 to vector<2x1xf32>
    %14 = arith.divf %13, %12 : vector<2x1xf32>
    %c0_11 = arith.constant 0 : index
    %c0_12 = arith.constant 0 : index
    %15 = vector.load %arg4[%c0_11, %c0_12] : memref<2x1xf32, #tpu.memory_space<vmem>>, vector<2x1xf32>
    tpu.vector_store %arg4[%c0_11, %c0_12], %14 {strides = array<i32>} : memref<2x1xf32, #tpu.memory_space<vmem>>, vector<2x1xf32>,
    return
  }
}

</mosaic_0001>

<bundles_post_ra>
// kernel: classifier_forward.5
= control target key start
LH: loop header
LB: loop body
LE: loop exit
PB: predicated region body
PF: predicated region fallthrough
CT: control target
= control target key end

     0   :  { %s2466_s9 = smov 0   ;;  %s3024_s0 = inlined_call_operand.vmem [shape: f32[2048,48], index: 0, kind: input, shape index: {}]   ;;  %s3025_s1 = inlined_call_operand.vmem [shape: f32[48,8], index: 1, kind: input, shape index: {}]   ;;  %s3026_s2 = inlined_call_operand.vmem [shape: f32[2048,8], index: 2, kind: output, shape index: {}]  }
   0x1 LB: > { %s1940_s10 = sadd.s32 4294967295, %s2449_s9   ;;  %p1944_p0 = scmp.ge.s32.totalorder %s2449_s9, 1  ;;  %s2449_s9 = sphi %s2466_s9, %s12_s9  }
   0x2   : > { %p113_p1 = scmp.lt.s32.totalorder %s2449_s9, 3 }
   0x4   : > { %p114_p2 = pnand %p1944_p0, %p113_p1 }
   0x5   : > { %v275_v0 = vld [vmem:[%s3025_s1] sm:$0xff] (!%p114_p2)  ;;  %v276_v1 = vld [vmem:[%s3025_s1 + $0x8] sm:$0xff] (!%p114_p2)  ;;  %v277_v2 = vld [vmem:[%s3025_s1 + $0x10] sm:$0xff] (!%p114_p2)  ;;  %s1945_s17 = sshll.u32 (!%p114_p2), %s1940_s10, 7  ;;  %vm281_vm0 = vcmask (!%p114_p2), 392192   ;;  %vm1755_vm1 = vcmask (!%p114_p2), 64512  }
   0x6   : > { %117 = sbr.rel (%p114_p2) target bundleno = 362 (0x16a), region = 28  ;;  %v2417_v3 = vpack.c.bf16 (!%p114_p2), %v276_v1, %v275_v0  ;;  %v278_v4 = vld [vmem:[%s3025_s1 + $0x18] sm:$0xff] (!%p114_p2)  ;;  %p136_p3 = scmp.lt.s32.totalorder (!%p114_p2), %s1945_s17, 255  ;;  %v279_v6 = vld [vmem:[%s3025_s1 + $0x20] sm:$0xff] (!%p114_p2)  ;;  %v280_v7 = vld [vmem:[%s3025_s1 + $0x28] sm:$0xff] (!%p114_p2) }
   0x7   : > { %v2421_v5 = vpack.c.bf16 (!%p114_p2), %v278_v4, %v277_v2  ;;  %v2425_v8 = vpack.c.bf16 (!%p114_p2), %v280_v7, %v279_v6 }
   0x8   : > { %2418 = vmatprep.subr.bf16.mxu0 (!%p114_p2), %v2417_v3  ;;  %2429 = vmatprep.subr.bf16.mxu1 (!%p114_p2), %v2417_v3 }
   0x9   : > { %2420 = vmatpush3.bf16.msra.mxu0 (!%p114_p2), %v2417_v3  ;;  %2432 = vmatpush3.bf16.msra.mxu1 (!%p114_p2), %v2417_v3 }
   0xa   : > { %2422 = vmatprep.subr.bf16.mxu0 (!%p114_p2), %v2421_v5  ;;  %2430 = vmatprep.subr.bf16.mxu1 (!%p114_p2), %v2421_v5 }
   0xd   : > { %s3028_s17 = smov (!%p136_p3, %s1945_s17), 255  ;;  %2424 = vmatpush3.bf16.msra.mxu0 %v2421_v5  ;;  %2433 = vmatpush3.bf16.msra.mxu1 %v2421_v5 }
   0xe   : > { %s1946_s24 = sshll.u32 %s3028_s17, 3  ;;  %2426 = vmatprep.subr.bf16.mxu0 %v2425_v8  ;;  %2431 = vmatprep.subr.bf16.mxu1 %v2425_v8 }
   0xf   : > { %s2500_s27 = scalar_lea.vmem %s3024_s0, %s1946_s24  ;;  %s2763_s30 = scalar_lea.vmem %s3026_s2, %s1946_s24 }
  0x10   : > { %v147_v9 = vld [vmem:[%s2500_s27] sm:$0xff]  ;;  %v148_v11 = vld [vmem:[%s2500_s27 + $0x8] sm:$0xff]  ;;  %v149_v13 = vld [vmem:[%s2500_s27 + $0x10] sm:$0xff] }
  0x11   : > { %v211_v10 = vld [vmem:[%s2500_s27 + $0x200] sm:$0xff]  ;;  %2225 = vmatprep.mubr.msk.f32.mxu0 %vm281_vm0, %v147_v9  ;;  %2428 = vmatpush3.bf16.msra.mxu0 %v2425_v8  ;;  %v212_v12 = vld [vmem:[%s2500_s27 + $0x208] sm:$0xff]  ;;  %v213_v14 = vld [vmem:[%s2500_s27 + $0x210] sm:$0xff] }
  0x12   : > { %2321 = vmatprep.mubr.msk.f32.mxu1 %vm281_vm0, %v211_v10  ;;  %2434 = vmatpush3.bf16.msra.mxu1 %v2425_v8  ;;  %v150_v15 = vld [vmem:[%s2500_s27 + $0x18] sm:$0xff]  ;;  %v151_v17 = vld [vmem:[%s2500_s27 + $0x20] sm:$0xff]  ;;  %v152_v19 = vld [vmem:[%s2500_s27 + $0x28] sm:$0xff] }
  0x13   : > { %v214_v16 = vld [vmem:[%s2500_s27 + $0x218] sm:$0xff]  ;;  %v215_v18 = vld [vmem:[%s2500_s27 + $0x220] sm:$0xff]  ;;  %v216_v20 = vld [vmem:[%s2500_s27 + $0x228] sm:$0xff] }
  0x14   : > { %2226 = vmatmul.mubr.msk.f32.vlgmr.msra.gmra.mrb[0].mxu0 %vm281_vm0, %v148_v11  ;;  %v153_v21 = vld [vmem:[%s2500_s27 + $0x30] sm:$0xff]  ;;  %v154_v23 = vld [vmem:[%s2500_s27 + $0x38] sm:$0xff]  ;;  %v155_v25 = vld [vmem:[%s2500_s27 + $0x40] sm:$0xff] }
  0x15   : > { %2322 = vmatmul.mubr.msk.f32.vlgmr.msra.gmra.mrb[0].mxu1 %vm281_vm0, %v212_v12  ;;  %2228 = vmatprep.mubr.msk.f32.mxu0 %vm281_vm0, %v149_v13  ;;  %v217_v22 = vld [vmem:[%s2500_s27 + $0x230] sm:$0xff]  ;;  %v218_v24 = vld [vmem:[%s2500_s27 + $0x238] sm:$0xff]  ;;  %v219_v26 = vld [vmem:[%s2500_s27 + $0x240] sm:$0xff] }
  0x16   : > { %2324 = vmatprep.mubr.msk.f32.mxu1 %vm281_vm0, %v213_v14  ;;  %v156_v27 = vld [vmem:[%s2500_s27 + $0x48] sm:$0xff]  ;;  %v157_v29 = vld [vmem:[%s2500_s27 + $0x50] sm:$0xff]  ;;  %v158_v31 = vld [vmem:[%s2500_s27 + $0x58] sm:$0xff] }
  0x17   : > { %v220_v28 = vld [vmem:[%s2500_s27 + $0x248] sm:$0xff]  ;;  %v221_v30 = vld [vmem:[%s2500_s27 + $0x250] sm:$0xff]  ;;  %v222_v32 = vld [vmem:[%s2500_s27 + $0x258] sm:$0xff] }
  0x18   : > { %2229 = vmatmul.mubr.msk.f32.gmra.mrb[2].mxu0 %vm281_vm0, %v150_v15  ;;  %v159_v33 = vld [vmem:[%s2500_s27 + $0x60] sm:$0xff]  ;;  %v160_v35 = vld [vmem:[%s2500_s27 + $0x68] sm:$0xff]  ;;  %v161_v37 = vld [vmem:[%s2500_s27 + $0x70] sm:$0xff] }
  0x19   : > { %2325 = vmatmul.mubr.msk.f32.gmra.mrb[2].mxu1 %vm281_vm0, %v214_v16  ;;  %2231 = vmatprep.mubr.msk.f32.mxu0 %vm281_vm0, %v151_v17  ;;  %v223_v34 = vld [vmem:[%s2500_s27 + $0x260] sm:$0xff]  ;;  %v224_v36 = vld [vmem:[%s2500_s27 + $0x268] sm:$0xff]  ;;  %v225_v38 = vld [vmem:[%s2500_s27 + $0x270] sm:$0xff] }
  0x1a   : > { %2327 = vmatprep.mubr.msk.f32.mxu1 %vm281_vm0, %v215_v18  ;;  %v162_v39 = vld [vmem:[%s2500_s27 + $0x78] sm:$0xff]  ;;  %v163_v41 = vld [vmem:[%s2500_s27 + $0x80] sm:$0xff]  ;;  %v164_v43 = vld [vmem:[%s2500_s27 + $0x88] sm:$0xff] }
  0x1b   : > { %v226_v40 = vld [vmem:[%s2500_s27 + $0x278] sm:$0xff]  ;;  %v227_v42 = vld [vmem:[%s2500_s27 + $0x280] sm:$0xff]  ;;  %v228_v44 = vld [vmem:[%s2500_s27 + $0x288] sm:$0xff] }
  0x1c   : > { %2232 = vmatmul.mubr.msk.f32.gmra.mrb[4].mxu0 %vm281_vm0, %v152_v19  ;;  %v165_v45 = vld [vmem:[%s2500_s27 + $0x90] sm:$0xff]  ;;  %v166_v47 = vld [vmem:[%s2500_s27 + $0x98] sm:$0xff]  ;;  %v167_v49 = vld [vmem:[%s2500_s27 + $0xa0] sm:$0xff] }
  0x1d   : > { %2328 = vmatmul.mubr.msk.f32.gmra.mrb[4].mxu1 %vm281_vm0, %v216_v20  ;;  %2234 = vmatprep.mubr.msk.f32.mxu0 %vm281_vm0, %v153_v21  ;;  %v229_v46 = vld [vmem:[%s2500_s27 + $0x290] sm:$0xff]  ;;  %v230_v48 = vld [vmem:[%s2500_s27 + $0x298] sm:$0xff]  ;;  %v231_v50 = vld [vmem:[%s2500_s27 + $0x2a0] sm:$0xff] }
  0x1e   : > { %2330 = vmatprep.mubr.msk.f32.mxu1 %vm281_vm0, %v217_v22  ;;  %v168_v51 = vld [vmem:[%s2500_s27 + $0xa8] sm:$0xff]  ;;  %v169_v53 = vld [vmem:[%s2500_s27 + $0xb0] sm:$0xff]  ;;  %v170_v55 = vld [vmem:[%s2500_s27 + $0xb8] sm:$0xff] }
  0x1f   : > { %v232_v52 = vld [vmem:[%s2500_s27 + $0x2a8] sm:$0xff]  ;;  %v233_v54 = vld [vmem:[%s2500_s27 + $0x2b0] sm:$0xff]  ;;  %v234_v56 = vld [vmem:[%s2500_s27 + $0x2b8] sm:$0xff] }
  0x20   : > { %2235 = vmatmul.mubr.msk.f32.gmra.mrb[6].mxu0 %vm281_vm0, %v154_v23  ;;  %v171_v57 = vld [vmem:[%s2500_s27 + $0xc0] sm:$0xff]  ;;  %v172_v59 = vld [vmem:[%s2500_s27 + $0xc8] sm:$0xff]  ;;  %v173_v61 = vld [vmem:[%s2500_s27 + $0xd0] sm:$0xff] }
  0x21   : > { %2331 = vmatmul.mubr.msk.f32.gmra.mrb[6].mxu1 %vm281_vm0, %v218_v24  ;;  %2237 = vmatprep.mubr.msk.f32.mxu0 %vm281_vm0, %v155_v25  ;;  %v235_v58 = vld [vmem:[%s2500_s27 + $0x2c0] sm:$0xff]  ;;  %v236_v60 = vld [vmem:[%s2500_s27 + $0x2c8] sm:$0xff]  ;;  %v237_v62 = vld [vmem:[%s2500_s27 + $0x2d0] sm:$0xff] }
  0x22   : > { %2333 = vmatprep.mubr.msk.f32.mxu1 %vm281_vm0, %v219_v26  ;;  %v174_v63 = vld [vmem:[%s2500_s27 + $0xd8] sm:$0xff]  ;;  %v175_v1 = vld [vmem:[%s2500_s27 + $0xe0] sm:$0xff]  ;;  %v176_v3 = vld [vmem:[%s2500_s27 + $0xe8] sm:$0xff] }
  0x23   : > { %v238_v0 = vld [vmem:[%s2500_s27 + $0x2d8] sm:$0xff]  ;;  %v239_v2 = vld [vmem:[%s2500_s27 + $0x2e0] sm:$0xff]  ;;  %v240_v4 = vld [vmem:[%s2500_s27 + $0x2e8] sm:$0xff] }
  0x24   : > { %2238 = vmatmul.mubr.msk.f32.gmra.mrb[8].mxu0 %vm281_vm0, %v156_v27  ;;  %v177_v5 = vld [vmem:[%s2500_s27 + $0xf0] sm:$0xff]  ;;  %v178_v7 = vld [vmem:[%s2500_s27 + $0xf8] sm:$0xff]  ;;  %v179_v9 = vld [vmem:[%s2500_s27 + $0x100] sm:$0xff] }
  0x25   : > { %2334 = vmatmul.mubr.msk.f32.gmra.mrb[8].mxu1 %vm281_vm0, %v220_v28  ;;  %2240 = vmatprep.mubr.msk.f32.mxu0 %vm281_vm0, %v157_v29  ;;  %v241_v6 = vld [vmem:[%s2500_s27 + $0x2f0] sm:$0xff]  ;;  %v242_v8 = vld [vmem:[%s2500_s27 + $0x2f8] sm:$0xff]  ;;  %v243_v10 = vld [vmem:[%s2500_s27 + $0x300] sm:$0xff] }
  0x26   : > { %2336 = vmatprep.mubr.msk.f32.mxu1 %vm281_vm0, %v221_v30  ;;  %v180_v11 = vld [vmem:[%s2500_s27 + $0x108] sm:$0xff]  ;;  %v181_v13 = vld [vmem:[%s2500_s27 + $0x110] sm:$0xff]  ;;  %v182_v15 = vld [vmem:[%s2500_s27 + $0x118] sm:$0xff] }
  0x27   : > { %v244_v12 = vld [vmem:[%s2500_s27 + $0x308] sm:$0xff]  ;;  %v245_v14 = vld [vmem:[%s2500_s27 + $0x310] sm:$0xff]  ;;  %v246_v16 = vld [vmem:[%s2500_s27 + $0x318] sm:$0xff] }
  0x28   : > { %2241 = vmatmul.mubr.msk.f32.gmra.mrb[10].mxu0 %vm281_vm0, %v158_v31  ;;  %v183_v17 = vld [vmem:[%s2500_s27 + $0x120] sm:$0xff]  ;;  %v184_v19 = vld [vmem:[%s2500_s27 + $0x128] sm:$0xff]  ;;  %v185_v21 = vld [vmem:[%s2500_s27 + $0x130] sm:$0xff] }
  0x29   : > { %2337 = vmatmul.mubr.msk.f32.gmra.mrb[10].mxu1 %vm281_vm0, %v222_v32  ;;  %2243 = vmatprep.mubr.msk.f32.mxu0 %vm281_vm0, %v159_v33  ;;  %v247_v18 = vld [vmem:[%s2500_s27 + $0x320] sm:$0xff]  ;;  %v248_v20 = vld [vmem:[%s2500_s27 + $0x328] sm:$0xff]  ;;  %v249_v22 = vld [vmem:[%s2500_s27 + $0x330] sm:$0xff] }
  0x2a   : > { %2339 = vmatprep.mubr.msk.f32.mxu1 %vm281_vm0, %v223_v34  ;;  %v186_v23 = vld [vmem:[%s2500_s27 + $0x138] sm:$0xff]  ;;  %v187_v25 = vld [vmem:[%s2500_s27 + $0x140] sm:$0xff]  ;;  %v188_v27 = vld [vmem:[%s2500_s27 + $0x148] sm:$0xff] }
  0x2b   : > { %v250_v24 = vld [vmem:[%s2500_s27 + $0x338] sm:$0xff]  ;;  %v251_v26 = vld [vmem:[%s2500_s27 + $0x340] sm:$0xff]  ;;  %v252_v28 = vld [vmem:[%s2500_s27 + $0x348] sm:$0xff] }
  0x2c   : > { %2244 = vmatmul.mubr.msk.f32.gmra.mrb[12].mxu0 %vm281_vm0, %v160_v35  ;;  %v189_v29 = vld [vmem:[%s2500_s27 + $0x150] sm:$0xff]  ;;  %v190_v31 = vld [vmem:[%s2500_s27 + $0x158] sm:$0xff]  ;;  %v191_v33 = vld [vmem:[%s2500_s27 + $0x160] sm:$0xff] }
  0x2d   : > { %2340 = vmatmul.mubr.msk.f32.gmra.mrb[12].mxu1 %vm281_vm0, %v224_v36  ;;  %2246 = vmatprep.mubr.msk.f32.mxu0 %vm281_vm0, %v161_v37  ;;  %v253_v30 = vld [vmem:[%s2500_s27 + $0x350] sm:$0xff]  ;;  %v254_v32 = vld [vmem:[%s2500_s27 + $0x358] sm:$0xff]  ;;  %v255_v34 = vld [vmem:[%s2500_s27 + $0x360] sm:$0xff] }
  0x2e   : > { %2342 = vmatprep.mubr.msk.f32.mxu1 %vm281_vm0, %v225_v38  ;;  %v192_v35 = vld [vmem:[%s2500_s27 + $0x168] sm:$0xff]  ;;  %v193_v37 = vld [vmem:[%s2500_s27 + $0x170] sm:$0xff] }
  0x2f   : > { %v256_v36 = vld [vmem:[%s2500_s27 + $0x368] sm:$0xff]  ;;  %v257_v38 = vld [vmem:[%s2500_s27 + $0x370] sm:$0xff] }
  0x30   : > { %2247 = vmatmul.mubr.msk.f32.gmra.mrb[14].mxu0 %vm281_vm0, %v162_v39  ;;  %v194_v39 = vld [vmem:[%s2500_s27 + $0x178] sm:$0xff] }
  0x31   : > { %2343 = vmatmul.mubr.msk.f32.gmra.mrb[14].mxu1 %vm281_vm0, %v226_v40  ;;  %2249 = vmatprep.mubr.msk.f32.mxu0 %vm281_vm0, %v163_v41  ;;  %v258_v40 = vld [vmem:[%s2500_s27 + $0x378] sm:$0xff]  ;;  %v195_v41 = vld [vmem:[%s2500_s27 + $0x180] sm:$0xff] }
  0x32   : > { %2345 = vmatprep.mubr.msk.f32.mxu1 %vm281_vm0, %v227_v42  ;;  %v259_v42 = vld [vmem:[%s2500_s27 + $0x380] sm:$0xff] }
  0x34   : > { %2250 = vmatmul.mubr.msk.f32.gmra.mrb[16].mxu0 %vm281_vm0, %v164_v43  ;;  %v196_v43 = vld [vmem:[%s2500_s27 + $0x188] sm:$0xff] }
  0x35   : > { %2346 = vmatmul.mubr.msk.f32.gmra.mrb[16].mxu1 %vm281_vm0, %v228_v44  ;;  %2252 = vmatprep.mubr.msk.f32.mxu0 %vm281_vm0, %v165_v45  ;;  %v260_v44 = vld [vmem:[%s2500_s27 + $0x388] sm:$0xff]  ;;  %v197_v45 = vld [vmem:[%s2500_s27 + $0x190] sm:$0xff] }
  0x36   : > { %2348 = vmatprep.mubr.msk.f32.mxu1 %vm281_vm0, %v229_v46  ;;  %v261_v46 = vld [vmem:[%s2500_s27 + $0x390] sm:$0xff] }
  0x38   : > { %2253 = vmatmul.mubr.msk.f32.gmra.mrb[18].mxu0 %vm281_vm0, %v166_v47  ;;  %v198_v47 = vld [vmem:[%s2500_s27 + $0x198] sm:$0xff] }
  0x39   : > { %2349 = vmatmul.mubr.msk.f32.gmra.mrb[18].mxu1 %vm281_vm0, %v230_v48  ;;  %2255 = vmatprep.mubr.msk.f32.mxu0 %vm281_vm0, %v167_v49  ;;  %v262_v48 = vld [vmem:[%s2500_s27 + $0x398] sm:$0xff]  ;;  %v199_v49 = vld [vmem:[%s2500_s27 + $0x1a0] sm:$0xff] }
  0x3a   : > { %2351 = vmatprep.mubr.msk.f32.mxu1 %vm281_vm0, %v231_v50  ;;  %v263_v50 = vld [vmem:[%s2500_s27 + $0x3a0] sm:$0xff] }
  0x3c   : > { %2256 = vmatmul.mubr.msk.f32.gmra.mrb[20].mxu0 %vm281_vm0, %v168_v51  ;;  %v200_v51 = vld [vmem:[%s2500_s27 + $0x1a8] sm:$0xff] }
  0x3d   : > { %2352 = vmatmul.mubr.msk.f32.gmra.mrb[20].mxu1 %vm281_vm0, %v232_v52  ;;  %2258 = vmatprep.mubr.msk.f32.mxu0 %vm281_vm0, %v169_v53  ;;  %v264_v52 = vld [vmem:[%s2500_s27 + $0x3a8] sm:$0xff]  ;;  %v201_v53 = vld [vmem:[%s2500_s27 + $0x1b0] sm:$0xff] }
  0x3e   : > { %2354 = vmatprep.mubr.msk.f32.mxu1 %vm281_vm0, %v233_v54  ;;  %v265_v54 = vld [vmem:[%s2500_s27 + $0x3b0] sm:$0xff] }
  0x40   : > { %2259 = vmatmul.mubr.msk.f32.gmra.mrb[22].mxu0 %vm281_vm0, %v170_v55  ;;  %v202_v55 = vld [vmem:[%s2500_s27 + $0x1b8] sm:$0xff] }
  0x41   : > { %2355 = vmatmul.mubr.msk.f32.gmra.mrb[22].mxu1 %vm281_vm0, %v234_v56  ;;  %2261 = vmatprep.mubr.msk.f32.mxu0 %vm281_vm0, %v171_v57  ;;  %v266_v56 = vld [vmem:[%s2500_s27 + $0x3b8] sm:$0xff]  ;;  %v203_v57 = vld [vmem:[%s2500_s27 + $0x1c0] sm:$0xff] }
  0x42   : > { %2357 = vmatprep.mubr.msk.f32.mxu1 %vm281_vm0, %v235_v58  ;;  %v267_v58 = vld [vmem:[%s2500_s27 + $0x3c0] sm:$0xff] }
  0x44   : > { %2262 = vmatmul.mubr.msk.f32.gmra.mrb[24].mxu0 %vm281_vm0, %v172_v59  ;;  %v204_v59 = vld [vmem:[%s2500_s27 + $0x1c8] sm:$0xff] }
  0x45   : > { %2358 = vmatmul.mubr.msk.f32.gmra.mrb[24].mxu1 %vm281_vm0, %v236_v60  ;;  %2264 = vmatprep.mubr.msk.f32.mxu0 %vm281_vm0, %v173_v61  ;;  %v268_v60 = vld [vmem:[%s2500_s27 + $0x3c8] sm:$0xff]  ;;  %v205_v61 = vld [vmem:[%s2500_s27 + $0x1d0] sm:$0xff] }
  0x46   : > { %2360 = vmatprep.mubr.msk.f32.mxu1 %vm281_vm0, %v237_v62  ;;  %v269_v62 = vld [vmem:[%s2500_s27 + $0x3d0] sm:$0xff] }
  0x48   : > { %2265 = vmatmul.mubr.msk.f32.gmra.mrb[26].mxu0 %vm281_vm0, %v174_v63  ;;  %v206_v63 = vld [vmem:[%s2500_s27 + $0x1d8] sm:$0xff] }
  0x49   : > { %2361 = vmatmul.mubr.msk.f32.gmra.mrb[26].mxu1 %vm281_vm0, %v238_v0  ;;  %2267 = vmatprep.mubr.msk.f32.mxu0 %vm281_vm0, %v175_v1  ;;  %v270_v0 = vld [vmem:[%s2500_s27 + $0x3d8] sm:$0xff]  ;;  %v207_v1 = vld [vmem:[%s2500_s27 + $0x1e0] sm:$0xff] }
  0x4a   : > { %2363 = vmatprep.mubr.msk.f32.mxu1 %vm281_vm0, %v239_v2  ;;  %v271_v2 = vld [vmem:[%s2500_s27 + $0x3e0] sm:$0xff] }
  0x4c   : > { %2268 = vmatmul.mubr.msk.f32.gmra.mrb[28].mxu0 %vm281_vm0, %v176_v3  ;;  %v208_v3 = vld [vmem:[%s2500_s27 + $0x1e8] sm:$0xff] }
  0x4d   : > { %2364 = vmatmul.mubr.msk.f32.gmra.mrb[28].mxu1 %vm281_vm0, %v240_v4  ;;  %2270 = vmatprep.mubr.msk.f32.mxu0 %vm281_vm0, %v177_v5  ;;  %v272_v4 = vld [vmem:[%s2500_s27 + $0x3e8] sm:$0xff]  ;;  %v209_v5 = vld [vmem:[%s2500_s27 + $0x1f0] sm:$0xff] }
  0x4e   : > { %2366 = vmatprep.mubr.msk.f32.mxu1 %vm281_vm0, %v241_v6  ;;  %v273_v6 = vld [vmem:[%s2500_s27 + $0x3f0] sm:$0xff] }
  0x50   : > { %2271 = vmatmul.mubr.msk.f32.gmra.mrb[30].mxu0 %vm281_vm0, %v178_v7  ;;  %v210_v7 = vld [vmem:[%s2500_s27 + $0x1f8] sm:$0xff] }
  0x51   : > { %2367 = vmatmul.mubr.msk.f32.gmra.mrb[30].mxu1 %vm281_vm0, %v242_v8  ;;  %2273 = vmatprep.mubr.msk.f32.mxu0 %vm281_vm0, %v179_v9  ;;  %v274_v8 = vld [vmem:[%s2500_s27 + $0x3f8] sm:$0xff] }
  0x52   : > { %2369 = vmatprep.mubr.msk.f32.mxu1 %vm281_vm0, %v243_v10 }
  0x54   : > { %2274 = vmatmul.mubr.msk.f32.gmra.mrb[32].mxu0 %vm281_vm0, %v180_v11 }
  0x55   : > { %2370 = vmatmul.mubr.msk.f32.gmra.mrb[32].mxu1 %vm281_vm0, %v244_v12  ;;  %2276 = vmatprep.mubr.msk.f32.mxu0 %vm281_vm0, %v181_v13 }
  0x56   : > { %2372 = vmatprep.mubr.msk.f32.mxu1 %vm281_vm0, %v245_v14 }
  0x58   : > { %2277 = vmatmul.mubr.msk.f32.gmra.mrb[34].mxu0 %vm281_vm0, %v182_v15 }
  0x59   : > { %2373 = vmatmul.mubr.msk.f32.gmra.mrb[34].mxu1 %vm281_vm0, %v246_v16  ;;  %2279 = vmatprep.mubr.msk.f32.mxu0 %vm281_vm0, %v183_v17 }
  0x5a   : > { %2375 = vmatprep.mubr.msk.f32.mxu1 %vm281_vm0, %v247_v18 }
  0x5c   : > { %2280 = vmatmul.mubr.msk.f32.gmra.mrb[36].mxu0 %vm281_vm0, %v184_v19 }
  0x5d   : > { %2376 = vmatmul.mubr.msk.f32.gmra.mrb[36].mxu1 %vm281_vm0, %v248_v20  ;;  %2282 = vmatprep.mubr.msk.f32.mxu0 %vm281_vm0, %v185_v21 }
  0x5e   : > { %2378 = vmatprep.mubr.msk.f32.mxu1 %vm281_vm0, %v249_v22 }
  0x60   : > { %2283 = vmatmul.mubr.msk.f32.gmra.mrb[38].mxu0 %vm281_vm0, %v186_v23 }
  0x61   : > { %2379 = vmatmul.mubr.msk.f32.gmra.mrb[38].mxu1 %vm281_vm0, %v250_v24  ;;  %2285 = vmatprep.mubr.msk.f32.mxu0 %vm281_vm0, %v187_v25 }
  0x62   : > { %2381 = vmatprep.mubr.msk.f32.mxu1 %vm281_vm0, %v251_v26 }
  0x64   : > { %2286 = vmatmul.mubr.msk.f32.gmra.mrb[40].mxu0 %vm281_vm0, %v188_v27 }
  0x65   : > { %2382 = vmatmul.mubr.msk.f32.gmra.mrb[40].mxu1 %vm281_vm0, %v252_v28  ;;  %2288 = vmatprep.mubr.msk.f32.mxu0 %vm281_vm0, %v189_v29 }
  0x66   : > { %2384 = vmatprep.mubr.msk.f32.mxu1 %vm281_vm0, %v253_v30 }
  0x68   : > { %2289 = vmatmul.mubr.msk.f32.gmra.mrb[42].mxu0 %vm281_vm0, %v190_v31 }
  0x69   : > { %2385 = vmatmul.mubr.msk.f32.gmra.mrb[42].mxu1 %vm281_vm0, %v254_v32  ;;  %2291 = vmatprep.mubr.msk.f32.mxu0 %vm281_vm0, %v191_v33 }
  0x6a   : > { %2387 = vmatprep.mubr.msk.f32.mxu1 %vm281_vm0, %v255_v34 }
  0x6c   : > { %2292 = vmatmul.mubr.msk.f32.gmra.mrb[44].mxu0 %vm281_vm0, %v192_v35 }
  0x6d   : > { %2388 = vmatmul.mubr.msk.f32.gmra.mrb[44].mxu1 %vm281_vm0, %v256_v36  ;;  %2294 = vmatprep.mubr.msk.f32.mxu0 %vm281_vm0, %v193_v37 }
  0x6e   : > { %2390 = vmatprep.mubr.msk.f32.mxu1 %vm281_vm0, %v257_v38 }
  0x70   : > { %2295 = vmatmul.mubr.msk.f32.gmra.mrb[46].mxu0 %vm281_vm0, %v194_v39 }
  0x71   : > { %2391 = vmatmul.mubr.msk.f32.gmra.mrb[46].mxu1 %vm281_vm0, %v258_v40  ;;  %2297 = vmatprep.mubr.msk.f32.mxu0 %vm281_vm0, %v195_v41 }
  0x72   : > { %2393 = vmatprep.mubr.msk.f32.mxu1 %vm281_vm0, %v259_v42 }
  0x74   : > { %2298 = vmatmul.mubr.msk.f32.gmra.mrb[48].mxu0 %vm281_vm0, %v196_v43 }
  0x75   : > { %2394 = vmatmul.mubr.msk.f32.gmra.mrb[48].mxu1 %vm281_vm0, %v260_v44  ;;  %2300 = vmatprep.mubr.msk.f32.mxu0 %vm281_vm0, %v197_v45 }
  0x76   : > { %2396 = vmatprep.mubr.msk.f32.mxu1 %vm281_vm0, %v261_v46 }
  0x78   : > { %2301 = vmatmul.mubr.msk.f32.gmra.mrb[50].mxu0 %vm281_vm0, %v198_v47 }
  0x79   : > { %2397 = vmatmul.mubr.msk.f32.gmra.mrb[50].mxu1 %vm281_vm0, %v262_v48  ;;  %2303 = vmatprep.mubr.msk.f32.mxu0 %vm281_vm0, %v199_v49 }
  0x7a   : > { %2399 = vmatprep.mubr.msk.f32.mxu1 %vm281_vm0, %v263_v50 }
  0x7c   : > { %2304 = vmatmul.mubr.msk.f32.gmra.mrb[52].mxu0 %vm281_vm0, %v200_v51 }
  0x7d   : > { %2400 = vmatmul.mubr.msk.f32.gmra.mrb[52].mxu1 %vm281_vm0, %v264_v52  ;;  %2306 = vmatprep.mubr.msk.f32.mxu0 %vm281_vm0, %v201_v53 }
  0x7e   : > { %2402 = vmatprep.mubr.msk.f32.mxu1 %vm281_vm0, %v265_v54 }
  0x80   : > { %2307 = vmatmul.mubr.msk.f32.gmra.mrb[54].mxu0 %vm281_vm0, %v202_v55 }
  0x81   : > { %2403 = vmatmul.mubr.msk.f32.gmra.mrb[54].mxu1 %vm281_vm0, %v266_v56  ;;  %2309 = vmatprep.mubr.msk.f32.mxu0 %vm281_vm0, %v203_v57 }
  0x82   : > { %2405 = vmatprep.mubr.msk.f32.mxu1 %vm281_vm0, %v267_v58 }
  0x84   : > { %2310 = vmatmul.mubr.msk.f32.gmra.mrb[56].mxu0 %vm281_vm0, %v204_v59 }
  0x85   : > { %2406 = vmatmul.mubr.msk.f32.gmra.mrb[56].mxu1 %vm281_vm0, %v268_v60  ;;  %2312 = vmatprep.mubr.msk.f32.mxu0 %vm281_vm0, %v205_v61 }
  0x86   : > { %2408 = vmatprep.mubr.msk.f32.mxu1 %vm281_vm0, %v269_v62 }
  0x88   : > { %2313 = vmatmul.mubr.msk.f32.gmra.mrb[58].mxu0 %vm281_vm0, %v206_v63 }
  0x89   : > { %2409 = vmatmul.mubr.msk.f32.gmra.mrb[58].mxu1 %vm281_vm0, %v270_v0  ;;  %2315 = vmatprep.mubr.msk.f32.mxu0 %vm281_vm0, %v207_v1 }
  0x8a   : > { %2411 = vmatprep.mubr.msk.f32.mxu1 %vm281_vm0, %v271_v2 }
  0x8c   : > { %2316 = vmatmul.mubr.msk.f32.gmra.mrb[60].mxu0 %vm281_vm0, %v208_v3 }
  0x8d   : > { %2412 = vmatmul.mubr.msk.f32.gmra.mrb[60].mxu1 %vm281_vm0, %v272_v4  ;;  %2318 = vmatprep.mubr.msk.f32.mxu0 %vm281_vm0, %v209_v5 }
  0x8e   : > { %2414 = vmatprep.mubr.msk.f32.mxu1 %vm281_vm0, %v273_v6 }
  0x90   : > { %2319 = vmatmul.mubr.msk.f32.gmra.mrb[62].mxu0 %vm281_vm0, %v210_v7 }
  0x91   : > { %2415 = vmatmul.mubr.msk.f32.gmra.mrb[62].mxu1 %vm281_vm0, %v274_v8 }
  0xe7   : > { %v2227_v9 = vpop.f32.mrb[0].mxu0 }
  0xe8   : > { %v2323_v10 = vpop.f32.mrb[0].mxu1  ;;  %vm1372_vm2 = vcmp.gt.f32.partialorder %v2227_v9, 0.0  ;;  %v1500_v11 = vmul.f32 0.2, %v2227_v9  ;;  %v732_v13 = vpop.f32.mrb[1].mxu0 }
  0xe9   : > { %vm1436_vm3 = vcmp.gt.f32.partialorder %v2323_v10, 0.0  ;;  %v1564_v12 = vmul.f32 0.2, %v2323_v10  ;;  %v1052_v14 = vpop.f32.mrb[1].mxu1  ;;  %vm1371_vm4 = vcmp.gt.f32.partialorder %v732_v13, 0.0 }
  0xea   : > { %v1628_v15 = vsel %vm1372_vm2, %v2227_v9, %v1500_v11  ;;  %v1499_v17 = vmul.f32 0.2, %v732_v13  ;;  %vm1435_vm5 = vcmp.gt.f32.partialorder %v1052_v14, 0.0  ;;  %v1563_v18 = vmul.f32 0.2, %v1052_v14 }
  0xeb   : > { %v1692_v16 = vsel %vm1436_vm3, %v2323_v10, %v1564_v12  ;;  %1757 = vst.msk [vmem:[%s2763_s30 + $0x8] sm:$0xff] %vm1755_vm1, %v1628_v15  ;;  %v2230_v19 = vpop.f32.mrb[2].mxu0 }
  0xec   : > { %1821 = vst.msk [vmem:[%s2763_s30 + $0x208] sm:$0xff] %vm1755_vm1, %v1692_v16  ;;  %v2326_v20 = vpop.f32.mrb[2].mxu1  ;;  %v1627_v21 = vsel %vm1371_vm4, %v732_v13, %v1499_v17  ;;  %vm1374_vm6 = vcmp.gt.f32.partialorder %v2230_v19, 0.0  ;;  %v1502_v22 = vmul.f32 0.2, %v2230_v19  ;;  %v742_v23 = vpop.f32.mrb[3].mxu0  ;;  %v1691_v25 = vsel %vm1435_vm5, %v1052_v14, %v1563_v18 }
  0xed   : > { %vm1438_vm7 = vcmp.gt.f32.partialorder %v2326_v20, 0.0  ;;  %v1062_v24 = vpop.f32.mrb[3].mxu1  ;;  %1756 = vst.msk [vmem:[%s2763_s30] sm:$0xff] %vm1755_vm1, %v1627_v21  ;;  %v1566_v26 = vmul.f32 0.2, %v2326_v20  ;;  %vm1373_vm8 = vcmp.gt.f32.partialorder %v742_v23, 0.0 }
  0xee   : > { %v1501_v27 = vmul.f32 0.2, %v742_v23  ;;  %1820 = vst.msk [vmem:[%s2763_s30 + $0x200] sm:$0xff] %vm1755_vm1, %v1691_v25  ;;  %v1630_v28 = vsel %vm1374_vm6, %v2230_v19, %v1502_v22  ;;  %vm1437_vm9 = vcmp.gt.f32.partialorder %v1062_v24, 0.0  ;;  %v1565_v29 = vmul.f32 0.2, %v1062_v24 }
  0xef   : > { %1759 = vst.msk [vmem:[%s2763_s30 + $0x18] sm:$0xff] %vm1755_vm1, %v1630_v28  ;;  %v1694_v30 = vsel %vm1438_vm7, %v2326_v20, %v1566_v26  ;;  %v2233_v32 = vpop.f32.mrb[4].mxu0 }
  0xf0   : > { %v1629_v31 = vsel %vm1373_vm8, %v742_v23, %v1501_v27  ;;  %v2329_v33 = vpop.f32.mrb[4].mxu1  ;;  %1823 = vst.msk [vmem:[%s2763_s30 + $0x218] sm:$0xff] %vm1755_vm1, %v1694_v30  ;;  %v1693_v34 = vsel %vm1437_vm9, %v1062_v24, %v1565_v29  ;;  %vm1376_vm10 = vcmp.gt.f32.partialorder %v2233_v32, 0.0  ;;  %v1504_v35 = vmul.f32 0.2, %v2233_v32  ;;  %v752_v36 = vpop.f32.mrb[5].mxu0 }
  0xf1   : > { %1758 = vst.msk [vmem:[%s2763_s30 + $0x10] sm:$0xff] %vm1755_vm1, %v1629_v31  ;;  %vm1440_vm11 = vcmp.gt.f32.partialorder %v2329_v33, 0.0  ;;  %v1072_v37 = vpop.f32.mrb[5].mxu1  ;;  %1822 = vst.msk [vmem:[%s2763_s30 + $0x210] sm:$0xff] %vm1755_vm1, %v1693_v34  ;;  %v1568_v38 = vmul.f32 0.2, %v2329_v33 }
  0xf2   : > { %vm1375_vm12 = vcmp.gt.f32.partialorder %v752_v36, 0.0  ;;  %v1503_v39 = vmul.f32 0.2, %v752_v36  ;;  %vm1439_vm13 = vcmp.gt.f32.partialorder %v1072_v37, 0.0  ;;  %v1632_v40 = vsel %vm1376_vm10, %v2233_v32, %v1504_v35 }
  0xf3   : > { %v1567_v41 = vmul.f32 0.2, %v1072_v37  ;;  %1761 = vst.msk [vmem:[%s2763_s30 + $0x28] sm:$0xff] %vm1755_vm1, %v1632_v40  ;;  %v1696_v42 = vsel %vm1440_vm11, %v2329_v33, %v1568_v38  ;;  %v2236_v44 = vpop.f32.mrb[6].mxu0 }
  0xf4   : > { %v1631_v43 = vsel %vm1375_vm12, %v752_v36, %v1503_v39  ;;  %v2332_v45 = vpop.f32.mrb[6].mxu1  ;;  %1825 = vst.msk [vmem:[%s2763_s30 + $0x228] sm:$0xff] %vm1755_vm1, %v1696_v42  ;;  %vm1378_vm14 = vcmp.gt.f32.partialorder %v2236_v44, 0.0  ;;  %v1506_v47 = vmul.f32 0.2, %v2236_v44  ;;  %v762_v48 = vpop.f32.mrb[7].mxu0 }
  0xf5   : > { %1760 = vst.msk [vmem:[%s2763_s30 + $0x20] sm:$0xff] %vm1755_vm1, %v1631_v43  ;;  %v1695_v46 = vsel %vm1439_vm13, %v1072_v37, %v1567_v41  ;;  %vm1442_vm15 = vcmp.gt.f32.partialorder %v2332_v45, 0.0  ;;  %v1082_v49 = vpop.f32.mrb[7].mxu1  ;;  %v1570_v50 = vmul.f32 0.2, %v2332_v45  ;;  %vm1377_vm0 = vcmp.gt.f32.partialorder %v762_v48, 0.0 }
  0xf6   : > { %1824 = vst.msk [vmem:[%s2763_s30 + $0x220] sm:$0xff] %vm1755_vm1, %v1695_v46  ;;  %v1505_v51 = vmul.f32 0.2, %v762_v48  ;;  %vm1441_vm2 = vcmp.gt.f32.partialorder %v1082_v49, 0.0  ;;  %v1634_v52 = vsel %vm1378_vm14, %v2236_v44, %v1506_v47  ;;  %v1569_v53 = vmul.f32 0.2, %v1082_v49 }
  0xf7   : > { %1763 = vst.msk [vmem:[%s2763_s30 + $0x38] sm:$0xff] %vm1755_vm1, %v1634_v52  ;;  %v1698_v54 = vsel %vm1442_vm15, %v2332_v45, %v1570_v50  ;;  %v2239_v56 = vpop.f32.mrb[8].mxu0 }
  0xf8   : > { %v1633_v55 = vsel %vm1377_vm0, %v762_v48, %v1505_v51  ;;  %v2335_v57 = vpop.f32.mrb[8].mxu1  ;;  %1827 = vst.msk [vmem:[%s2763_s30 + $0x238] sm:$0xff] %vm1755_vm1, %v1698_v54  ;;  %v1697_v58 = vsel %vm1441_vm2, %v1082_v49, %v1569_v53  ;;  %vm1380_vm3 = vcmp.gt.f32.partialorder %v2239_v56, 0.0  ;;  %v1508_v59 = vmul.f32 0.2, %v2239_v56  ;;  %v772_v60 = vpop.f32.mrb[9].mxu0 }
  0xf9   : > { %1762 = vst.msk [vmem:[%s2763_s30 + $0x30] sm:$0xff] %vm1755_vm1, %v1633_v55  ;;  %vm1444_vm4 = vcmp.gt.f32.partialorder %v2335_v57, 0.0  ;;  %v1092_v61 = vpop.f32.mrb[9].mxu1  ;;  %1826 = vst.msk [vmem:[%s2763_s30 + $0x230] sm:$0xff] %vm1755_vm1, %v1697_v58  ;;  %v1572_v62 = vmul.f32 0.2, %v2335_v57 }
  0xfa   : > { %vm1379_vm5 = vcmp.gt.f32.partialorder %v772_v60, 0.0  ;;  %v1507_v63 = vmul.f32 0.2, %v772_v60  ;;  %vm1443_vm6 = vcmp.gt.f32.partialorder %v1092_v61, 0.0  ;;  %v1636_v0 = vsel %vm1380_vm3, %v2239_v56, %v1508_v59 }
  0xfb   : > { %v1571_v1 = vmul.f32 0.2, %v1092_v61  ;;  %1765 = vst.msk [vmem:[%s2763_s30 + $0x48] sm:$0xff] %vm1755_vm1, %v1636_v0  ;;  %v1700_v2 = vsel %vm1444_vm4, %v2335_v57, %v1572_v62  ;;  %v2242_v4 = vpop.f32.mrb[10].mxu0 }
  0xfc   : > { %v1635_v3 = vsel %vm1379_vm5, %v772_v60, %v1507_v63  ;;  %v2338_v5 = vpop.f32.mrb[10].mxu1  ;;  %1829 = vst.msk [vmem:[%s2763_s30 + $0x248] sm:$0xff] %vm1755_vm1, %v1700_v2  ;;  %vm1382_vm7 = vcmp.gt.f32.partialorder %v2242_v4, 0.0  ;;  %v1510_v7 = vmul.f32 0.2, %v2242_v4  ;;  %v782_v8 = vpop.f32.mrb[11].mxu0 }
  0xfd   : > { %1764 = vst.msk [vmem:[%s2763_s30 + $0x40] sm:$0xff] %vm1755_vm1, %v1635_v3  ;;  %v1699_v6 = vsel %vm1443_vm6, %v1092_v61, %v1571_v1  ;;  %vm1446_vm8 = vcmp.gt.f32.partialorder %v2338_v5, 0.0  ;;  %v1102_v9 = vpop.f32.mrb[11].mxu1  ;;  %v1574_v10 = vmul.f32 0.2, %v2338_v5  ;;  %vm1381_vm9 = vcmp.gt.f32.partialorder %v782_v8, 0.0 }
  0xfe   : > { %1828 = vst.msk [vmem:[%s2763_s30 + $0x240] sm:$0xff] %vm1755_vm1, %v1699_v6  ;;  %v1509_v11 = vmul.f32 0.2, %v782_v8  ;;  %vm1445_vm10 = vcmp.gt.f32.partialorder %v1102_v9, 0.0  ;;  %v1638_v12 = vsel %vm1382_vm7, %v2242_v4, %v1510_v7  ;;  %v1573_v13 = vmul.f32 0.2, %v1102_v9 }
  0xff   : > { %1767 = vst.msk [vmem:[%s2763_s30 + $0x58] sm:$0xff] %vm1755_vm1, %v1638_v12  ;;  %v1702_v14 = vsel %vm1446_vm8, %v2338_v5, %v1574_v10  ;;  %v2245_v16 = vpop.f32.mrb[12].mxu0 }
 0x100   : > { %v1637_v15 = vsel %vm1381_vm9, %v782_v8, %v1509_v11  ;;  %v2341_v17 = vpop.f32.mrb[12].mxu1  ;;  %1831 = vst.msk [vmem:[%s2763_s30 + $0x258] sm:$0xff] %vm1755_vm1, %v1702_v14  ;;  %v1701_v18 = vsel %vm1445_vm10, %v1102_v9, %v1573_v13  ;;  %vm1384_vm11 = vcmp.gt.f32.partialorder %v2245_v16, 0.0  ;;  %v1512_v19 = vmul.f32 0.2, %v2245_v16  ;;  %v792_v20 = vpop.f32.mrb[13].mxu0 }
 0x101   : > { %1766 = vst.msk [vmem:[%s2763_s30 + $0x50] sm:$0xff] %vm1755_vm1, %v1637_v15  ;;  %vm1448_vm12 = vcmp.gt.f32.partialorder %v2341_v17, 0.0  ;;  %v1112_v21 = vpop.f32.mrb[13].mxu1  ;;  %1830 = vst.msk [vmem:[%s2763_s30 + $0x250] sm:$0xff] %vm1755_vm1, %v1701_v18  ;;  %v1576_v22 = vmul.f32 0.2, %v2341_v17 }
 0x102   : > { %vm1383_vm13 = vcmp.gt.f32.partialorder %v792_v20, 0.0  ;;  %v1511_v23 = vmul.f32 0.2, %v792_v20  ;;  %vm1447_vm14 = vcmp.gt.f32.partialorder %v1112_v21, 0.0  ;;  %v1640_v24 = vsel %vm1384_vm11, %v2245_v16, %v1512_v19 }
 0x103   : > { %v1575_v25 = vmul.f32 0.2, %v1112_v21  ;;  %1769 = vst.msk [vmem:[%s2763_s30 + $0x68] sm:$0xff] %vm1755_vm1, %v1640_v24  ;;  %v1704_v26 = vsel %vm1448_vm12, %v2341_v17, %v1576_v22  ;;  %v2248_v28 = vpop.f32.mrb[14].mxu0 }
 0x104   : > { %v1639_v27 = vsel %vm1383_vm13, %v792_v20, %v1511_v23  ;;  %v2344_v29 = vpop.f32.mrb[14].mxu1  ;;  %1833 = vst.msk [vmem:[%s2763_s30 + $0x268] sm:$0xff] %vm1755_vm1, %v1704_v26  ;;  %vm1386_vm15 = vcmp.gt.f32.partialorder %v2248_v28, 0.0  ;;  %v1514_v31 = vmul.f32 0.2, %v2248_v28  ;;  %v802_v32 = vpop.f32.mrb[15].mxu0 }
 0x105   : > { %1768 = vst.msk [vmem:[%s2763_s30 + $0x60] sm:$0xff] %vm1755_vm1, %v1639_v27  ;;  %v1703_v30 = vsel %vm1447_vm14, %v1112_v21, %v1575_v25  ;;  %vm1450_vm0 = vcmp.gt.f32.partialorder %v2344_v29, 0.0  ;;  %v1122_v33 = vpop.f32.mrb[15].mxu1  ;;  %v1578_v34 = vmul.f32 0.2, %v2344_v29  ;;  %vm1385_vm2 = vcmp.gt.f32.partialorder %v802_v32, 0.0 }
 0x106   : > { %1832 = vst.msk [vmem:[%s2763_s30 + $0x260] sm:$0xff] %vm1755_vm1, %v1703_v30  ;;  %v1513_v35 = vmul.f32 0.2, %v802_v32  ;;  %vm1449_vm3 = vcmp.gt.f32.partialorder %v1122_v33, 0.0  ;;  %v1642_v36 = vsel %vm1386_vm15, %v2248_v28, %v1514_v31  ;;  %v1577_v37 = vmul.f32 0.2, %v1122_v33 }
 0x107   : > { %1771 = vst.msk [vmem:[%s2763_s30 + $0x78] sm:$0xff] %vm1755_vm1, %v1642_v36  ;;  %v1706_v38 = vsel %vm1450_vm0, %v2344_v29, %v1578_v34  ;;  %v2251_v40 = vpop.f32.mrb[16].mxu0 }
 0x108   : > { %v1641_v39 = vsel %vm1385_vm2, %v802_v32, %v1513_v35  ;;  %v2347_v41 = vpop.f32.mrb[16].mxu1  ;;  %1835 = vst.msk [vmem:[%s2763_s30 + $0x278] sm:$0xff] %vm1755_vm1, %v1706_v38  ;;  %v1705_v42 = vsel %vm1449_vm3, %v1122_v33, %v1577_v37  ;;  %vm1388_vm4 = vcmp.gt.f32.partialorder %v2251_v40, 0.0  ;;  %v1516_v43 = vmul.f32 0.2, %v2251_v40  ;;  %v812_v44 = vpop.f32.mrb[17].mxu0 }
 0x109   : > { %1770 = vst.msk [vmem:[%s2763_s30 + $0x70] sm:$0xff] %vm1755_vm1, %v1641_v39  ;;  %vm1452_vm5 = vcmp.gt.f32.partialorder %v2347_v41, 0.0  ;;  %v1132_v45 = vpop.f32.mrb[17].mxu1  ;;  %1834 = vst.msk [vmem:[%s2763_s30 + $0x270] sm:$0xff] %vm1755_vm1, %v1705_v42  ;;  %v1580_v46 = vmul.f32 0.2, %v2347_v41 }
 0x10a   : > { %vm1387_vm6 = vcmp.gt.f32.partialorder %v812_v44, 0.0  ;;  %v1515_v47 = vmul.f32 0.2, %v812_v44  ;;  %vm1451_vm7 = vcmp.gt.f32.partialorder %v1132_v45, 0.0  ;;  %v1644_v48 = vsel %vm1388_vm4, %v2251_v40, %v1516_v43 }
 0x10b   : > { %v1579_v49 = vmul.f32 0.2, %v1132_v45  ;;  %1773 = vst.msk [vmem:[%s2763_s30 + $0x88] sm:$0xff] %vm1755_vm1, %v1644_v48  ;;  %v1708_v50 = vsel %vm1452_vm5, %v2347_v41, %v1580_v46  ;;  %v2254_v52 = vpop.f32.mrb[18].mxu0 }
 0x10c   : > { %v1643_v51 = vsel %vm1387_vm6, %v812_v44, %v1515_v47  ;;  %v2350_v53 = vpop.f32.mrb[18].mxu1  ;;  %1837 = vst.msk [vmem:[%s2763_s30 + $0x288] sm:$0xff] %vm1755_vm1, %v1708_v50  ;;  %vm1390_vm8 = vcmp.gt.f32.partialorder %v2254_v52, 0.0  ;;  %v1518_v55 = vmul.f32 0.2, %v2254_v52  ;;  %v822_v56 = vpop.f32.mrb[19].mxu0 }
 0x10d   : > { %1772 = vst.msk [vmem:[%s2763_s30 + $0x80] sm:$0xff] %vm1755_vm1, %v1643_v51  ;;  %v1707_v54 = vsel %vm1451_vm7, %v1132_v45, %v1579_v49  ;;  %vm1454_vm9 = vcmp.gt.f32.partialorder %v2350_v53, 0.0  ;;  %v1142_v57 = vpop.f32.mrb[19].mxu1  ;;  %v1582_v58 = vmul.f32 0.2, %v2350_v53  ;;  %vm1389_vm10 = vcmp.gt.f32.partialorder %v822_v56, 0.0 }
 0x10e   : > { %1836 = vst.msk [vmem:[%s2763_s30 + $0x280] sm:$0xff] %vm1755_vm1, %v1707_v54  ;;  %v1517_v59 = vmul.f32 0.2, %v822_v56  ;;  %vm1453_vm11 = vcmp.gt.f32.partialorder %v1142_v57, 0.0  ;;  %v1646_v60 = vsel %vm1390_vm8, %v2254_v52, %v1518_v55  ;;  %v1581_v61 = vmul.f32 0.2, %v1142_v57 }
 0x10f   : > { %1775 = vst.msk [vmem:[%s2763_s30 + $0x98] sm:$0xff] %vm1755_vm1, %v1646_v60  ;;  %v1710_v62 = vsel %vm1454_vm9, %v2350_v53, %v1582_v58  ;;  %v2257_v0 = vpop.f32.mrb[20].mxu0 }
 0x110   : > { %v1645_v63 = vsel %vm1389_vm10, %v822_v56, %v1517_v59  ;;  %v2353_v1 = vpop.f32.mrb[20].mxu1  ;;  %1839 = vst.msk [vmem:[%s2763_s30 + $0x298] sm:$0xff] %vm1755_vm1, %v1710_v62  ;;  %v1709_v2 = vsel %vm1453_vm11, %v1142_v57, %v1581_v61  ;;  %vm1392_vm12 = vcmp.gt.f32.partialorder %v2257_v0, 0.0  ;;  %v1520_v3 = vmul.f32 0.2, %v2257_v0  ;;  %v832_v4 = vpop.f32.mrb[21].mxu0 }
 0x111   : > { %1774 = vst.msk [vmem:[%s2763_s30 + $0x90] sm:$0xff] %vm1755_vm1, %v1645_v63  ;;  %vm1456_vm13 = vcmp.gt.f32.partialorder %v2353_v1, 0.0  ;;  %v1152_v5 = vpop.f32.mrb[21].mxu1  ;;  %1838 = vst.msk [vmem:[%s2763_s30 + $0x290] sm:$0xff] %vm1755_vm1, %v1709_v2  ;;  %v1584_v6 = vmul.f32 0.2, %v2353_v1 }
 0x112   : > { %vm1391_vm14 = vcmp.gt.f32.partialorder %v832_v4, 0.0  ;;  %v1519_v7 = vmul.f32 0.2, %v832_v4  ;;  %vm1455_vm15 = vcmp.gt.f32.partialorder %v1152_v5, 0.0  ;;  %v1648_v8 = vsel %vm1392_vm12, %v2257_v0, %v1520_v3 }
 0x113   : > { %v1583_v9 = vmul.f32 0.2, %v1152_v5  ;;  %1777 = vst.msk [vmem:[%s2763_s30 + $0xa8] sm:$0xff] %vm1755_vm1, %v1648_v8  ;;  %v1712_v10 = vsel %vm1456_vm13, %v2353_v1, %v1584_v6  ;;  %v2260_v12 = vpop.f32.mrb[22].mxu0 }
 0x114   : > { %v1647_v11 = vsel %vm1391_vm14, %v832_v4, %v1519_v7  ;;  %v2356_v13 = vpop.f32.mrb[22].mxu1  ;;  %1841 = vst.msk [vmem:[%s2763_s30 + $0x2a8] sm:$0xff] %vm1755_vm1, %v1712_v10  ;;  %vm1394_vm0 = vcmp.gt.f32.partialorder %v2260_v12, 0.0  ;;  %v1522_v15 = vmul.f32 0.2, %v2260_v12  ;;  %v842_v16 = vpop.f32.mrb[23].mxu0 }
 0x115   : > { %1776 = vst.msk [vmem:[%s2763_s30 + $0xa0] sm:$0xff] %vm1755_vm1, %v1647_v11  ;;  %v1711_v14 = vsel %vm1455_vm15, %v1152_v5, %v1583_v9  ;;  %vm1458_vm2 = vcmp.gt.f32.partialorder %v2356_v13, 0.0  ;;  %v1162_v17 = vpop.f32.mrb[23].mxu1  ;;  %v1586_v18 = vmul.f32 0.2, %v2356_v13  ;;  %vm1393_vm3 = vcmp.gt.f32.partialorder %v842_v16, 0.0 }
 0x116   : > { %1840 = vst.msk [vmem:[%s2763_s30 + $0x2a0] sm:$0xff] %vm1755_vm1, %v1711_v14  ;;  %v1521_v19 = vmul.f32 0.2, %v842_v16  ;;  %vm1457_vm4 = vcmp.gt.f32.partialorder %v1162_v17, 0.0  ;;  %v1650_v20 = vsel %vm1394_vm0, %v2260_v12, %v1522_v15  ;;  %v1585_v21 = vmul.f32 0.2, %v1162_v17 }
 0x117   : > { %1779 = vst.msk [vmem:[%s2763_s30 + $0xb8] sm:$0xff] %vm1755_vm1, %v1650_v20  ;;  %v1714_v22 = vsel %vm1458_vm2, %v2356_v13, %v1586_v18  ;;  %v2263_v24 = vpop.f32.mrb[24].mxu0 }
 0x118   : > { %v1649_v23 = vsel %vm1393_vm3, %v842_v16, %v1521_v19  ;;  %v2359_v25 = vpop.f32.mrb[24].mxu1  ;;  %1843 = vst.msk [vmem:[%s2763_s30 + $0x2b8] sm:$0xff] %vm1755_vm1, %v1714_v22  ;;  %v1713_v26 = vsel %vm1457_vm4, %v1162_v17, %v1585_v21  ;;  %vm1396_vm5 = vcmp.gt.f32.partialorder %v2263_v24, 0.0  ;;  %v1524_v27 = vmul.f32 0.2, %v2263_v24  ;;  %v852_v28 = vpop.f32.mrb[25].mxu0 }
 0x119   : > { %1778 = vst.msk [vmem:[%s2763_s30 + $0xb0] sm:$0xff] %vm1755_vm1, %v1649_v23  ;;  %vm1460_vm6 = vcmp.gt.f32.partialorder %v2359_v25, 0.0  ;;  %v1172_v29 = vpop.f32.mrb[25].mxu1  ;;  %1842 = vst.msk [vmem:[%s2763_s30 + $0x2b0] sm:$0xff] %vm1755_vm1, %v1713_v26  ;;  %v1588_v30 = vmul.f32 0.2, %v2359_v25 }
 0x11a   : > { %vm1395_vm7 = vcmp.gt.f32.partialorder %v852_v28, 0.0  ;;  %v1523_v31 = vmul.f32 0.2, %v852_v28  ;;  %vm1459_vm8 = vcmp.gt.f32.partialorder %v1172_v29, 0.0  ;;  %v1652_v32 = vsel %vm1396_vm5, %v2263_v24, %v1524_v27 }
 0x11b   : > { %v1587_v33 = vmul.f32 0.2, %v1172_v29  ;;  %1781 = vst.msk [vmem:[%s2763_s30 + $0xc8] sm:$0xff] %vm1755_vm1, %v1652_v32  ;;  %v1716_v34 = vsel %vm1460_vm6, %v2359_v25, %v1588_v30  ;;  %v2266_v36 = vpop.f32.mrb[26].mxu0 }
 0x11c   : > { %v1651_v35 = vsel %vm1395_vm7, %v852_v28, %v1523_v31  ;;  %v2362_v37 = vpop.f32.mrb[26].mxu1  ;;  %1845 = vst.msk [vmem:[%s2763_s30 + $0x2c8] sm:$0xff] %vm1755_vm1, %v1716_v34  ;;  %vm1398_vm9 = vcmp.gt.f32.partialorder %v2266_v36, 0.0  ;;  %v1526_v39 = vmul.f32 0.2, %v2266_v36  ;;  %v862_v40 = vpop.f32.mrb[27].mxu0 }
 0x11d   : > { %1780 = vst.msk [vmem:[%s2763_s30 + $0xc0] sm:$0xff] %vm1755_vm1, %v1651_v35  ;;  %v1715_v38 = vsel %vm1459_vm8, %v1172_v29, %v1587_v33  ;;  %vm1462_vm10 = vcmp.gt.f32.partialorder %v2362_v37, 0.0  ;;  %v1182_v41 = vpop.f32.mrb[27].mxu1  ;;  %v1590_v42 = vmul.f32 0.2, %v2362_v37  ;;  %vm1397_vm11 = vcmp.gt.f32.partialorder %v862_v40, 0.0 }
 0x11e   : > { %1844 = vst.msk [vmem:[%s2763_s30 + $0x2c0] sm:$0xff] %vm1755_vm1, %v1715_v38  ;;  %v1525_v43 = vmul.f32 0.2, %v862_v40  ;;  %vm1461_vm12 = vcmp.gt.f32.partialorder %v1182_v41, 0.0  ;;  %v1654_v44 = vsel %vm1398_vm9, %v2266_v36, %v1526_v39  ;;  %v1589_v45 = vmul.f32 0.2, %v1182_v41 }
 0x11f   : > { %1783 = vst.msk [vmem:[%s2763_s30 + $0xd8] sm:$0xff] %vm1755_vm1, %v1654_v44  ;;  %v1718_v46 = vsel %vm1462_vm10, %v2362_v37, %v1590_v42  ;;  %v2269_v48 = vpop.f32.mrb[28].mxu0 }
 0x120   : > { %v1653_v47 = vsel %vm1397_vm11, %v862_v40, %v1525_v43  ;;  %v2365_v49 = vpop.f32.mrb[28].mxu1  ;;  %1847 = vst.msk [vmem:[%s2763_s30 + $0x2d8] sm:$0xff] %vm1755_vm1, %v1718_v46  ;;  %v1717_v50 = vsel %vm1461_vm12, %v1182_v41, %v1589_v45  ;;  %vm1400_vm13 = vcmp.gt.f32.partialorder %v2269_v48, 0.0  ;;  %v1528_v51 = vmul.f32 0.2, %v2269_v48  ;;  %v872_v52 = vpop.f32.mrb[29].mxu0 }
 0x121   : > { %1782 = vst.msk [vmem:[%s2763_s30 + $0xd0] sm:$0xff] %vm1755_vm1, %v1653_v47  ;;  %vm1464_vm14 = vcmp.gt.f32.partialorder %v2365_v49, 0.0  ;;  %v1192_v53 = vpop.f32.mrb[29].mxu1  ;;  %1846 = vst.msk [vmem:[%s2763_s30 + $0x2d0] sm:$0xff] %vm1755_vm1, %v1717_v50  ;;  %v1592_v54 = vmul.f32 0.2, %v2365_v49 }
 0x122   : > { %vm1399_vm15 = vcmp.gt.f32.partialorder %v872_v52, 0.0  ;;  %v1527_v55 = vmul.f32 0.2, %v872_v52  ;;  %vm1463_vm0 = vcmp.gt.f32.partialorder %v1192_v53, 0.0  ;;  %v1656_v56 = vsel %vm1400_vm13, %v2269_v48, %v1528_v51 }
 0x123   : > { %v1591_v57 = vmul.f32 0.2, %v1192_v53  ;;  %1785 = vst.msk [vmem:[%s2763_s30 + $0xe8] sm:$0xff] %vm1755_vm1, %v1656_v56  ;;  %v1720_v58 = vsel %vm1464_vm14, %v2365_v49, %v1592_v54  ;;  %v2272_v60 = vpop.f32.mrb[30].mxu0 }
 0x124   : > { %v1655_v59 = vsel %vm1399_vm15, %v872_v52, %v1527_v55  ;;  %v2368_v61 = vpop.f32.mrb[30].mxu1  ;;  %1849 = vst.msk [vmem:[%s2763_s30 + $0x2e8] sm:$0xff] %vm1755_vm1, %v1720_v58  ;;  %vm1402_vm2 = vcmp.gt.f32.partialorder %v2272_v60, 0.0  ;;  %v1530_v63 = vmul.f32 0.2, %v2272_v60  ;;  %v882_v0 = vpop.f32.mrb[31].mxu0 }
 0x125   : > { %1784 = vst.msk [vmem:[%s2763_s30 + $0xe0] sm:$0xff] %vm1755_vm1, %v1655_v59  ;;  %v1719_v62 = vsel %vm1463_vm0, %v1192_v53, %v1591_v57  ;;  %vm1466_vm3 = vcmp.gt.f32.partialorder %v2368_v61, 0.0  ;;  %v1202_v1 = vpop.f32.mrb[31].mxu1  ;;  %v1594_v2 = vmul.f32 0.2, %v2368_v61  ;;  %vm1401_vm4 = vcmp.gt.f32.partialorder %v882_v0, 0.0 }
 0x126   : > { %1848 = vst.msk [vmem:[%s2763_s30 + $0x2e0] sm:$0xff] %vm1755_vm1, %v1719_v62  ;;  %v1529_v3 = vmul.f32 0.2, %v882_v0  ;;  %vm1465_vm5 = vcmp.gt.f32.partialorder %v1202_v1, 0.0  ;;  %v1658_v4 = vsel %vm1402_vm2, %v2272_v60, %v1530_v63  ;;  %v1593_v5 = vmul.f32 0.2, %v1202_v1 }
 0x127   : > { %1787 = vst.msk [vmem:[%s2763_s30 + $0xf8] sm:$0xff] %vm1755_vm1, %v1658_v4  ;;  %v1722_v6 = vsel %vm1466_vm3, %v2368_v61, %v1594_v2  ;;  %v2275_v8 = vpop.f32.mrb[32].mxu0 }
 0x128   : > { %v1657_v7 = vsel %vm1401_vm4, %v882_v0, %v1529_v3  ;;  %v2371_v9 = vpop.f32.mrb[32].mxu1  ;;  %1851 = vst.msk [vmem:[%s2763_s30 + $0x2f8] sm:$0xff] %vm1755_vm1, %v1722_v6  ;;  %v1721_v10 = vsel %vm1465_vm5, %v1202_v1, %v1593_v5  ;;  %vm1404_vm6 = vcmp.gt.f32.partialorder %v2275_v8, 0.0  ;;  %v1532_v11 = vmul.f32 0.2, %v2275_v8  ;;  %v892_v12 = vpop.f32.mrb[33].mxu0 }
 0x129   : > { %1786 = vst.msk [vmem:[%s2763_s30 + $0xf0] sm:$0xff] %vm1755_vm1, %v1657_v7  ;;  %vm1468_vm7 = vcmp.gt.f32.partialorder %v2371_v9, 0.0  ;;  %v1212_v13 = vpop.f32.mrb[33].mxu1  ;;  %1850 = vst.msk [vmem:[%s2763_s30 + $0x2f0] sm:$0xff] %vm1755_vm1, %v1721_v10  ;;  %v1596_v14 = vmul.f32 0.2, %v2371_v9 }
 0x12a   : > { %vm1403_vm8 = vcmp.gt.f32.partialorder %v892_v12, 0.0  ;;  %v1531_v15 = vmul.f32 0.2, %v892_v12  ;;  %vm1467_vm9 = vcmp.gt.f32.partialorder %v1212_v13, 0.0  ;;  %v1660_v16 = vsel %vm1404_vm6, %v2275_v8, %v1532_v11 }
 0x12b   : > { %v1595_v17 = vmul.f32 0.2, %v1212_v13  ;;  %1789 = vst.msk [vmem:[%s2763_s30 + $0x108] sm:$0xff] %vm1755_vm1, %v1660_v16  ;;  %v1724_v18 = vsel %vm1468_vm7, %v2371_v9, %v1596_v14  ;;  %v2278_v20 = vpop.f32.mrb[34].mxu0 }
 0x12c   : > { %v1659_v19 = vsel %vm1403_vm8, %v892_v12, %v1531_v15  ;;  %v2374_v21 = vpop.f32.mrb[34].mxu1  ;;  %1853 = vst.msk [vmem:[%s2763_s30 + $0x308] sm:$0xff] %vm1755_vm1, %v1724_v18  ;;  %vm1406_vm10 = vcmp.gt.f32.partialorder %v2278_v20, 0.0  ;;  %v1534_v23 = vmul.f32 0.2, %v2278_v20  ;;  %v902_v24 = vpop.f32.mrb[35].mxu0 }
 0x12d   : > { %1788 = vst.msk [vmem:[%s2763_s30 + $0x100] sm:$0xff] %vm1755_vm1, %v1659_v19  ;;  %v1723_v22 = vsel %vm1467_vm9, %v1212_v13, %v1595_v17  ;;  %vm1470_vm11 = vcmp.gt.f32.partialorder %v2374_v21, 0.0  ;;  %v1222_v25 = vpop.f32.mrb[35].mxu1  ;;  %v1598_v26 = vmul.f32 0.2, %v2374_v21  ;;  %vm1405_vm12 = vcmp.gt.f32.partialorder %v902_v24, 0.0 }
 0x12e   : > { %1852 = vst.msk [vmem:[%s2763_s30 + $0x300] sm:$0xff] %vm1755_vm1, %v1723_v22  ;;  %v1533_v27 = vmul.f32 0.2, %v902_v24  ;;  %vm1469_vm13 = vcmp.gt.f32.partialorder %v1222_v25, 0.0  ;;  %v1662_v28 = vsel %vm1406_vm10, %v2278_v20, %v1534_v23  ;;  %v1597_v29 = vmul.f32 0.2, %v1222_v25 }
 0x12f   : > { %1791 = vst.msk [vmem:[%s2763_s30 + $0x118] sm:$0xff] %vm1755_vm1, %v1662_v28  ;;  %v1726_v30 = vsel %vm1470_vm11, %v2374_v21, %v1598_v26  ;;  %v2281_v32 = vpop.f32.mrb[36].mxu0 }
 0x130   : > { %v1661_v31 = vsel %vm1405_vm12, %v902_v24, %v1533_v27  ;;  %v2377_v33 = vpop.f32.mrb[36].mxu1  ;;  %1855 = vst.msk [vmem:[%s2763_s30 + $0x318] sm:$0xff] %vm1755_vm1, %v1726_v30  ;;  %v1725_v34 = vsel %vm1469_vm13, %v1222_v25, %v1597_v29  ;;  %vm1408_vm14 = vcmp.gt.f32.partialorder %v2281_v32, 0.0  ;;  %v1536_v35 = vmul.f32 0.2, %v2281_v32  ;;  %v912_v36 = vpop.f32.mrb[37].mxu0 }
 0x131   : > { %1790 = vst.msk [vmem:[%s2763_s30 + $0x110] sm:$0xff] %vm1755_vm1, %v1661_v31  ;;  %vm1472_vm15 = vcmp.gt.f32.partialorder %v2377_v33, 0.0  ;;  %v1232_v37 = vpop.f32.mrb[37].mxu1  ;;  %1854 = vst.msk [vmem:[%s2763_s30 + $0x310] sm:$0xff] %vm1755_vm1, %v1725_v34  ;;  %v1600_v38 = vmul.f32 0.2, %v2377_v33 }
 0x132   : > { %vm1407_vm0 = vcmp.gt.f32.partialorder %v912_v36, 0.0  ;;  %v1535_v39 = vmul.f32 0.2, %v912_v36  ;;  %vm1471_vm2 = vcmp.gt.f32.partialorder %v1232_v37, 0.0  ;;  %v1664_v40 = vsel %vm1408_vm14, %v2281_v32, %v1536_v35 }
 0x133   : > { %v1599_v41 = vmul.f32 0.2, %v1232_v37  ;;  %1793 = vst.msk [vmem:[%s2763_s30 + $0x128] sm:$0xff] %vm1755_vm1, %v1664_v40  ;;  %v1728_v42 = vsel %vm1472_vm15, %v2377_v33, %v1600_v38  ;;  %v2284_v44 = vpop.f32.mrb[38].mxu0 }
 0x134   : > { %v1663_v43 = vsel %vm1407_vm0, %v912_v36, %v1535_v39  ;;  %v2380_v45 = vpop.f32.mrb[38].mxu1  ;;  %1857 = vst.msk [vmem:[%s2763_s30 + $0x328] sm:$0xff] %vm1755_vm1, %v1728_v42  ;;  %vm1410_vm3 = vcmp.gt.f32.partialorder %v2284_v44, 0.0  ;;  %v1538_v47 = vmul.f32 0.2, %v2284_v44  ;;  %v922_v48 = vpop.f32.mrb[39].mxu0 }
 0x135   : > { %1792 = vst.msk [vmem:[%s2763_s30 + $0x120] sm:$0xff] %vm1755_vm1, %v1663_v43  ;;  %v1727_v46 = vsel %vm1471_vm2, %v1232_v37, %v1599_v41  ;;  %vm1474_vm4 = vcmp.gt.f32.partialorder %v2380_v45, 0.0  ;;  %v1242_v49 = vpop.f32.mrb[39].mxu1  ;;  %v1602_v50 = vmul.f32 0.2, %v2380_v45  ;;  %vm1409_vm5 = vcmp.gt.f32.partialorder %v922_v48, 0.0 }
 0x136   : > { %1856 = vst.msk [vmem:[%s2763_s30 + $0x320] sm:$0xff] %vm1755_vm1, %v1727_v46  ;;  %v1537_v51 = vmul.f32 0.2, %v922_v48  ;;  %vm1473_vm6 = vcmp.gt.f32.partialorder %v1242_v49, 0.0  ;;  %v1666_v52 = vsel %vm1410_vm3, %v2284_v44, %v1538_v47  ;;  %v1601_v53 = vmul.f32 0.2, %v1242_v49 }
 0x137   : > { %1795 = vst.msk [vmem:[%s2763_s30 + $0x138] sm:$0xff] %vm1755_vm1, %v1666_v52  ;;  %v1730_v54 = vsel %vm1474_vm4, %v2380_v45, %v1602_v50  ;;  %v2287_v56 = vpop.f32.mrb[40].mxu0 }
 0x138   : > { %v1665_v55 = vsel %vm1409_vm5, %v922_v48, %v1537_v51  ;;  %v2383_v57 = vpop.f32.mrb[40].mxu1  ;;  %1859 = vst.msk [vmem:[%s2763_s30 + $0x338] sm:$0xff] %vm1755_vm1, %v1730_v54  ;;  %v1729_v58 = vsel %vm1473_vm6, %v1242_v49, %v1601_v53  ;;  %vm1412_vm7 = vcmp.gt.f32.partialorder %v2287_v56, 0.0  ;;  %v1540_v59 = vmul.f32 0.2, %v2287_v56  ;;  %v932_v60 = vpop.f32.mrb[41].mxu0 }
 0x139   : > { %1794 = vst.msk [vmem:[%s2763_s30 + $0x130] sm:$0xff] %vm1755_vm1, %v1665_v55  ;;  %vm1476_vm8 = vcmp.gt.f32.partialorder %v2383_v57, 0.0  ;;  %v1252_v61 = vpop.f32.mrb[41].mxu1  ;;  %1858 = vst.msk [vmem:[%s2763_s30 + $0x330] sm:$0xff] %vm1755_vm1, %v1729_v58  ;;  %v1604_v62 = vmul.f32 0.2, %v2383_v57 }
 0x13a   : > { %vm1411_vm9 = vcmp.gt.f32.partialorder %v932_v60, 0.0  ;;  %v1539_v63 = vmul.f32 0.2, %v932_v60  ;;  %vm1475_vm10 = vcmp.gt.f32.partialorder %v1252_v61, 0.0  ;;  %v1668_v0 = vsel %vm1412_vm7, %v2287_v56, %v1540_v59 }
 0x13b   : > { %v1603_v1 = vmul.f32 0.2, %v1252_v61  ;;  %1797 = vst.msk [vmem:[%s2763_s30 + $0x148] sm:$0xff] %vm1755_vm1, %v1668_v0  ;;  %v1732_v2 = vsel %vm1476_vm8, %v2383_v57, %v1604_v62  ;;  %v2290_v4 = vpop.f32.mrb[42].mxu0 }
 0x13c   : > { %v1667_v3 = vsel %vm1411_vm9, %v932_v60, %v1539_v63  ;;  %v2386_v5 = vpop.f32.mrb[42].mxu1  ;;  %1861 = vst.msk [vmem:[%s2763_s30 + $0x348] sm:$0xff] %vm1755_vm1, %v1732_v2  ;;  %vm1414_vm11 = vcmp.gt.f32.partialorder %v2290_v4, 0.0  ;;  %v1542_v7 = vmul.f32 0.2, %v2290_v4  ;;  %v942_v8 = vpop.f32.mrb[43].mxu0 }
 0x13d   : > { %1796 = vst.msk [vmem:[%s2763_s30 + $0x140] sm:$0xff] %vm1755_vm1, %v1667_v3  ;;  %v1731_v6 = vsel %vm1475_vm10, %v1252_v61, %v1603_v1  ;;  %vm1478_vm12 = vcmp.gt.f32.partialorder %v2386_v5, 0.0  ;;  %v1262_v9 = vpop.f32.mrb[43].mxu1  ;;  %v1606_v10 = vmul.f32 0.2, %v2386_v5  ;;  %vm1413_vm13 = vcmp.gt.f32.partialorder %v942_v8, 0.0 }
 0x13e   : > { %1860 = vst.msk [vmem:[%s2763_s30 + $0x340] sm:$0xff] %vm1755_vm1, %v1731_v6  ;;  %v1541_v11 = vmul.f32 0.2, %v942_v8  ;;  %vm1477_vm14 = vcmp.gt.f32.partialorder %v1262_v9, 0.0  ;;  %v1670_v12 = vsel %vm1414_vm11, %v2290_v4, %v1542_v7  ;;  %v1605_v13 = vmul.f32 0.2, %v1262_v9 }
 0x13f   : > { %1799 = vst.msk [vmem:[%s2763_s30 + $0x158] sm:$0xff] %vm1755_vm1, %v1670_v12  ;;  %v1734_v14 = vsel %vm1478_vm12, %v2386_v5, %v1606_v10  ;;  %v2293_v16 = vpop.f32.mrb[44].mxu0 }
 0x140   : > { %v1669_v15 = vsel %vm1413_vm13, %v942_v8, %v1541_v11  ;;  %v2389_v17 = vpop.f32.mrb[44].mxu1  ;;  %1863 = vst.msk [vmem:[%s2763_s30 + $0x358] sm:$0xff] %vm1755_vm1, %v1734_v14  ;;  %v1733_v18 = vsel %vm1477_vm14, %v1262_v9, %v1605_v13  ;;  %vm1416_vm15 = vcmp.gt.f32.partialorder %v2293_v16, 0.0  ;;  %v1544_v19 = vmul.f32 0.2, %v2293_v16  ;;  %v952_v20 = vpop.f32.mrb[45].mxu0 }
 0x141   : > { %1798 = vst.msk [vmem:[%s2763_s30 + $0x150] sm:$0xff] %vm1755_vm1, %v1669_v15  ;;  %vm1480_vm0 = vcmp.gt.f32.partialorder %v2389_v17, 0.0  ;;  %v1272_v21 = vpop.f32.mrb[45].mxu1  ;;  %1862 = vst.msk [vmem:[%s2763_s30 + $0x350] sm:$0xff] %vm1755_vm1, %v1733_v18  ;;  %v1608_v22 = vmul.f32 0.2, %v2389_v17 }
 0x142   : > { %vm1415_vm2 = vcmp.gt.f32.partialorder %v952_v20, 0.0  ;;  %v1543_v23 = vmul.f32 0.2, %v952_v20  ;;  %vm1479_vm3 = vcmp.gt.f32.partialorder %v1272_v21, 0.0  ;;  %v1672_v24 = vsel %vm1416_vm15, %v2293_v16, %v1544_v19 }
 0x143   : > { %v1607_v25 = vmul.f32 0.2, %v1272_v21  ;;  %1801 = vst.msk [vmem:[%s2763_s30 + $0x168] sm:$0xff] %vm1755_vm1, %v1672_v24  ;;  %v1736_v26 = vsel %vm1480_vm0, %v2389_v17, %v1608_v22  ;;  %v2296_v28 = vpop.f32.mrb[46].mxu0 }
 0x144   : > { %v1671_v27 = vsel %vm1415_vm2, %v952_v20, %v1543_v23  ;;  %v2392_v29 = vpop.f32.mrb[46].mxu1  ;;  %1865 = vst.msk [vmem:[%s2763_s30 + $0x368] sm:$0xff] %vm1755_vm1, %v1736_v26  ;;  %vm1418_vm4 = vcmp.gt.f32.partialorder %v2296_v28, 0.0  ;;  %v1546_v31 = vmul.f32 0.2, %v2296_v28  ;;  %v962_v32 = vpop.f32.mrb[47].mxu0 }
 0x145   : > { %1800 = vst.msk [vmem:[%s2763_s30 + $0x160] sm:$0xff] %vm1755_vm1, %v1671_v27  ;;  %v1735_v30 = vsel %vm1479_vm3, %v1272_v21, %v1607_v25  ;;  %vm1482_vm5 = vcmp.gt.f32.partialorder %v2392_v29, 0.0  ;;  %v1282_v33 = vpop.f32.mrb[47].mxu1  ;;  %v1610_v34 = vmul.f32 0.2, %v2392_v29  ;;  %vm1417_vm6 = vcmp.gt.f32.partialorder %v962_v32, 0.0 }
 0x146   : > { %1864 = vst.msk [vmem:[%s2763_s30 + $0x360] sm:$0xff] %vm1755_vm1, %v1735_v30  ;;  %v1545_v35 = vmul.f32 0.2, %v962_v32  ;;  %vm1481_vm7 = vcmp.gt.f32.partialorder %v1282_v33, 0.0  ;;  %v1674_v36 = vsel %vm1418_vm4, %v2296_v28, %v1546_v31  ;;  %v1609_v37 = vmul.f32 0.2, %v1282_v33 }
 0x147   : > { %1803 = vst.msk [vmem:[%s2763_s30 + $0x178] sm:$0xff] %vm1755_vm1, %v1674_v36  ;;  %v1738_v38 = vsel %vm1482_vm5, %v2392_v29, %v1610_v34  ;;  %v2299_v40 = vpop.f32.mrb[48].mxu0 }
 0x148   : > { %v1673_v39 = vsel %vm1417_vm6, %v962_v32, %v1545_v35  ;;  %v2395_v41 = vpop.f32.mrb[48].mxu1  ;;  %1867 = vst.msk [vmem:[%s2763_s30 + $0x378] sm:$0xff] %vm1755_vm1, %v1738_v38  ;;  %v1737_v42 = vsel %vm1481_vm7, %v1282_v33, %v1609_v37  ;;  %vm1420_vm8 = vcmp.gt.f32.partialorder %v2299_v40, 0.0  ;;  %v1548_v43 = vmul.f32 0.2, %v2299_v40  ;;  %v972_v44 = vpop.f32.mrb[49].mxu0 }
 0x149   : > { %1802 = vst.msk [vmem:[%s2763_s30 + $0x170] sm:$0xff] %vm1755_vm1, %v1673_v39  ;;  %vm1484_vm9 = vcmp.gt.f32.partialorder %v2395_v41, 0.0  ;;  %v1292_v45 = vpop.f32.mrb[49].mxu1  ;;  %1866 = vst.msk [vmem:[%s2763_s30 + $0x370] sm:$0xff] %vm1755_vm1, %v1737_v42  ;;  %v1612_v46 = vmul.f32 0.2, %v2395_v41 }
 0x14a   : > { %vm1419_vm10 = vcmp.gt.f32.partialorder %v972_v44, 0.0  ;;  %v1547_v47 = vmul.f32 0.2, %v972_v44  ;;  %vm1483_vm11 = vcmp.gt.f32.partialorder %v1292_v45, 0.0  ;;  %v1676_v48 = vsel %vm1420_vm8, %v2299_v40, %v1548_v43 }
 0x14b   : > { %v1611_v49 = vmul.f32 0.2, %v1292_v45  ;;  %1805 = vst.msk [vmem:[%s2763_s30 + $0x188] sm:$0xff] %vm1755_vm1, %v1676_v48  ;;  %v1740_v50 = vsel %vm1484_vm9, %v2395_v41, %v1612_v46  ;;  %v2302_v52 = vpop.f32.mrb[50].mxu0 }
 0x14c   : > { %v1675_v51 = vsel %vm1419_vm10, %v972_v44, %v1547_v47  ;;  %v2398_v53 = vpop.f32.mrb[50].mxu1  ;;  %1869 = vst.msk [vmem:[%s2763_s30 + $0x388] sm:$0xff] %vm1755_vm1, %v1740_v50  ;;  %vm1422_vm12 = vcmp.gt.f32.partialorder %v2302_v52, 0.0  ;;  %v1550_v55 = vmul.f32 0.2, %v2302_v52  ;;  %v982_v56 = vpop.f32.mrb[51].mxu0 }
 0x14d   : > { %1804 = vst.msk [vmem:[%s2763_s30 + $0x180] sm:$0xff] %vm1755_vm1, %v1675_v51  ;;  %v1739_v54 = vsel %vm1483_vm11, %v1292_v45, %v1611_v49  ;;  %vm1486_vm13 = vcmp.gt.f32.partialorder %v2398_v53, 0.0  ;;  %v1302_v57 = vpop.f32.mrb[51].mxu1  ;;  %v1614_v58 = vmul.f32 0.2, %v2398_v53  ;;  %vm1421_vm14 = vcmp.gt.f32.partialorder %v982_v56, 0.0 }
 0x14e   : > { %1868 = vst.msk [vmem:[%s2763_s30 + $0x380] sm:$0xff] %vm1755_vm1, %v1739_v54  ;;  %v1549_v59 = vmul.f32 0.2, %v982_v56  ;;  %vm1485_vm15 = vcmp.gt.f32.partialorder %v1302_v57, 0.0  ;;  %v1678_v60 = vsel %vm1422_vm12, %v2302_v52, %v1550_v55  ;;  %v1613_v61 = vmul.f32 0.2, %v1302_v57 }
 0x14f   : > { %1807 = vst.msk [vmem:[%s2763_s30 + $0x198] sm:$0xff] %vm1755_vm1, %v1678_v60  ;;  %v1742_v62 = vsel %vm1486_vm13, %v2398_v53, %v1614_v58  ;;  %v2305_v0 = vpop.f32.mrb[52].mxu0 }
 0x150   : > { %v1677_v63 = vsel %vm1421_vm14, %v982_v56, %v1549_v59  ;;  %v2401_v1 = vpop.f32.mrb[52].mxu1  ;;  %1871 = vst.msk [vmem:[%s2763_s30 + $0x398] sm:$0xff] %vm1755_vm1, %v1742_v62  ;;  %v1741_v2 = vsel %vm1485_vm15, %v1302_v57, %v1613_v61  ;;  %vm1424_vm0 = vcmp.gt.f32.partialorder %v2305_v0, 0.0  ;;  %v1552_v3 = vmul.f32 0.2, %v2305_v0  ;;  %v992_v4 = vpop.f32.mrb[53].mxu0 }
 0x151   : > { %1806 = vst.msk [vmem:[%s2763_s30 + $0x190] sm:$0xff] %vm1755_vm1, %v1677_v63  ;;  %vm1488_vm2 = vcmp.gt.f32.partialorder %v2401_v1, 0.0  ;;  %v1312_v5 = vpop.f32.mrb[53].mxu1  ;;  %1870 = vst.msk [vmem:[%s2763_s30 + $0x390] sm:$0xff] %vm1755_vm1, %v1741_v2  ;;  %v1616_v6 = vmul.f32 0.2, %v2401_v1 }
 0x152   : > { %vm1423_vm3 = vcmp.gt.f32.partialorder %v992_v4, 0.0  ;;  %v1551_v7 = vmul.f32 0.2, %v992_v4  ;;  %vm1487_vm4 = vcmp.gt.f32.partialorder %v1312_v5, 0.0  ;;  %v1680_v8 = vsel %vm1424_vm0, %v2305_v0, %v1552_v3 }
 0x153   : > { %v1615_v9 = vmul.f32 0.2, %v1312_v5  ;;  %1809 = vst.msk [vmem:[%s2763_s30 + $0x1a8] sm:$0xff] %vm1755_vm1, %v1680_v8  ;;  %v1744_v10 = vsel %vm1488_vm2, %v2401_v1, %v1616_v6  ;;  %v2308_v12 = vpop.f32.mrb[54].mxu0 }
 0x154   : > { %v1679_v11 = vsel %vm1423_vm3, %v992_v4, %v1551_v7  ;;  %v2404_v13 = vpop.f32.mrb[54].mxu1  ;;  %1873 = vst.msk [vmem:[%s2763_s30 + $0x3a8] sm:$0xff] %vm1755_vm1, %v1744_v10  ;;  %vm1426_vm5 = vcmp.gt.f32.partialorder %v2308_v12, 0.0  ;;  %v1554_v15 = vmul.f32 0.2, %v2308_v12  ;;  %v1002_v16 = vpop.f32.mrb[55].mxu0 }
 0x155   : > { %1808 = vst.msk [vmem:[%s2763_s30 + $0x1a0] sm:$0xff] %vm1755_vm1, %v1679_v11  ;;  %v1743_v14 = vsel %vm1487_vm4, %v1312_v5, %v1615_v9  ;;  %vm1490_vm6 = vcmp.gt.f32.partialorder %v2404_v13, 0.0  ;;  %v1322_v17 = vpop.f32.mrb[55].mxu1  ;;  %v1618_v18 = vmul.f32 0.2, %v2404_v13  ;;  %vm1425_vm7 = vcmp.gt.f32.partialorder %v1002_v16, 0.0 }
 0x156   : > { %1872 = vst.msk [vmem:[%s2763_s30 + $0x3a0] sm:$0xff] %vm1755_vm1, %v1743_v14  ;;  %v1553_v19 = vmul.f32 0.2, %v1002_v16  ;;  %vm1489_vm8 = vcmp.gt.f32.partialorder %v1322_v17, 0.0  ;;  %v1682_v20 = vsel %vm1426_vm5, %v2308_v12, %v1554_v15  ;;  %v1617_v21 = vmul.f32 0.2, %v1322_v17 }
 0x157   : > { %1811 = vst.msk [vmem:[%s2763_s30 + $0x1b8] sm:$0xff] %vm1755_vm1, %v1682_v20  ;;  %v1746_v22 = vsel %vm1490_vm6, %v2404_v13, %v1618_v18  ;;  %v2311_v24 = vpop.f32.mrb[56].mxu0 }
 0x158   : > { %v1681_v23 = vsel %vm1425_vm7, %v1002_v16, %v1553_v19  ;;  %v2407_v25 = vpop.f32.mrb[56].mxu1  ;;  %1875 = vst.msk [vmem:[%s2763_s30 + $0x3b8] sm:$0xff] %vm1755_vm1, %v1746_v22  ;;  %v1745_v26 = vsel %vm1489_vm8, %v1322_v17, %v1617_v21  ;;  %vm1428_vm9 = vcmp.gt.f32.partialorder %v2311_v24, 0.0  ;;  %v1556_v27 = vmul.f32 0.2, %v2311_v24  ;;  %v1012_v28 = vpop.f32.mrb[57].mxu0 }
 0x159   : > { %1810 = vst.msk [vmem:[%s2763_s30 + $0x1b0] sm:$0xff] %vm1755_vm1, %v1681_v23  ;;  %vm1492_vm10 = vcmp.gt.f32.partialorder %v2407_v25, 0.0  ;;  %v1332_v29 = vpop.f32.mrb[57].mxu1  ;;  %1874 = vst.msk [vmem:[%s2763_s30 + $0x3b0] sm:$0xff] %vm1755_vm1, %v1745_v26  ;;  %v1620_v30 = vmul.f32 0.2, %v2407_v25 }
 0x15a   : > { %vm1427_vm11 = vcmp.gt.f32.partialorder %v1012_v28, 0.0  ;;  %v1555_v31 = vmul.f32 0.2, %v1012_v28  ;;  %vm1491_vm12 = vcmp.gt.f32.partialorder %v1332_v29, 0.0  ;;  %v1684_v32 = vsel %vm1428_vm9, %v2311_v24, %v1556_v27 }
 0x15b   : > { %v1619_v33 = vmul.f32 0.2, %v1332_v29  ;;  %1813 = vst.msk [vmem:[%s2763_s30 + $0x1c8] sm:$0xff] %vm1755_vm1, %v1684_v32  ;;  %v1748_v34 = vsel %vm1492_vm10, %v2407_v25, %v1620_v30  ;;  %v2314_v36 = vpop.f32.mrb[58].mxu0 }
 0x15c   : > { %v1683_v35 = vsel %vm1427_vm11, %v1012_v28, %v1555_v31  ;;  %v2410_v37 = vpop.f32.mrb[58].mxu1  ;;  %1877 = vst.msk [vmem:[%s2763_s30 + $0x3c8] sm:$0xff] %vm1755_vm1, %v1748_v34  ;;  %vm1430_vm13 = vcmp.gt.f32.partialorder %v2314_v36, 0.0  ;;  %v1558_v39 = vmul.f32 0.2, %v2314_v36  ;;  %v1022_v40 = vpop.f32.mrb[59].mxu0 }
 0x15d   : > { %1812 = vst.msk [vmem:[%s2763_s30 + $0x1c0] sm:$0xff] %vm1755_vm1, %v1683_v35  ;;  %v1747_v38 = vsel %vm1491_vm12, %v1332_v29, %v1619_v33  ;;  %vm1494_vm14 = vcmp.gt.f32.partialorder %v2410_v37, 0.0  ;;  %v1342_v41 = vpop.f32.mrb[59].mxu1  ;;  %v1622_v42 = vmul.f32 0.2, %v2410_v37  ;;  %vm1429_vm15 = vcmp.gt.f32.partialorder %v1022_v40, 0.0 }
 0x15e   : > { %1876 = vst.msk [vmem:[%s2763_s30 + $0x3c0] sm:$0xff] %vm1755_vm1, %v1747_v38  ;;  %v1557_v43 = vmul.f32 0.2, %v1022_v40  ;;  %vm1493_vm0 = vcmp.gt.f32.partialorder %v1342_v41, 0.0  ;;  %v1686_v44 = vsel %vm1430_vm13, %v2314_v36, %v1558_v39  ;;  %v1621_v45 = vmul.f32 0.2, %v1342_v41 }
 0x15f   : > { %1815 = vst.msk [vmem:[%s2763_s30 + $0x1d8] sm:$0xff] %vm1755_vm1, %v1686_v44  ;;  %v1750_v46 = vsel %vm1494_vm14, %v2410_v37, %v1622_v42  ;;  %v2317_v48 = vpop.f32.mrb[60].mxu0 }
 0x160   : > { %v1685_v47 = vsel %vm1429_vm15, %v1022_v40, %v1557_v43  ;;  %v2413_v49 = vpop.f32.mrb[60].mxu1  ;;  %1879 = vst.msk [vmem:[%s2763_s30 + $0x3d8] sm:$0xff] %vm1755_vm1, %v1750_v46  ;;  %v1749_v50 = vsel %vm1493_vm0, %v1342_v41, %v1621_v45  ;;  %vm1432_vm2 = vcmp.gt.f32.partialorder %v2317_v48, 0.0  ;;  %v1560_v51 = vmul.f32 0.2, %v2317_v48  ;;  %v1032_v52 = vpop.f32.mrb[61].mxu0 }
 0x161   : > { %1814 = vst.msk [vmem:[%s2763_s30 + $0x1d0] sm:$0xff] %vm1755_vm1, %v1685_v47  ;;  %vm1496_vm3 = vcmp.gt.f32.partialorder %v2413_v49, 0.0  ;;  %v1352_v53 = vpop.f32.mrb[61].mxu1  ;;  %1878 = vst.msk [vmem:[%s2763_s30 + $0x3d0] sm:$0xff] %vm1755_vm1, %v1749_v50  ;;  %v1624_v54 = vmul.f32 0.2, %v2413_v49 }
 0x162   : > { %vm1431_vm4 = vcmp.gt.f32.partialorder %v1032_v52, 0.0  ;;  %v1559_v55 = vmul.f32 0.2, %v1032_v52  ;;  %vm1495_vm5 = vcmp.gt.f32.partialorder %v1352_v53, 0.0  ;;  %v1688_v56 = vsel %vm1432_vm2, %v2317_v48, %v1560_v51 }
 0x163   : > { %v1623_v57 = vmul.f32 0.2, %v1352_v53  ;;  %1817 = vst.msk [vmem:[%s2763_s30 + $0x1e8] sm:$0xff] %vm1755_vm1, %v1688_v56  ;;  %v1752_v58 = vsel %vm1496_vm3, %v2413_v49, %v1624_v54  ;;  %v2320_v60 = vpop.f32.mrb[62].mxu0 }
 0x164   : > { %v1687_v59 = vsel %vm1431_vm4, %v1032_v52, %v1559_v55  ;;  %v2416_v61 = vpop.f32.mrb[62].mxu1  ;;  %1881 = vst.msk [vmem:[%s2763_s30 + $0x3e8] sm:$0xff] %vm1755_vm1, %v1752_v58  ;;  %vm1434_vm6 = vcmp.gt.f32.partialorder %v2320_v60, 0.0  ;;  %v1562_v63 = vmul.f32 0.2, %v2320_v60  ;;  %v1042_v0 = vpop.f32.mrb[63].mxu0 }
 0x165   : > { %1816 = vst.msk [vmem:[%s2763_s30 + $0x1e0] sm:$0xff] %vm1755_vm1, %v1687_v59  ;;  %v1751_v62 = vsel %vm1495_vm5, %v1352_v53, %v1623_v57  ;;  %vm1498_vm7 = vcmp.gt.f32.partialorder %v2416_v61, 0.0  ;;  %v1362_v1 = vpop.f32.mrb[63].mxu1  ;;  %v1626_v2 = vmul.f32 0.2, %v2416_v61  ;;  %vm1433_vm8 = vcmp.gt.f32.partialorder %v1042_v0, 0.0 }
 0x166   : > { %1880 = vst.msk [vmem:[%s2763_s30 + $0x3e0] sm:$0xff] %vm1755_vm1, %v1751_v62  ;;  %v1561_v3 = vmul.f32 0.2, %v1042_v0  ;;  %vm1497_vm9 = vcmp.gt.f32.partialorder %v1362_v1, 0.0  ;;  %v1690_v4 = vsel %vm1434_vm6, %v2320_v60, %v1562_v63  ;;  %v1625_v5 = vmul.f32 0.2, %v1362_v1 }
 0x167   : > { %1819 = vst.msk [vmem:[%s2763_s30 + $0x1f8] sm:$0xff] %vm1755_vm1, %v1690_v4  ;;  %v1754_v6 = vsel %vm1498_vm7, %v2416_v61, %v1626_v2 }
 0x168   : > { %v1689_v7 = vsel %vm1433_vm8, %v1042_v0, %v1561_v3  ;;  %1883 = vst.msk [vmem:[%s2763_s30 + $0x3f8] sm:$0xff] %vm1755_vm1, %v1754_v6  ;;  %v1753_v8 = vsel %vm1497_vm9, %v1362_v1, %v1625_v5 }
 0x169   : > { %1818 = vst.msk [vmem:[%s2763_s30 + $0x1f0] sm:$0xff] %vm1755_vm1, %v1689_v7  ;;  %1882 = vst.msk [vmem:[%s2763_s30 + $0x3f0] sm:$0xff] %vm1755_vm1, %v1753_v8 }
 0x16a PF: > { %s12_s9 = sadd.s32 1, %s2449_s9  }
 0x16b   : > { %p9_p4 = scmp.ge.s32.totalorder %s12_s9, 4  }
 0x16d   :  { %11 = sbr.rel (!%p9_p4) target bundleno = 1 (0x1), region = 58 }

// kernel: classifier_forward.6
= control target key start
LH: loop header
LB: loop body
LE: loop exit
PB: predicated region body
PF: predicated region fallthrough
CT: control target
= control target key end

     0   :  { %vm482_vm0 = vcmask 130048   ;;  %s3537_s1 = inlined_call_operand.vmem [shape: f32[128,16], index: 1, kind: input, shape index: {}]   ;;  %s3538_s0 = inlined_call_operand.vmem [shape: f32[512,128], index: 0, kind: input, shape index: {}]   ;;  %s3539_s2 = inlined_call_operand.vmem [shape: f32[1,16], index: 2, kind: input, shape index: {}]   ;;  %s3540_s3 = inlined_call_operand.vmem [shape: f32[1,16], index: 3, kind: input, shape index: {}]   ;;  %s3541_s4 = inlined_call_operand.vmem [shape: f32[512,16], index: 4, kind: output, shape index: {}]  }
   0x1   :  { %v81_v0 = vld [vmem:[%s3537_s1] sm:$0xff]  ;;  %v82_v1 = vld [vmem:[%s3537_s1 + $0x8] sm:$0xff]  ;;  %v83_v2 = vld [vmem:[%s3537_s1 + $0x10] sm:$0xff] }
   0x2   :  { %v1495_v3 = vpack.c.bf16 %v82_v1, %v81_v0  ;;  %v84_v4 = vld [vmem:[%s3537_s1 + $0x18] sm:$0xff]  ;;  %v85_v6 = vld [vmem:[%s3537_s1 + $0x20] sm:$0xff]  ;;  %v86_v7 = vld [vmem:[%s3537_s1 + $0x28] sm:$0xff] }
   0x3   :  { %v1499_v5 = vpack.c.bf16 %v84_v4, %v83_v2  ;;  %v1503_v8 = vpack.c.bf16 %v86_v7, %v85_v6  ;;  %v17_v9 = vld [vmem:[%s3538_s0] sm:$0xff]  ;;  %v87_v10 = vld [vmem:[%s3537_s1 + $0x30] sm:$0xff]  ;;  %v88_v11 = vld [vmem:[%s3537_s1 + $0x38] sm:$0xff] }
   0x4   :  { %1496 = vmatprep.subr.bf16.mxu0 %v1495_v3  ;;  %1527 = vmatprep.subr.bf16.mxu1 %v1495_v3  ;;  %v1507_v12 = vpack.c.bf16 %v88_v11, %v87_v10  ;;  %v89_v13 = vld [vmem:[%s3537_s1 + $0x40] sm:$0xff]  ;;  %v90_v14 = vld [vmem:[%s3537_s1 + $0x48] sm:$0xff]  ;;  %v91_v16 = vld [vmem:[%s3537_s1 + $0x50] sm:$0xff] }
   0x5   :  { %1498 = vmatpush3.bf16.msra.mxu0 %v1495_v3  ;;  %1535 = vmatpush3.bf16.msra.mxu1 %v1495_v3  ;;  %v1511_v15 = vpack.c.bf16 %v90_v14, %v89_v13  ;;  %v92_v17 = vld [vmem:[%s3537_s1 + $0x58] sm:$0xff]  ;;  %v49_v18 = vld [vmem:[%s3538_s0 + $0x100] sm:$0xff]  ;;  %v94_v21 = vld [vmem:[%s3537_s1 + $0x68] sm:$0xff] }
   0x6   :  { %1500 = vmatprep.subr.bf16.mxu0 %v1499_v5  ;;  %1528 = vmatprep.subr.bf16.mxu1 %v1499_v5  ;;  %v1515_v19 = vpack.c.bf16 %v92_v17, %v91_v16  ;;  %v93_v20 = vld [vmem:[%s3537_s1 + $0x60] sm:$0xff]  ;;  %v95_v23 = vld [vmem:[%s3537_s1 + $0x70] sm:$0xff]  ;;  %v96_v24 = vld [vmem:[%s3537_s1 + $0x78] sm:$0xff] }
   0x7   :  { %1399 = vmatprep.mubr.f32.mxu0 %v17_v9  ;;  %1447 = vmatprep.mubr.f32.mxu1 %v49_v18  ;;  %v1519_v22 = vpack.c.bf16 %v94_v21, %v93_v20  ;;  %v1523_v25 = vpack.c.bf16 %v96_v24, %v95_v23  ;;  %v18_v26 = vld [vmem:[%s3538_s0 + $0x8] sm:$0xff]  ;;  %v19_v28 = vld [vmem:[%s3538_s0 + $0x10] sm:$0xff]  ;;  %v20_v30 = vld [vmem:[%s3538_s0 + $0x18] sm:$0xff] }
   0x8   :  { %v50_v27 = vld [vmem:[%s3538_s0 + $0x108] sm:$0xff]  ;;  %v51_v29 = vld [vmem:[%s3538_s0 + $0x110] sm:$0xff]  ;;  %v52_v31 = vld [vmem:[%s3538_s0 + $0x118] sm:$0xff] }
   0x9   :  { %1502 = vmatpush3.bf16.msra.mxu0 %v1499_v5  ;;  %1536 = vmatpush3.bf16.msra.mxu1 %v1499_v5  ;;  %v21_v32 = vld [vmem:[%s3538_s0 + $0x20] sm:$0xff]  ;;  %v22_v34 = vld [vmem:[%s3538_s0 + $0x28] sm:$0xff]  ;;  %v23_v36 = vld [vmem:[%s3538_s0 + $0x30] sm:$0xff] }
   0xa   :  { %1504 = vmatprep.subr.bf16.mxu0 %v1503_v8  ;;  %1529 = vmatprep.subr.bf16.mxu1 %v1503_v8  ;;  %v53_v33 = vld [vmem:[%s3538_s0 + $0x120] sm:$0xff]  ;;  %v54_v35 = vld [vmem:[%s3538_s0 + $0x128] sm:$0xff]  ;;  %v55_v37 = vld [vmem:[%s3538_s0 + $0x130] sm:$0xff] }
   0xb   :  { %v24_v38 = vld [vmem:[%s3538_s0 + $0x38] sm:$0xff]  ;;  %v25_v40 = vld [vmem:[%s3538_s0 + $0x40] sm:$0xff]  ;;  %v26_v42 = vld [vmem:[%s3538_s0 + $0x48] sm:$0xff] }
   0xc   :  { %v56_v39 = vld [vmem:[%s3538_s0 + $0x138] sm:$0xff]  ;;  %v57_v41 = vld [vmem:[%s3538_s0 + $0x140] sm:$0xff]  ;;  %v58_v43 = vld [vmem:[%s3538_s0 + $0x148] sm:$0xff] }
   0xd   :  { %1506 = vmatpush3.bf16.msra.mxu0 %v1503_v8  ;;  %1537 = vmatpush3.bf16.msra.mxu1 %v1503_v8  ;;  %v27_v44 = vld [vmem:[%s3538_s0 + $0x50] sm:$0xff]  ;;  %v28_v46 = vld [vmem:[%s3538_s0 + $0x58] sm:$0xff]  ;;  %v29_v48 = vld [vmem:[%s3538_s0 + $0x60] sm:$0xff] }
   0xe   :  { %1508 = vmatprep.subr.bf16.mxu0 %v1507_v12  ;;  %1530 = vmatprep.subr.bf16.mxu1 %v1507_v12  ;;  %v59_v45 = vld [vmem:[%s3538_s0 + $0x150] sm:$0xff]  ;;  %v60_v47 = vld [vmem:[%s3538_s0 + $0x158] sm:$0xff]  ;;  %v61_v49 = vld [vmem:[%s3538_s0 + $0x160] sm:$0xff] }
   0xf   :  { %v30_v50 = vld [vmem:[%s3538_s0 + $0x68] sm:$0xff]  ;;  %v31_v52 = vld [vmem:[%s3538_s0 + $0x70] sm:$0xff]  ;;  %v32_v54 = vld [vmem:[%s3538_s0 + $0x78] sm:$0xff] }
  0x10   :  { %v62_v51 = vld [vmem:[%s3538_s0 + $0x168] sm:$0xff]  ;;  %v63_v53 = vld [vmem:[%s3538_s0 + $0x170] sm:$0xff]  ;;  %v64_v55 = vld [vmem:[%s3538_s0 + $0x178] sm:$0xff] }
  0x11   :  { %1510 = vmatpush3.bf16.msra.mxu0 %v1507_v12  ;;  %1538 = vmatpush3.bf16.msra.mxu1 %v1507_v12  ;;  %v33_v56 = vld [vmem:[%s3538_s0 + $0x80] sm:$0xff]  ;;  %v34_v58 = vld [vmem:[%s3538_s0 + $0x88] sm:$0xff]  ;;  %v35_v60 = vld [vmem:[%s3538_s0 + $0x90] sm:$0xff] }
  0x12   :  { %1512 = vmatprep.subr.bf16.mxu0 %v1511_v15  ;;  %1531 = vmatprep.subr.bf16.mxu1 %v1511_v15  ;;  %v65_v57 = vld [vmem:[%s3538_s0 + $0x180] sm:$0xff]  ;;  %v66_v59 = vld [vmem:[%s3538_s0 + $0x188] sm:$0xff]  ;;  %v67_v61 = vld [vmem:[%s3538_s0 + $0x190] sm:$0xff] }
  0x13   :  { %v36_v62 = vld [vmem:[%s3538_s0 + $0x98] sm:$0xff]  ;;  %v37_v0 = vld [vmem:[%s3538_s0 + $0xa0] sm:$0xff]  ;;  %v38_v2 = vld [vmem:[%s3538_s0 + $0xa8] sm:$0xff] }
  0x14   :  { %v68_v63 = vld [vmem:[%s3538_s0 + $0x198] sm:$0xff]  ;;  %v69_v1 = vld [vmem:[%s3538_s0 + $0x1a0] sm:$0xff]  ;;  %v70_v3 = vld [vmem:[%s3538_s0 + $0x1a8] sm:$0xff] }
  0x15   :  { %1514 = vmatpush3.bf16.msra.mxu0 %v1511_v15  ;;  %1539 = vmatpush3.bf16.msra.mxu1 %v1511_v15  ;;  %v39_v4 = vld [vmem:[%s3538_s0 + $0xb0] sm:$0xff]  ;;  %v40_v6 = vld [vmem:[%s3538_s0 + $0xb8] sm:$0xff]  ;;  %v41_v8 = vld [vmem:[%s3538_s0 + $0xc0] sm:$0xff] }
  0x16   :  { %1516 = vmatprep.subr.bf16.mxu0 %v1515_v19  ;;  %1532 = vmatprep.subr.bf16.mxu1 %v1515_v19  ;;  %v71_v5 = vld [vmem:[%s3538_s0 + $0x1b0] sm:$0xff]  ;;  %v72_v7 = vld [vmem:[%s3538_s0 + $0x1b8] sm:$0xff]  ;;  %v73_v9 = vld [vmem:[%s3538_s0 + $0x1c0] sm:$0xff] }
  0x17   :  { %v42_v10 = vld [vmem:[%s3538_s0 + $0xc8] sm:$0xff]  ;;  %v43_v12 = vld [vmem:[%s3538_s0 + $0xd0] sm:$0xff]  ;;  %v44_v14 = vld [vmem:[%s3538_s0 + $0xd8] sm:$0xff] }
  0x18   :  { %v74_v11 = vld [vmem:[%s3538_s0 + $0x1c8] sm:$0xff]  ;;  %v75_v13 = vld [vmem:[%s3538_s0 + $0x1d0] sm:$0xff]  ;;  %v76_v15 = vld [vmem:[%s3538_s0 + $0x1d8] sm:$0xff] }
  0x19   :  { %1518 = vmatpush3.bf16.msra.mxu0 %v1515_v19  ;;  %1540 = vmatpush3.bf16.msra.mxu1 %v1515_v19  ;;  %v45_v16 = vld [vmem:[%s3538_s0 + $0xe0] sm:$0xff]  ;;  %v46_v18 = vld [vmem:[%s3538_s0 + $0xe8] sm:$0xff]  ;;  %v47_v20 = vld [vmem:[%s3538_s0 + $0xf0] sm:$0xff] }
  0x1a   :  { %1520 = vmatprep.subr.bf16.mxu0 %v1519_v22  ;;  %1533 = vmatprep.subr.bf16.mxu1 %v1519_v22  ;;  %v77_v17 = vld [vmem:[%s3538_s0 + $0x1e0] sm:$0xff]  ;;  %v78_v19 = vld [vmem:[%s3538_s0 + $0x1e8] sm:$0xff]  ;;  %v79_v21 = vld [vmem:[%s3538_s0 + $0x1f0] sm:$0xff] }
  0x1b   :  { %v80_v23 = vld [vmem:[%s3538_s0 + $0x1f8] sm:$0xff] }
  0x1d   :  { %1522 = vmatpush3.bf16.msra.mxu0 %v1519_v22  ;;  %1541 = vmatpush3.bf16.msra.mxu1 %v1519_v22  ;;  %v48_v22 = vld [vmem:[%s3538_s0 + $0xf8] sm:$0xff] }
  0x1e   :  { %1524 = vmatprep.subr.bf16.mxu0 %v1523_v25  ;;  %1534 = vmatprep.subr.bf16.mxu1 %v1523_v25 }
  0x21   :  { %1526 = vmatpush3.bf16.msra.mxu0 %v1523_v25  ;;  %1542 = vmatpush3.bf16.msra.mxu1 %v1523_v25 }
  0x24   :  { %1400 = vmatmul.mubr.f32.vlgmr.msra.gmra.mrb[0].mxu0 %v18_v26  ;;  %1448 = vmatmul.mubr.f32.vlgmr.msra.gmra.mrb[0].mxu1 %v50_v27 }
  0x25   :  { %1402 = vmatprep.mubr.f32.mxu0 %v19_v28  ;;  %1450 = vmatprep.mubr.f32.mxu1 %v51_v29 }
  0x28   :  { %1403 = vmatmul.mubr.f32.gmra.mrb[2].mxu0 %v20_v30  ;;  %1451 = vmatmul.mubr.f32.gmra.mrb[2].mxu1 %v52_v31 }
  0x29   :  { %1405 = vmatprep.mubr.f32.mxu0 %v21_v32  ;;  %1453 = vmatprep.mubr.f32.mxu1 %v53_v33 }
  0x2c   :  { %1406 = vmatmul.mubr.f32.gmra.mrb[4].mxu0 %v22_v34  ;;  %1454 = vmatmul.mubr.f32.gmra.mrb[4].mxu1 %v54_v35 }
  0x2d   :  { %1408 = vmatprep.mubr.f32.mxu0 %v23_v36  ;;  %1456 = vmatprep.mubr.f32.mxu1 %v55_v37 }
  0x30   :  { %1409 = vmatmul.mubr.f32.gmra.mrb[6].mxu0 %v24_v38  ;;  %1457 = vmatmul.mubr.f32.gmra.mrb[6].mxu1 %v56_v39 }
  0x31   :  { %1411 = vmatprep.mubr.f32.mxu0 %v25_v40  ;;  %1459 = vmatprep.mubr.f32.mxu1 %v57_v41 }
  0x34   :  { %1412 = vmatmul.mubr.f32.gmra.mrb[8].mxu0 %v26_v42  ;;  %1460 = vmatmul.mubr.f32.gmra.mrb[8].mxu1 %v58_v43 }
  0x35   :  { %1414 = vmatprep.mubr.f32.mxu0 %v27_v44  ;;  %1462 = vmatprep.mubr.f32.mxu1 %v59_v45 }
  0x38   :  { %1415 = vmatmul.mubr.f32.gmra.mrb[10].mxu0 %v28_v46  ;;  %1463 = vmatmul.mubr.f32.gmra.mrb[10].mxu1 %v60_v47 }
  0x39   :  { %1417 = vmatprep.mubr.f32.mxu0 %v29_v48  ;;  %1465 = vmatprep.mubr.f32.mxu1 %v61_v49 }
  0x3c   :  { %1418 = vmatmul.mubr.f32.gmra.mrb[12].mxu0 %v30_v50  ;;  %1466 = vmatmul.mubr.f32.gmra.mrb[12].mxu1 %v62_v51 }
  0x3d   :  { %1420 = vmatprep.mubr.f32.mxu0 %v31_v52  ;;  %1468 = vmatprep.mubr.f32.mxu1 %v63_v53 }
  0x40   :  { %1421 = vmatmul.mubr.f32.gmra.mrb[14].mxu0 %v32_v54  ;;  %1469 = vmatmul.mubr.f32.gmra.mrb[14].mxu1 %v64_v55 }
  0x41   :  { %1423 = vmatprep.mubr.f32.mxu0 %v33_v56  ;;  %1471 = vmatprep.mubr.f32.mxu1 %v65_v57 }
  0x44   :  { %1424 = vmatmul.mubr.f32.gmra.mrb[16].mxu0 %v34_v58  ;;  %1472 = vmatmul.mubr.f32.gmra.mrb[16].mxu1 %v66_v59 }
  0x45   :  { %1426 = vmatprep.mubr.f32.mxu0 %v35_v60  ;;  %1474 = vmatprep.mubr.f32.mxu1 %v67_v61 }
  0x48   :  { %1427 = vmatmul.mubr.f32.gmra.mrb[18].mxu0 %v36_v62  ;;  %1475 = vmatmul.mubr.f32.gmra.mrb[18].mxu1 %v68_v63 }
  0x49   :  { %1429 = vmatprep.mubr.f32.mxu0 %v37_v0  ;;  %1477 = vmatprep.mubr.f32.mxu1 %v69_v1 }
  0x4c   :  { %1430 = vmatmul.mubr.f32.gmra.mrb[20].mxu0 %v38_v2  ;;  %1478 = vmatmul.mubr.f32.gmra.mrb[20].mxu1 %v70_v3 }
  0x4d   :  { %1432 = vmatprep.mubr.f32.mxu0 %v39_v4  ;;  %1480 = vmatprep.mubr.f32.mxu1 %v71_v5 }
  0x50   :  { %1433 = vmatmul.mubr.f32.gmra.mrb[22].mxu0 %v40_v6  ;;  %1481 = vmatmul.mubr.f32.gmra.mrb[22].mxu1 %v72_v7 }
  0x51   :  { %1435 = vmatprep.mubr.f32.mxu0 %v41_v8  ;;  %1483 = vmatprep.mubr.f32.mxu1 %v73_v9 }
  0x54   :  { %1436 = vmatmul.mubr.f32.gmra.mrb[24].mxu0 %v42_v10  ;;  %1484 = vmatmul.mubr.f32.gmra.mrb[24].mxu1 %v74_v11 }
  0x55   :  { %1438 = vmatprep.mubr.f32.mxu0 %v43_v12  ;;  %1486 = vmatprep.mubr.f32.mxu1 %v75_v13 }
  0x58   :  { %1439 = vmatmul.mubr.f32.gmra.mrb[26].mxu0 %v44_v14  ;;  %1487 = vmatmul.mubr.f32.gmra.mrb[26].mxu1 %v76_v15 }
  0x59   :  { %1441 = vmatprep.mubr.f32.mxu0 %v45_v16  ;;  %1489 = vmatprep.mubr.f32.mxu1 %v77_v17 }
  0x5c   :  { %1442 = vmatmul.mubr.f32.gmra.mrb[28].mxu0 %v46_v18  ;;  %1490 = vmatmul.mubr.f32.gmra.mrb[28].mxu1 %v78_v19 }
  0x5d   :  { %1444 = vmatprep.mubr.f32.mxu0 %v47_v20  ;;  %1492 = vmatprep.mubr.f32.mxu1 %v79_v21 }
  0x60   :  { %1445 = vmatmul.mubr.f32.gmra.mrb[30].mxu0 %v48_v22  ;;  %1493 = vmatmul.mubr.f32.gmra.mrb[30].mxu1 %v80_v23 }
  0xf7   :  { %v1810_v24 = vpop.f32.mrb[0].mxu0  ;;  %v1812_v25 = vpop.f32.mrb[0].mxu1 }
  0xf8   :  { %v484_v26 = vsel %vm482_vm0, %v1810_v24, 0.0  ;;  %v1816_v27 = vpop.f32.mrb[1].mxu0  ;;  %v1818_v28 = vpop.f32.mrb[1].mxu1 }
  0xf9   :  { %v483_v29 = vsel %vm482_vm0, %v1816_v27, 0.0 }
  0xfa   :  { %v485_v30 = vadd.f32 %v484_v26, %v483_v29 }
  0xfb   :  { %v1822_v31 = vpop.f32.mrb[2].mxu0  ;;  %v1824_v32 = vpop.f32.mrb[2].mxu1 }
  0xfc   :  { %v1826_v33 = vpop.f32.mrb[3].mxu0  ;;  %v1828_v34 = vpop.f32.mrb[3].mxu1  ;;  %v488_v37 = vsel %vm482_vm0, %v1822_v31, 0.0 }
  0xfd   :  { %v486_v35 = vsel %vm482_vm0, %v1826_v33, 0.0 }
  0xfe   :  { %v487_v36 = vadd.f32 %v486_v35, %v485_v30 }
  0xff   :  { %v1834_v38 = vpop.f32.mrb[4].mxu0  ;;  %v1836_v39 = vpop.f32.mrb[4].mxu1 }
 0x100   :  { %3612 = vst [vmem:[#allocation2_spill] sm:$0xff] %v1834_v38  ;;  %v1838_v40 = vpop.f32.mrb[5].mxu0  ;;  %v489_v41 = vadd.f32 %v488_v37, %v487_v36  ;;  %v1840_v42 = vpop.f32.mrb[5].mxu1  ;;  %v492_v45 = vsel %vm482_vm0, %v1834_v38, 0.0 }
 0x101   :  { %3613 = vst [vmem:[#allocation3_spill] sm:$0xff] %v1838_v40  ;;  %v490_v43 = vsel %vm482_vm0, %v1838_v40, 0.0 }
 0x102   :  { %v491_v44 = vadd.f32 %v490_v43, %v489_v41 }
 0x103   :  { %v1846_v46 = vpop.f32.mrb[6].mxu0  ;;  %v1848_v47 = vpop.f32.mrb[6].mxu1 }
 0x104   :  { %v1850_v48 = vpop.f32.mrb[7].mxu0  ;;  %v493_v49 = vadd.f32 %v492_v45, %v491_v44  ;;  %v1852_v50 = vpop.f32.mrb[7].mxu1  ;;  %v496_v53 = vsel %vm482_vm0, %v1846_v46, 0.0 }
 0x105   :  { %v494_v51 = vsel %vm482_vm0, %v1850_v48, 0.0 }
 0x106   :  { %v495_v52 = vadd.f32 %v494_v51, %v493_v49 }
 0x107   :  { %v1858_v54 = vpop.f32.mrb[8].mxu0  ;;  %v1860_v55 = vpop.f32.mrb[8].mxu1 }
 0x108   :  { %v1862_v56 = vpop.f32.mrb[9].mxu0  ;;  %v497_v57 = vadd.f32 %v496_v53, %v495_v52  ;;  %v1864_v58 = vpop.f32.mrb[9].mxu1  ;;  %v500_v61 = vsel %vm482_vm0, %v1858_v54, 0.0 }
 0x109   :  { %v498_v59 = vsel %vm482_vm0, %v1862_v56, 0.0 }
 0x10a   :  { %v499_v60 = vadd.f32 %v498_v59, %v497_v57 }
 0x10b   :  { %v1870_v62 = vpop.f32.mrb[10].mxu0  ;;  %v1872_v63 = vpop.f32.mrb[10].mxu1 }
 0x10c   :  { %v1874_v0 = vpop.f32.mrb[11].mxu0  ;;  %v501_v1 = vadd.f32 %v500_v61, %v499_v60  ;;  %v1876_v2 = vpop.f32.mrb[11].mxu1  ;;  %v504_v5 = vsel %vm482_vm0, %v1870_v62, 0.0 }
 0x10d   :  { %v502_v3 = vsel %vm482_vm0, %v1874_v0, 0.0 }
 0x10e   :  { %v503_v4 = vadd.f32 %v502_v3, %v501_v1 }
 0x10f   :  { %v1882_v6 = vpop.f32.mrb[12].mxu0  ;;  %v1884_v7 = vpop.f32.mrb[12].mxu1 }
 0x110   :  { %v1886_v8 = vpop.f32.mrb[13].mxu0  ;;  %v505_v9 = vadd.f32 %v504_v5, %v503_v4  ;;  %v1888_v10 = vpop.f32.mrb[13].mxu1  ;;  %v508_v13 = vsel %vm482_vm0, %v1882_v6, 0.0 }
 0x111   :  { %v506_v11 = vsel %vm482_vm0, %v1886_v8, 0.0 }
 0x112   :  { %v507_v12 = vadd.f32 %v506_v11, %v505_v9 }
 0x113   :  { %v1894_v14 = vpop.f32.mrb[14].mxu0  ;;  %v1896_v15 = vpop.f32.mrb[14].mxu1 }
 0x114   :  { %v1898_v16 = vpop.f32.mrb[15].mxu0  ;;  %v509_v17 = vadd.f32 %v508_v13, %v507_v12  ;;  %v1900_v18 = vpop.f32.mrb[15].mxu1  ;;  %v512_v21 = vsel %vm482_vm0, %v1894_v14, 0.0 }
 0x115   :  { %v510_v19 = vsel %vm482_vm0, %v1898_v16, 0.0 }
 0x116   :  { %v511_v20 = vadd.f32 %v510_v19, %v509_v17 }
 0x117   :  { %v1906_v22 = vpop.f32.mrb[16].mxu0  ;;  %v1908_v23 = vpop.f32.mrb[16].mxu1 }
 0x118   :  { %3614 = vst [vmem:[#allocation4_spill] sm:$0xff] %v1906_v22  ;;  %v1910_v26 = vpop.f32.mrb[17].mxu0  ;;  %v513_v29 = vadd.f32 %v512_v21, %v511_v20  ;;  %v1912_v30 = vpop.f32.mrb[17].mxu1  ;;  %v516_v37 = vsel %vm482_vm0, %v1906_v22, 0.0 }
 0x119   :  { %3615 = vst [vmem:[#allocation5_spill] sm:$0xff] %v1910_v26  ;;  %v514_v35 = vsel %vm482_vm0, %v1910_v26, 0.0 }
 0x11a   :  { %v515_v36 = vadd.f32 %v514_v35, %v513_v29 }
 0x11b   :  { %v1918_v41 = vpop.f32.mrb[18].mxu0  ;;  %v1920_v43 = vpop.f32.mrb[18].mxu1 }
 0x11c   :  { %3616 = vst [vmem:[#allocation6_spill] sm:$0xff] %v1918_v41  ;;  %v1922_v44 = vpop.f32.mrb[19].mxu0  ;;  %v517_v45 = vadd.f32 %v516_v37, %v515_v36  ;;  %v1924_v49 = vpop.f32.mrb[19].mxu1  ;;  %v520_v53 = vsel %vm482_vm0, %v1918_v41, 0.0 }
 0x11d   :  { %3617 = vst [vmem:[#allocation7_spill] sm:$0xff] %v1922_v44  ;;  %v518_v51 = vsel %vm482_vm0, %v1922_v44, 0.0 }
 0x11e   :  { %v519_v52 = vadd.f32 %v518_v51, %v517_v45 }
 0x11f   :  { %v1930_v57 = vpop.f32.mrb[20].mxu0  ;;  %v1932_v59 = vpop.f32.mrb[20].mxu1 }
 0x120   :  { %3618 = vst [vmem:[#allocation8_spill] sm:$0xff] %v1930_v57  ;;  %v1934_v60 = vpop.f32.mrb[21].mxu0  ;;  %v521_v61 = vadd.f32 %v520_v53, %v519_v52  ;;  %v1936_v1 = vpop.f32.mrb[21].mxu1  ;;  %v524_v5 = vsel %vm482_vm0, %v1930_v57, 0.0 }
 0x121   :  { %3619 = vst [vmem:[#allocation9_spill] sm:$0xff] %v1934_v60  ;;  %v522_v3 = vsel %vm482_vm0, %v1934_v60, 0.0  ;;  %v548_v60 = vsel %vm482_vm0, %v1812_v25, 0.0 }
 0x122   :  { %v523_v4 = vadd.f32 %v522_v3, %v521_v61 }
 0x123   :  { %v1942_v9 = vpop.f32.mrb[22].mxu0  ;;  %v1944_v11 = vpop.f32.mrb[22].mxu1 }
 0x124   :  { %3620 = vst [vmem:[#allocation10_spill] sm:$0xff] %v1942_v9  ;;  %3621 = vst [vmem:[#allocation11_spill] sm:$0xff] %v1944_v11  ;;  %v1946_v12 = vpop.f32.mrb[23].mxu0  ;;  %v525_v13 = vadd.f32 %v524_v5, %v523_v4  ;;  %v1948_v17 = vpop.f32.mrb[23].mxu1  ;;  %v528_v21 = vsel %vm482_vm0, %v1942_v9, 0.0 }
 0x125   :  { %3622 = vst [vmem:[#allocation12_spill] sm:$0xff] %v1946_v12  ;;  %3623 = vst [vmem:[#allocation13_spill] sm:$0xff] %v1948_v17  ;;  %v526_v19 = vsel %vm482_vm0, %v1946_v12, 0.0 }
 0x126   :  { %v527_v20 = vadd.f32 %v526_v19, %v525_v13 }
 0x127   :  { %v1954_v29 = vpop.f32.mrb[24].mxu0  ;;  %v1956_v35 = vpop.f32.mrb[24].mxu1 }
 0x128   :  { %3624 = vst [vmem:[#allocation14_spill] sm:$0xff] %v1954_v29  ;;  %3625 = vst [vmem:[#allocation15_spill] sm:$0xff] %v1956_v35  ;;  %v1958_v36 = vpop.f32.mrb[25].mxu0  ;;  %v529_v37 = vadd.f32 %v528_v21, %v527_v20  ;;  %v1960_v45 = vpop.f32.mrb[25].mxu1  ;;  %v532_v53 = vsel %vm482_vm0, %v1954_v29, 0.0 }
 0x129   :  { %3626 = vst [vmem:[#allocation16_spill] sm:$0xff] %v1958_v36  ;;  %3627 = vst [vmem:[#allocation17_spill] sm:$0xff] %v1960_v45  ;;  %v530_v51 = vsel %vm482_vm0, %v1958_v36, 0.0 }
 0x12a   :  { %v531_v52 = vadd.f32 %v530_v51, %v529_v37 }
 0x12b   :  { %v1966_v61 = vpop.f32.mrb[26].mxu0  ;;  %v1968_v3 = vpop.f32.mrb[26].mxu1 }
 0x12c   :  { %3628 = vst [vmem:[#allocation18_spill] sm:$0xff] %v1966_v61  ;;  %3629 = vst [vmem:[#allocation19_spill] sm:$0xff] %v1968_v3  ;;  %v1970_v4 = vpop.f32.mrb[27].mxu0  ;;  %v533_v5 = vadd.f32 %v532_v53, %v531_v52  ;;  %v1972_v13 = vpop.f32.mrb[27].mxu1  ;;  %v536_v21 = vsel %vm482_vm0, %v1966_v61, 0.0 }
 0x12d   :  { %3630 = vst [vmem:[#allocation20_spill] sm:$0xff] %v1970_v4  ;;  %3631 = vst [vmem:[#allocation21_spill] sm:$0xff] %v1972_v13  ;;  %v534_v19 = vsel %vm482_vm0, %v1970_v4, 0.0 }
 0x12e   :  { %v535_v20 = vadd.f32 %v534_v19, %v533_v5 }
 0x12f   :  { %v1978_v37 = vpop.f32.mrb[28].mxu0  ;;  %v1980_v51 = vpop.f32.mrb[28].mxu1 }
 0x130   :  { %3632 = vst [vmem:[#allocation22_spill] sm:$0xff] %v1978_v37  ;;  %3633 = vst [vmem:[#allocation23_spill] sm:$0xff] %v1980_v51  ;;  %v1982_v29 = vpop.f32.mrb[29].mxu0  ;;  %v537_v36 = vadd.f32 %v536_v21, %v535_v20  ;;  %v1984_v9 = vpop.f32.mrb[29].mxu1  ;;  %v540_v4 = vsel %vm482_vm0, %v1978_v37, 0.0 }
 0x131   :  { %3634 = vst [vmem:[#allocation24_spill] sm:$0xff] %v1982_v29  ;;  %3635 = vst [vmem:[#allocation25_spill] sm:$0xff] %v1984_v9  ;;  %v538_v52 = vsel %vm482_vm0, %v1982_v29, 0.0 }
 0x132   :  { %v539_v53 = vadd.f32 %v538_v52, %v537_v36  ;;  %v546_v36 = vsel %vm482_vm0, %v1818_v28, 0.0 }
 0x133   :  { %v1990_v5 = vpop.f32.mrb[30].mxu0  ;;  %v1992_v19 = vpop.f32.mrb[30].mxu1 }
 0x134   :  { %3636 = vst [vmem:[#allocation26_spill] sm:$0xff] %v1990_v5  ;;  %3637 = vst [vmem:[#allocation27_spill] sm:$0xff] %v1992_v19  ;;  %v1994_v61 = vpop.f32.mrb[31].mxu0  ;;  %v541_v12 = vadd.f32 %v540_v4, %v539_v53  ;;  %v1996_v57 = vpop.f32.mrb[31].mxu1  ;;  %v544_v29 = vsel %vm482_vm0, %v1990_v5, 0.0  ;;  %v550_v4 = vsel %vm482_vm0, %v1828_v34, 0.0 }
 0x135   :  { %3638 = vst [vmem:[#allocation28_spill] sm:$0xff] %v1994_v61  ;;  %3639 = vst [vmem:[#allocation29_spill] sm:$0xff] %v1996_v57  ;;  %v542_v20 = vsel %vm482_vm0, %v1994_v61, 0.0  ;;  %v552_v61 = vsel %vm482_vm0, %v1824_v32, 0.0 }
 0x136   :  { %v543_v21 = vadd.f32 %v542_v20, %v541_v12  ;;  %v554_v12 = vsel %vm482_vm0, %v1840_v42, 0.0 }
 0x138   :  { %v545_v52 = vadd.f32 %v544_v29, %v543_v21  ;;  %v556_v29 = vsel %vm482_vm0, %v1836_v39, 0.0  ;;  %v558_v21 = vsel %vm482_vm0, %v1852_v50, 0.0 }
 0x13a   :  { %v547_v37 = vadd.f32 %v546_v36, %v545_v52 }
 0x13c   :  { %v549_v53 = vadd.f32 %v548_v60, %v547_v37  ;;  %v560_v60 = vsel %vm482_vm0, %v1848_v47, 0.0  ;;  %v562_v37 = vsel %vm482_vm0, %v1864_v58, 0.0 }
 0x13e   :  { %v551_v41 = vadd.f32 %v550_v4, %v549_v53 }
 0x140   :  { %v553_v20 = vadd.f32 %v552_v61, %v551_v41  ;;  %v564_v41 = vsel %vm482_vm0, %v1860_v55, 0.0  ;;  %v566_v61 = vsel %vm482_vm0, %v1876_v2, 0.0 }
 0x142   :  { %v555_v5 = vadd.f32 %v554_v12, %v553_v20 }
 0x144   :  { %v557_v36 = vadd.f32 %v556_v29, %v555_v5  ;;  %v568_v5 = vsel %vm482_vm0, %v1872_v63, 0.0  ;;  %v570_v29 = vsel %vm482_vm0, %v1888_v10, 0.0 }
 0x146   :  { %v559_v52 = vadd.f32 %v558_v21, %v557_v36 }
 0x148   :  { %v561_v4 = vadd.f32 %v560_v60, %v559_v52  ;;  %v572_v52 = vsel %vm482_vm0, %v1884_v7, 0.0  ;;  %v574_v60 = vsel %vm482_vm0, %v1900_v18, 0.0 }
 0x14a   :  { %v563_v53 = vadd.f32 %v562_v37, %v561_v4 }
 0x14c   :  { %v565_v12 = vadd.f32 %v564_v41, %v563_v53  ;;  %v576_v53 = vsel %vm482_vm0, %v1896_v15, 0.0  ;;  %v578_v41 = vsel %vm482_vm0, %v1912_v30, 0.0 }
 0x14e   :  { %v567_v20 = vadd.f32 %v566_v61, %v565_v12 }
 0x150   :  { %v569_v21 = vadd.f32 %v568_v5, %v567_v20  ;;  %v580_v20 = vsel %vm482_vm0, %v1908_v23, 0.0  ;;  %v582_v5 = vsel %vm482_vm0, %v1924_v49, 0.0 }
 0x152   :  { %v571_v36 = vadd.f32 %v570_v29, %v569_v21 }
 0x154   :  { %v573_v37 = vadd.f32 %v572_v52, %v571_v36  ;;  %v584_v36 = vsel %vm482_vm0, %v1920_v43, 0.0  ;;  %v586_v52 = vsel %vm482_vm0, %v1936_v1, 0.0 }
 0x156   :  { %v575_v4 = vadd.f32 %v574_v60, %v573_v37 }
 0x158   :  { %v577_v61 = vadd.f32 %v576_v53, %v575_v4  ;;  %v588_v4 = vsel %vm482_vm0, %v1932_v59, 0.0  ;;  %v590_v53 = vsel %vm482_vm0, %v1948_v17, 0.0 }
 0x15a   :  { %v579_v12 = vadd.f32 %v578_v41, %v577_v61 }
 0x15c   :  { %v581_v29 = vadd.f32 %v580_v20, %v579_v12  ;;  %v592_v12 = vsel %vm482_vm0, %v1944_v11, 0.0  ;;  %v594_v20 = vsel %vm482_vm0, %v1960_v45, 0.0 }
 0x15e   :  { %v583_v21 = vadd.f32 %v582_v5, %v581_v29 }
 0x160   :  { %v585_v60 = vadd.f32 %v584_v36, %v583_v21  ;;  %v596_v21 = vsel %vm482_vm0, %v1956_v35, 0.0  ;;  %v598_v36 = vsel %vm482_vm0, %v1972_v13, 0.0 }
 0x162   :  { %v587_v37 = vadd.f32 %v586_v52, %v585_v60 }
 0x164   :  { %v589_v41 = vadd.f32 %v588_v4, %v587_v37  ;;  %v600_v37 = vsel %vm482_vm0, %v1968_v3, 0.0  ;;  %v602_v4 = vsel %vm482_vm0, %v1984_v9, 0.0 }
 0x166   :  { %v591_v61 = vadd.f32 %v590_v53, %v589_v41 }
 0x168   :  { %v593_v5 = vadd.f32 %v592_v12, %v591_v61  ;;  %v604_v61 = vsel %vm482_vm0, %v1980_v51, 0.0  ;;  %v606_v12 = vsel %vm482_vm0, %v1996_v57, 0.0 }
 0x16a   :  { %v595_v29 = vadd.f32 %v594_v20, %v593_v5 }
 0x16c   :  { %v597_v52 = vadd.f32 %v596_v21, %v595_v29  ;;  %v608_v29 = vsel %vm482_vm0, %v1992_v19, 0.0 }
 0x16e   :  { %v599_v60 = vadd.f32 %v598_v36, %v597_v52 }
 0x170   :  { %v601_v53 = vadd.f32 %v600_v37, %v599_v60 }
 0x172   :  { %v603_v41 = vadd.f32 %v602_v4, %v601_v53 }
 0x174   :  { %v605_v20 = vadd.f32 %v604_v61, %v603_v41 }
 0x176   :  { %v607_v5 = vadd.f32 %v606_v12, %v605_v20 }
 0x178   :  { %v609_v21 = vadd.f32 %v608_v29, %v607_v5 }
 0x17a   :  { %v610_v36 = vrot.slane %v609_v21, 4 }
 0x17c   :  { %v611_v52 = vadd.f32 %v610_v36, %v609_v21 }
 0x17e   :  { %v612_v3 = vrot.slane %v611_v52, 2 }
 0x180   :  { %v613_v13 = vadd.f32 %v612_v3, %v611_v52 }
 0x182   :  { %v614_v35 = vrot.slane %v613_v13, 1 }
 0x184   :  { %v615_v9 = vadd.f32 %v614_v35, %v613_v13 }
 0x186   :  { %v2066_v60 = vmul.f32 0.001953125, %v615_v9 }
 0x188   :  { %v618_v37 = vsub.f32 %v1816_v27, %v2066_v60  ;;  %v619_v4 = vsub.f32 %v1810_v24, %v2066_v60  ;;  %v620_v53 = vsub.f32 %v1826_v33, %v2066_v60  ;;  %v621_v41 = vsub.f32 %v1822_v31, %v2066_v60 }
 0x189   :  { %v622_v3 = vsub.f32 %v1838_v40, %v2066_v60  ;;  %v623_v9 = vsub.f32 %v1834_v38, %v2066_v60  ;;  %v624_v21 = vsub.f32 %v1850_v48, %v2066_v60 }
 0x18a   :  { %v682_v61 = vmul.f32 %v618_v37, %v618_v37  ;;  %v683_v12 = vmul.f32 %v619_v4, %v619_v4  ;;  %v684_v35 = vmul.f32 %v620_v53, %v620_v53  ;;  %v685_v13 = vmul.f32 %v621_v41, %v621_v41 }
 0x18b   :  { %v686_v36 = vmul.f32 %v622_v3, %v622_v3  ;;  %v625_v4 = vsub.f32 %v1846_v46, %v2066_v60  ;;  %v687_v53 = vmul.f32 %v623_v9, %v623_v9  ;;  %v626_v41 = vsub.f32 %v1862_v56, %v2066_v60 }
 0x18c   :  { %v746_v20 = vsel %vm482_vm0, %v682_v61, 0.0  ;;  %v747_v5 = vsel %vm482_vm0, %v683_v12, 0.0  ;;  %v749_v52 = vsel %vm482_vm0, %v684_v35, 0.0  ;;  %v751_v40 = vsel %vm482_vm0, %v685_v13, 0.0 }
 0x18d   :  { %v748_v29 = vadd.f32 %v747_v5, %v746_v20  ;;  %v688_v61 = vmul.f32 %v624_v21, %v624_v21  ;;  %v753_v12 = vsel %vm482_vm0, %v686_v36, 0.0  ;;  %v627_v3 = vsub.f32 %v1858_v54, %v2066_v60 }
 0x18e   :  { %v689_v5 = vmul.f32 %v625_v4, %v625_v4  ;;  %v755_v35 = vsel %vm482_vm0, %v687_v53, 0.0  ;;  %v628_v9 = vsub.f32 %v1874_v0, %v2066_v60  ;;  %v629_v21 = vsub.f32 %v1870_v62, %v2066_v60 }
 0x18f   :  { %v750_v37 = vadd.f32 %v749_v52, %v748_v29  ;;  %v690_v52 = vmul.f32 %v626_v41, %v626_v41  ;;  %v630_v4 = vsub.f32 %v1886_v8, %v2066_v60  ;;  %v631_v41 = vsub.f32 %v1882_v6, %v2066_v60 }
 0x191   :  { %v752_v38 = vadd.f32 %v751_v40, %v750_v37  ;;  %v757_v40 = vsel %vm482_vm0, %v688_v61, 0.0  ;;  %v691_v37 = vmul.f32 %v627_v3, %v627_v3  ;;  %v761_v53 = vsel %vm482_vm0, %v690_v52, 0.0 }
 0x192   :  { %v632_v3 = vsub.f32 %v1898_v16, %v2066_v60 }
 0x193   :  { %v754_v20 = vadd.f32 %v753_v12, %v752_v38  ;;  %v759_v38 = vsel %vm482_vm0, %v689_v5, 0.0  ;;  %v692_v12 = vmul.f32 %v628_v9, %v628_v9  ;;  %v763_v61 = vsel %vm482_vm0, %v691_v37, 0.0 }
 0x194   :  { %v633_v9 = vsub.f32 %v1894_v14, %v2066_v60 }
 0x195   :  { %v756_v29 = vadd.f32 %v755_v35, %v754_v20  ;;  %v693_v35 = vmul.f32 %v629_v21, %v629_v21  ;;  %v765_v5 = vsel %vm482_vm0, %v692_v12, 0.0  ;;  %v634_v21 = vsub.f32 %v1910_v26, %v2066_v60 }
 0x197   :  { %v758_v13 = vadd.f32 %v757_v40, %v756_v29  ;;  %v694_v40 = vmul.f32 %v630_v4, %v630_v4  ;;  %v767_v52 = vsel %vm482_vm0, %v693_v35, 0.0  ;;  %v635_v4 = vsub.f32 %v1906_v22, %v2066_v60 }
 0x199   :  { %v760_v36 = vadd.f32 %v759_v38, %v758_v13  ;;  %v695_v38 = vmul.f32 %v631_v41, %v631_v41  ;;  %v769_v37 = vsel %vm482_vm0, %v694_v40, 0.0  ;;  %v636_v41 = vsub.f32 %v1922_v44, %v2066_v60 }
 0x19a   :  { %v699_v26 = vmul.f32 %v635_v4, %v635_v4 }
 0x19b   :  { %v762_v20 = vadd.f32 %v761_v53, %v760_v36  ;;  %v696_v53 = vmul.f32 %v632_v3, %v632_v3  ;;  %v771_v12 = vsel %vm482_vm0, %v695_v38, 0.0  ;;  %v700_v22 = vmul.f32 %v636_v41, %v636_v41 }
 0x19d   :  { %v764_v29 = vadd.f32 %v763_v61, %v762_v20  ;;  %v697_v61 = vmul.f32 %v633_v9, %v633_v9  ;;  %v773_v35 = vsel %vm482_vm0, %v696_v53, 0.0  ;;  %v779_v53 = vsel %vm482_vm0, %v699_v26, 0.0 }
 0x19f   :  { %v766_v13 = vadd.f32 %v765_v5, %v764_v29  ;;  %v698_v5 = vmul.f32 %v634_v21, %v634_v21  ;;  %v775_v40 = vsel %vm482_vm0, %v697_v61, 0.0  ;;  %v781_v61 = vsel %vm482_vm0, %v700_v22, 0.0 }
 0x1a1   :  { %v768_v36 = vadd.f32 %v767_v52, %v766_v13  ;;  %v3640_v52 = vld [vmem:[#allocation6_spill] sm:$0xff]  ;;  %v777_v38 = vsel %vm482_vm0, %v698_v5, 0.0 }
 0x1a2   :  { %v637_v3 = vsub.f32 %v3640_v52, %v2066_v60 }
 0x1a3   :  { %v770_v20 = vadd.f32 %v769_v37, %v768_v36  ;;  %v3641_v37 = vld [vmem:[#allocation9_spill] sm:$0xff] }
 0x1a4   :  { %v638_v9 = vsub.f32 %v3641_v37, %v2066_v60  ;;  %v701_v44 = vmul.f32 %v637_v3, %v637_v3 }
 0x1a5   :  { %v772_v29 = vadd.f32 %v771_v12, %v770_v20  ;;  %v3642_v12 = vld [vmem:[#allocation8_spill] sm:$0xff] }
 0x1a6   :  { %v639_v21 = vsub.f32 %v3642_v12, %v2066_v60  ;;  %v702_v52 = vmul.f32 %v638_v9, %v638_v9  ;;  %v783_v5 = vsel %vm482_vm0, %v701_v44, 0.0 }
 0x1a7   :  { %v774_v13 = vadd.f32 %v773_v35, %v772_v29  ;;  %v3643_v35 = vld [vmem:[#allocation12_spill] sm:$0xff] }
 0x1a8   :  { %v640_v4 = vsub.f32 %v3643_v35, %v2066_v60  ;;  %v703_v37 = vmul.f32 %v639_v21, %v639_v21  ;;  %v785_v26 = vsel %vm482_vm0, %v702_v52, 0.0 }
 0x1a9   :  { %v776_v36 = vadd.f32 %v775_v40, %v774_v13  ;;  %v3644_v40 = vld [vmem:[#allocation10_spill] sm:$0xff] }
 0x1aa   :  { %v641_v41 = vsub.f32 %v3644_v40, %v2066_v60  ;;  %v704_v12 = vmul.f32 %v640_v4, %v640_v4  ;;  %v787_v22 = vsel %vm482_vm0, %v703_v37, 0.0 }
 0x1ab   :  { %v778_v20 = vadd.f32 %v777_v38, %v776_v36  ;;  %v3645_v38 = vld [vmem:[#allocation16_spill] sm:$0xff] }
 0x1ac   :  { %v642_v3 = vsub.f32 %v3645_v38, %v2066_v60  ;;  %v705_v35 = vmul.f32 %v641_v41, %v641_v41  ;;  %v789_v44 = vsel %vm482_vm0, %v704_v12, 0.0 }
 0x1ad   :  { %v780_v29 = vadd.f32 %v779_v53, %v778_v20  ;;  %v3646_v53 = vld [vmem:[#allocation14_spill] sm:$0xff] }
 0x1ae   :  { %v643_v9 = vsub.f32 %v3646_v53, %v2066_v60  ;;  %v706_v40 = vmul.f32 %v642_v3, %v642_v3  ;;  %v791_v52 = vsel %vm482_vm0, %v705_v35, 0.0 }
 0x1af   :  { %v782_v13 = vadd.f32 %v781_v61, %v780_v29  ;;  %v3647_v61 = vld [vmem:[#allocation20_spill] sm:$0xff] }
 0x1b0   :  { %v644_v21 = vsub.f32 %v3647_v61, %v2066_v60  ;;  %v707_v38 = vmul.f32 %v643_v9, %v643_v9  ;;  %v793_v37 = vsel %vm482_vm0, %v706_v40, 0.0 }
 0x1b1   :  { %v784_v36 = vadd.f32 %v783_v5, %v782_v13  ;;  %v3648_v5 = vld [vmem:[#allocation18_spill] sm:$0xff] }
 0x1b2   :  { %v645_v4 = vsub.f32 %v3648_v5, %v2066_v60  ;;  %v708_v53 = vmul.f32 %v644_v21, %v644_v21  ;;  %v795_v12 = vsel %vm482_vm0, %v707_v38, 0.0 }
 0x1b3   :  { %v786_v20 = vadd.f32 %v785_v26, %v784_v36  ;;  %v3649_v26 = vld [vmem:[#allocation24_spill] sm:$0xff] }
 0x1b4   :  { %v646_v41 = vsub.f32 %v3649_v26, %v2066_v60  ;;  %v709_v61 = vmul.f32 %v645_v4, %v645_v4  ;;  %v797_v35 = vsel %vm482_vm0, %v708_v53, 0.0  ;;  %v650_v4 = vsub.f32 %v1818_v28, %v2066_v60 }
 0x1b5   :  { %v788_v29 = vadd.f32 %v787_v22, %v786_v20  ;;  %v3650_v22 = vld [vmem:[#allocation22_spill] sm:$0xff] }
 0x1b6   :  { %v647_v3 = vsub.f32 %v3650_v22, %v2066_v60  ;;  %v710_v5 = vmul.f32 %v646_v41, %v646_v41  ;;  %v799_v40 = vsel %vm482_vm0, %v709_v61, 0.0  ;;  %v651_v41 = vsub.f32 %v1812_v25, %v2066_v60 }
 0x1b7   :  { %v790_v13 = vadd.f32 %v789_v44, %v788_v29  ;;  %v3651_v44 = vld [vmem:[#allocation28_spill] sm:$0xff] }
 0x1b8   :  { %v648_v9 = vsub.f32 %v3651_v44, %v2066_v60  ;;  %v711_v26 = vmul.f32 %v647_v3, %v647_v3  ;;  %v801_v38 = vsel %vm482_vm0, %v710_v5, 0.0  ;;  %v652_v3 = vsub.f32 %v1828_v34, %v2066_v60 }
 0x1b9   :  { %v792_v36 = vadd.f32 %v791_v52, %v790_v13  ;;  %v3652_v52 = vld [vmem:[#allocation26_spill] sm:$0xff] }
 0x1ba   :  { %v649_v21 = vsub.f32 %v3652_v52, %v2066_v60  ;;  %v803_v53 = vsel %vm482_vm0, %v711_v26, 0.0 }
 0x1bb   :  { %v794_v20 = vadd.f32 %v793_v37, %v792_v36  ;;  %v712_v37 = vmul.f32 %v648_v9, %v648_v9  ;;  %v653_v9 = vsub.f32 %v1824_v32, %v2066_v60 }
 0x1bd   :  { %v796_v29 = vadd.f32 %v795_v12, %v794_v20  ;;  %v713_v12 = vmul.f32 %v649_v21, %v649_v21  ;;  %v805_v61 = vsel %vm482_vm0, %v712_v37, 0.0  ;;  %v654_v21 = vsub.f32 %v1840_v42, %v2066_v60 }
 0x1bf   :  { %v798_v13 = vadd.f32 %v797_v35, %v796_v29  ;;  %v714_v35 = vmul.f32 %v650_v4, %v650_v4  ;;  %v807_v5 = vsel %vm482_vm0, %v713_v12, 0.0  ;;  %v655_v4 = vsub.f32 %v1836_v39, %v2066_v60 }
 0x1c1   :  { %v800_v36 = vadd.f32 %v799_v40, %v798_v13  ;;  %v715_v40 = vmul.f32 %v651_v41, %v651_v41  ;;  %v809_v26 = vsel %vm482_vm0, %v714_v35, 0.0  ;;  %v656_v41 = vsub.f32 %v1852_v50, %v2066_v60 }
 0x1c3   :  { %v802_v20 = vadd.f32 %v801_v38, %v800_v36  ;;  %v716_v38 = vmul.f32 %v652_v3, %v652_v3  ;;  %v811_v37 = vsel %vm482_vm0, %v715_v40, 0.0  ;;  %v657_v3 = vsub.f32 %v1848_v47, %v2066_v60 }
 0x1c5   :  { %v804_v29 = vadd.f32 %v803_v53, %v802_v20  ;;  %v717_v53 = vmul.f32 %v653_v9, %v653_v9  ;;  %v813_v12 = vsel %vm482_vm0, %v716_v38, 0.0  ;;  %v658_v9 = vsub.f32 %v1864_v58, %v2066_v60 }
 0x1c7   :  { %v806_v13 = vadd.f32 %v805_v61, %v804_v29  ;;  %v718_v61 = vmul.f32 %v654_v21, %v654_v21  ;;  %v815_v35 = vsel %vm482_vm0, %v717_v53, 0.0  ;;  %v659_v21 = vsub.f32 %v1860_v55, %v2066_v60 }
 0x1c9   :  { %v808_v36 = vadd.f32 %v807_v5, %v806_v13  ;;  %v719_v5 = vmul.f32 %v655_v4, %v655_v4  ;;  %v817_v40 = vsel %vm482_vm0, %v718_v61, 0.0  ;;  %v660_v4 = vsub.f32 %v1876_v2, %v2066_v60 }
 0x1cb   :  { %v810_v20 = vadd.f32 %v809_v26, %v808_v36  ;;  %v720_v26 = vmul.f32 %v656_v41, %v656_v41  ;;  %v819_v38 = vsel %vm482_vm0, %v719_v5, 0.0  ;;  %v661_v41 = vsub.f32 %v1872_v63, %v2066_v60 }
 0x1cd   :  { %v812_v29 = vadd.f32 %v811_v37, %v810_v20  ;;  %v721_v37 = vmul.f32 %v657_v3, %v657_v3  ;;  %v821_v53 = vsel %vm482_vm0, %v720_v26, 0.0  ;;  %v662_v3 = vsub.f32 %v1888_v10, %v2066_v60 }
 0x1cf   :  { %v814_v13 = vadd.f32 %v813_v12, %v812_v29  ;;  %v722_v12 = vmul.f32 %v658_v9, %v658_v9  ;;  %v823_v61 = vsel %vm482_vm0, %v721_v37, 0.0  ;;  %v663_v9 = vsub.f32 %v1884_v7, %v2066_v60 }
 0x1d1   :  { %v816_v36 = vadd.f32 %v815_v35, %v814_v13  ;;  %v723_v35 = vmul.f32 %v659_v21, %v659_v21  ;;  %v825_v5 = vsel %vm482_vm0, %v722_v12, 0.0  ;;  %v664_v21 = vsub.f32 %v1900_v18, %v2066_v60 }
 0x1d3   :  { %v818_v20 = vadd.f32 %v817_v40, %v816_v36  ;;  %v724_v40 = vmul.f32 %v660_v4, %v660_v4  ;;  %v827_v26 = vsel %vm482_vm0, %v723_v35, 0.0  ;;  %v665_v4 = vsub.f32 %v1896_v15, %v2066_v60 }
 0x1d5   :  { %v820_v29 = vadd.f32 %v819_v38, %v818_v20  ;;  %v725_v38 = vmul.f32 %v661_v41, %v661_v41  ;;  %v829_v37 = vsel %vm482_vm0, %v724_v40, 0.0  ;;  %v666_v41 = vsub.f32 %v1912_v30, %v2066_v60 }
 0x1d7   :  { %v822_v13 = vadd.f32 %v821_v53, %v820_v29  ;;  %v726_v53 = vmul.f32 %v662_v3, %v662_v3  ;;  %v831_v12 = vsel %vm482_vm0, %v725_v38, 0.0  ;;  %v667_v3 = vsub.f32 %v1908_v23, %v2066_v60 }
 0x1d9   :  { %v824_v36 = vadd.f32 %v823_v61, %v822_v13  ;;  %v727_v61 = vmul.f32 %v663_v9, %v663_v9  ;;  %v833_v35 = vsel %vm482_vm0, %v726_v53, 0.0  ;;  %v668_v9 = vsub.f32 %v1924_v49, %v2066_v60 }
 0x1db   :  { %v826_v20 = vadd.f32 %v825_v5, %v824_v36  ;;  %v728_v5 = vmul.f32 %v664_v21, %v664_v21  ;;  %v835_v40 = vsel %vm482_vm0, %v727_v61, 0.0  ;;  %v669_v21 = vsub.f32 %v1920_v43, %v2066_v60 }
 0x1dd   :  { %v828_v29 = vadd.f32 %v827_v26, %v826_v20  ;;  %v729_v26 = vmul.f32 %v665_v4, %v665_v4  ;;  %v837_v38 = vsel %vm482_vm0, %v728_v5, 0.0  ;;  %v670_v4 = vsub.f32 %v1936_v1, %v2066_v60 }
 0x1df   :  { %v830_v13 = vadd.f32 %v829_v37, %v828_v29  ;;  %v730_v37 = vmul.f32 %v666_v41, %v666_v41  ;;  %v839_v53 = vsel %vm482_vm0, %v729_v26, 0.0  ;;  %v671_v41 = vsub.f32 %v1932_v59, %v2066_v60 }
 0x1e1   :  { %v832_v36 = vadd.f32 %v831_v12, %v830_v13  ;;  %v731_v12 = vmul.f32 %v667_v3, %v667_v3  ;;  %v841_v61 = vsel %vm482_vm0, %v730_v37, 0.0  ;;  %v672_v3 = vsub.f32 %v1948_v17, %v2066_v60 }
 0x1e3   :  { %v834_v20 = vadd.f32 %v833_v35, %v832_v36  ;;  %v732_v35 = vmul.f32 %v668_v9, %v668_v9  ;;  %v843_v5 = vsel %vm482_vm0, %v731_v12, 0.0  ;;  %v673_v9 = vsub.f32 %v1944_v11, %v2066_v60 }
 0x1e5   :  { %v836_v29 = vadd.f32 %v835_v40, %v834_v20  ;;  %v733_v40 = vmul.f32 %v669_v21, %v669_v21  ;;  %v845_v26 = vsel %vm482_vm0, %v732_v35, 0.0  ;;  %v674_v21 = vsub.f32 %v1960_v45, %v2066_v60 }
 0x1e6   :  { %v737_v17 = vmul.f32 %v673_v9, %v673_v9 }
 0x1e7   :  { %v838_v13 = vadd.f32 %v837_v38, %v836_v29  ;;  %v734_v38 = vmul.f32 %v670_v4, %v670_v4  ;;  %v847_v37 = vsel %vm482_vm0, %v733_v40, 0.0  ;;  %v738_v11 = vmul.f32 %v674_v21, %v674_v21 }
 0x1e8   :  { %v679_v21 = vsub.f32 %v1980_v51, %v2066_v60 }
 0x1e9   :  { %v840_v36 = vadd.f32 %v839_v53, %v838_v13  ;;  %v735_v53 = vmul.f32 %v671_v41, %v671_v41  ;;  %v849_v12 = vsel %vm482_vm0, %v734_v38, 0.0  ;;  %v855_v38 = vsel %vm482_vm0, %v737_v17, 0.0 }
 0x1eb   :  { %v842_v20 = vadd.f32 %v841_v61, %v840_v36  ;;  %v736_v61 = vmul.f32 %v672_v3, %v672_v3  ;;  %v851_v35 = vsel %vm482_vm0, %v735_v53, 0.0  ;;  %v857_v53 = vsel %vm482_vm0, %v738_v11, 0.0 }
 0x1ed   :  { %v844_v29 = vadd.f32 %v843_v5, %v842_v20  ;;  %v3653_v5 = vld [vmem:[#allocation15_spill] sm:$0xff]  ;;  %v853_v40 = vsel %vm482_vm0, %v736_v61, 0.0 }
 0x1ee   :  { %v675_v4 = vsub.f32 %v3653_v5, %v2066_v60 }
 0x1ef   :  { %v846_v13 = vadd.f32 %v845_v26, %v844_v29  ;;  %v3654_v26 = vld [vmem:[#allocation21_spill] sm:$0xff] }
 0x1f0   :  { %v676_v41 = vsub.f32 %v3654_v26, %v2066_v60  ;;  %v739_v45 = vmul.f32 %v675_v4, %v675_v4  ;;  %v680_v4 = vsub.f32 %v1996_v57, %v2066_v60 }
 0x1f1   :  { %v848_v36 = vadd.f32 %v847_v37, %v846_v13  ;;  %v3655_v37 = vld [vmem:[#allocation19_spill] sm:$0xff] }
 0x1f2   :  { %v677_v3 = vsub.f32 %v3655_v37, %v2066_v60  ;;  %v740_v5 = vmul.f32 %v676_v41, %v676_v41  ;;  %v859_v61 = vsel %vm482_vm0, %v739_v45, 0.0  ;;  %v681_v41 = vsub.f32 %v1992_v19, %v2066_v60 }
 0x1f3   :  { %v850_v20 = vadd.f32 %v849_v12, %v848_v36  ;;  %v3656_v12 = vld [vmem:[#allocation25_spill] sm:$0xff] }
 0x1f4   :  { %v678_v9 = vsub.f32 %v3656_v12, %v2066_v60  ;;  %v861_v17 = vsel %vm482_vm0, %v740_v5, 0.0  ;;  %v745_v45 = vmul.f32 %v681_v41, %v681_v41 }
 0x1f5   :  { %v852_v29 = vadd.f32 %v851_v35, %v850_v20  ;;  %v741_v35 = vmul.f32 %v677_v3, %v677_v3 }
 0x1f6   :  { %v871_v5 = vsel %vm482_vm0, %v745_v45, 0.0 }
 0x1f7   :  { %v854_v13 = vadd.f32 %v853_v40, %v852_v29  ;;  %v742_v40 = vmul.f32 %v678_v9, %v678_v9  ;;  %v863_v11 = vsel %vm482_vm0, %v741_v35, 0.0 }
 0x1f9   :  { %v856_v36 = vadd.f32 %v855_v38, %v854_v13  ;;  %v743_v38 = vmul.f32 %v679_v21, %v679_v21  ;;  %v865_v3 = vsel %vm482_vm0, %v742_v40, 0.0  ;;  %v888_v40 = vlaneseq }
 0x1fb   :  { %v858_v20 = vadd.f32 %v857_v53, %v856_v36  ;;  %v744_v53 = vmul.f32 %v680_v4, %v680_v4  ;;  %v2260_v41 = vshrl.u32 %v888_v40, 7  ;;  %v3663_v40 = vld [vmem:[#allocation9_spill] sm:$0xff] }
 0x1fd   :  { %v860_v29 = vadd.f32 %v859_v61, %v858_v20  ;;  %v867_v20 = vsel %vm482_vm0, %v743_v38, 0.0  ;;  %v869_v9 = vsel %vm482_vm0, %v744_v53, 0.0  ;;  %v3587_v38 = vsub.s32 0, %v2260_v41 }
 0x1ff   :  { %v862_v13 = vadd.f32 %v861_v17, %v860_v29 }
 0x201   :  { %v864_v36 = vadd.f32 %v863_v11, %v862_v13 }
 0x203   :  { %v866_v51 = vadd.f32 %v865_v3, %v864_v36  ;;  %v3670_v3 = vld [vmem:[#allocation20_spill] sm:$0xff] }
 0x205   :  { %v868_v61 = vadd.f32 %v867_v20, %v866_v51  ;;  %v880_v51 = vld [vmem:[%s3539_s2] sm:$0x1] }
 0x207   :  { %v870_v57 = vadd.f32 %v869_v9, %v868_v61  ;;  %v3657_v9 = vld [vmem:[#allocation3_spill] sm:$0xff] }
 0x209   :  { %v872_v29 = vadd.f32 %v871_v5, %v870_v57 }
 0x20b   :  { %v873_v17 = vrot.slane %v872_v29, 4 }
 0x20d   :  { %v874_v19 = vadd.f32 %v873_v17, %v872_v29  ;;  %v3658_v29 = vld [vmem:[#allocation2_spill] sm:$0xff] }
 0x20f   :  { %v875_v21 = vrot.slane %v874_v19, 2 }
 0x211   :  { %v876_v12 = vadd.f32 %v875_v21, %v874_v19  ;;  %v2269_v19 = vld [vmem:[%s3540_s3] sm:$0x1] }
 0x213   :  { %v877_v35 = vrot.slane %v876_v12, 1 }
 0x215   :  { %v878_v13 = vadd.f32 %v877_v35, %v876_v12  ;;  %v3659_v35 = vld [vmem:[#allocation5_spill] sm:$0xff] }
 0x217   :  { %v879_v4 = vmul.f32 0.001953125, %v878_v13  ;;  %v3660_v13 = vld [vmem:[#allocation4_spill] sm:$0xff] }
 0x219   :  { %v881_v11 = vadd.f32 1e-05, %v879_v4  ;;  %v3661_v4 = vld [vmem:[#allocation7_spill] sm:$0xff] }
 0x21b   :  { %1543 = vrsqrt.f32 %v881_v11  ;;  %v3662_v11 = vld [vmem:[#allocation6_spill] sm:$0xff] }
 0x225   :  { %v1544_v36 = vpop.eup %1543 }
 0x226   :  { %v883_v57 = vmul.f32 %v1544_v36, %v880_v51  ;;  %v3664_v51 = vld [vmem:[#allocation8_spill] sm:$0xff] }
 0x228   :  { %v2272_v12 = vmul.f32 %v883_v57, %v2066_v60  ;;  %v2276_v53 = vrot.slane %v883_v57, %v3587_v38  ;;  %v3665_v57 = vld [vmem:[#allocation12_spill] sm:$0xff]  ;;  %v3671_v38 = vld [vmem:[#allocation18_spill] sm:$0xff] }
 0x22a   :  { %v2282_v45 = vmul.f32 %v2276_v53, %v1816_v27  ;;  %v2286_v20 = vmul.f32 %v1810_v24, %v2276_v53  ;;  %v2290_v61 = vmul.f32 %v2276_v53, %v1826_v33  ;;  %v2294_v60 = vmul.f32 %v1822_v31, %v2276_v53 }
 0x22b   :  { %v2298_v5 = vmul.f32 %v2276_v53, %v3657_v9  ;;  %v2302_v27 = vmul.f32 %v3658_v29, %v2276_v53  ;;  %v2306_v24 = vmul.f32 %v2276_v53, %v1850_v48  ;;  %v2310_v33 = vmul.f32 %v1846_v46, %v2276_v53  ;;  %v3667_v29 = vld [vmem:[#allocation10_spill] sm:$0xff] }
 0x22c   :  { %v2314_v31 = vmul.f32 %v2276_v53, %v1862_v56  ;;  %v2318_v17 = vmul.f32 %v1858_v54, %v2276_v53  ;;  %v2322_v21 = vmul.f32 %v2276_v53, %v1874_v0  ;;  %v2326_v48 = vmul.f32 %v1870_v62, %v2276_v53 }
 0x22d   :  { %v2330_v46 = vmul.f32 %v2276_v53, %v1886_v8  ;;  %v2334_v56 = vmul.f32 %v1882_v6, %v2276_v53  ;;  %v2338_v54 = vmul.f32 %v2276_v53, %v1898_v16  ;;  %v2342_v0 = vmul.f32 %v1894_v14, %v2276_v53 }
 0x22e   :  { %v2346_v62 = vmul.f32 %v2276_v53, %v3659_v35  ;;  %v2350_v8 = vmul.f32 %v3660_v13, %v2276_v53  ;;  %v2354_v6 = vmul.f32 %v2276_v53, %v3661_v4  ;;  %v2358_v16 = vmul.f32 %v3662_v11, %v2276_v53  ;;  %v3668_v13 = vld [vmem:[#allocation16_spill] sm:$0xff]  ;;  %v3669_v11 = vld [vmem:[#allocation14_spill] sm:$0xff] }
 0x22f   :  { %v2362_v14 = vmul.f32 %v2276_v53, %v3663_v40  ;;  %v2366_v36 = vmul.f32 %v3664_v51, %v2276_v53  ;;  %v2370_v9 = vmul.f32 %v2276_v53, %v3665_v57  ;;  %v2374_v35 = vmul.f32 %v3667_v29, %v2276_v53 }
 0x230   :  { %v2378_v4 = vmul.f32 %v2276_v53, %v3668_v13  ;;  %v2382_v40 = vmul.f32 %v3669_v11, %v2276_v53  ;;  %v2386_v51 = vmul.f32 %v2276_v53, %v3670_v3  ;;  %v2390_v57 = vmul.f32 %v3671_v38, %v2276_v53 }
 0x231   :  { %3666 = vst [vmem:[#allocation22_spill] sm:$0xff] %v2370_v9  ;;  %v3672_v9 = vld [vmem:[#allocation24_spill] sm:$0xff]  ;;  %v2398_v13 = vmul.f32 %v3650_v22, %v2276_v53  ;;  %v2402_v11 = vmul.f32 %v2276_v53, %v3651_v44  ;;  %v2406_v3 = vmul.f32 %v3652_v52, %v2276_v53  ;;  %v2410_v38 = vmul.f32 %v2276_v53, %v1818_v28 }
 0x232   :  { %v2394_v29 = vmul.f32 %v2276_v53, %v3672_v9  ;;  %v2414_v9 = vmul.f32 %v1812_v25, %v2276_v53  ;;  %v2418_v22 = vmul.f32 %v2276_v53, %v1828_v34  ;;  %v2422_v44 = vmul.f32 %v1824_v32, %v2276_v53 }
 0x233   :  { %v2426_v52 = vmul.f32 %v2276_v53, %v1840_v42  ;;  %v2430_v28 = vmul.f32 %v1836_v39, %v2276_v53  ;;  %v2434_v25 = vmul.f32 %v2276_v53, %v1852_v50  ;;  %v2438_v34 = vmul.f32 %v1848_v47, %v2276_v53 }
 0x234   :  { %v2442_v32 = vmul.f32 %v2276_v53, %v1864_v58  ;;  %v2446_v42 = vmul.f32 %v1860_v55, %v2276_v53  ;;  %v2450_v39 = vmul.f32 %v2276_v53, %v1876_v2  ;;  %v2454_v50 = vmul.f32 %v1872_v63, %v2276_v53 }
 0x235   :  { %v2458_v47 = vmul.f32 %v2276_v53, %v1888_v10  ;;  %v2462_v58 = vmul.f32 %v1884_v7, %v2276_v53  ;;  %v2466_v55 = vmul.f32 %v2276_v53, %v1900_v18  ;;  %v2470_v2 = vmul.f32 %v1896_v15, %v2276_v53 }
 0x236   :  { %v2474_v63 = vmul.f32 %v2276_v53, %v1912_v30  ;;  %v2478_v10 = vmul.f32 %v1908_v23, %v2276_v53  ;;  %v2482_v7 = vmul.f32 %v2276_v53, %v1924_v49  ;;  %v2486_v18 = vmul.f32 %v1920_v43, %v2276_v53 }
 0x237   :  { %v2490_v15 = vmul.f32 %v2276_v53, %v1936_v1  ;;  %v2494_v30 = vmul.f32 %v1932_v59, %v2276_v53  ;;  %v2514_v59 = vmul.f32 %v2276_v53, %v3654_v26 }
 0x238   :  { %3673 = vst [vmem:[#allocation28_spill] sm:$0xff] %v2474_v63  ;;  %3674 = vst [vmem:[#allocation26_spill] sm:$0xff] %v2478_v10  ;;  %v3677_v63 = vld [vmem:[#allocation13_spill] sm:$0xff]  ;;  %v3679_v10 = vld [vmem:[#allocation11_spill] sm:$0xff] }
 0x239   :  { %3675 = vst [vmem:[#allocation21_spill] sm:$0xff] %v2482_v7  ;;  %3676 = vst [vmem:[#allocation19_spill] sm:$0xff] %v2486_v18  ;;  %v2498_v23 = vmul.f32 %v2276_v53, %v3677_v63  ;;  %v2502_v49 = vmul.f32 %v3679_v10, %v2276_v53  ;;  %v3681_v7 = vld [vmem:[#allocation17_spill] sm:$0xff]  ;;  %v3683_v18 = vld [vmem:[#allocation15_spill] sm:$0xff]  ;;  %v2518_v63 = vmul.f32 %v3655_v37, %v2276_v53 }
 0x23a   :  { %v2506_v43 = vmul.f32 %v2276_v53, %v3681_v7  ;;  %v2510_v1 = vmul.f32 %v3683_v18, %v2276_v53  ;;  %3685 = vst [vmem:[#allocation7_spill] sm:$0xff] %v2514_v59  ;;  %v3691_v59 = vsub.s32 0, %v2260_v41  ;;  %v3692_v37 = vsub.f32 %v2269_v19, %v2272_v12 }
 0x23b   :  { %3678 = vst [vmem:[#allocation3_spill] sm:$0xff] %v2498_v23  ;;  %3680 = vst [vmem:[#allocation2_spill] sm:$0xff] %v2502_v49  ;;  %v3687_v23 = vld [vmem:[#allocation25_spill] sm:$0xff]  ;;  %v3688_v49 = vld [vmem:[#allocation23_spill] sm:$0xff] }
 0x23c   :  { %3682 = vst [vmem:[#allocation5_spill] sm:$0xff] %v2506_v43  ;;  %3684 = vst [vmem:[#allocation4_spill] sm:$0xff] %v2510_v1  ;;  %v2522_v10 = vmul.f32 %v2276_v53, %v3687_v23  ;;  %v2526_v7 = vmul.f32 %v3688_v49, %v2276_v53  ;;  %v3689_v43 = vld [vmem:[#allocation29_spill] sm:$0xff]  ;;  %v3690_v1 = vld [vmem:[#allocation27_spill] sm:$0xff] }
 0x23d   :  { %3686 = vst [vmem:[#allocation6_spill] sm:$0xff] %v2518_v63  ;;  %v2530_v18 = vmul.f32 %v2276_v53, %v3689_v43  ;;  %v2534_v26 = vmul.f32 %v3690_v1, %v2276_v53  ;;  %v2541_v63 = vrot.slane %v3692_v37, %v3691_v59 }
 0x23f   :  { %v2545_v23 = vadd.f32 %v2541_v63, %v2282_v45  ;;  %v2549_v49 = vadd.f32 %v2541_v63, %v2286_v20  ;;  %v2553_v43 = vadd.f32 %v2541_v63, %v2290_v61  ;;  %v2557_v41 = vadd.f32 %v2541_v63, %v2294_v60  ;;  %v3695_v1 = vld [vmem:[#allocation28_spill] sm:$0xff]  ;;  %v3697_v59 = vld [vmem:[#allocation26_spill] sm:$0xff] }
 0x240   :  { %v2561_v19 = vadd.f32 %v2541_v63, %v2298_v5  ;;  %v2565_v12 = vadd.f32 %v2541_v63, %v2302_v27  ;;  %v2569_v53 = vadd.f32 %v2541_v63, %v2306_v24  ;;  %v2573_v45 = vadd.f32 %v2541_v63, %v2310_v33  ;;  %v3699_v37 = vld [vmem:[#allocation21_spill] sm:$0xff] }
 0x241   :  { %v2577_v20 = vadd.f32 %v2541_v63, %v2314_v31  ;;  %v2581_v61 = vadd.f32 %v2541_v63, %v2318_v17  ;;  %v2585_v60 = vadd.f32 %v2541_v63, %v2322_v21  ;;  %v2589_v5 = vadd.f32 %v2541_v63, %v2326_v48 }
 0x242   :  { %v2593_v27 = vadd.f32 %v2541_v63, %v2330_v46  ;;  %v2597_v24 = vadd.f32 %v2541_v63, %v2334_v56  ;;  %v2601_v33 = vadd.f32 %v2541_v63, %v2338_v54  ;;  %v2605_v31 = vadd.f32 %v2541_v63, %v2342_v0  ;;  %v3693_v0 = vld [vmem:[#allocation22_spill] sm:$0xff] }
 0x243   :  { %v2609_v17 = vadd.f32 %v2541_v63, %v2346_v62  ;;  %v2613_v21 = vadd.f32 %v2541_v63, %v2350_v8  ;;  %v2617_v48 = vadd.f32 %v2541_v63, %v2354_v6  ;;  %v2621_v46 = vadd.f32 %v2541_v63, %v2358_v16 }
 0x244   :  { %v2625_v56 = vadd.f32 %v2541_v63, %v2362_v14  ;;  %v2629_v54 = vadd.f32 %v2541_v63, %v2366_v36  ;;  %v2633_v62 = vadd.f32 %v2541_v63, %v3693_v0  ;;  %v2637_v8 = vadd.f32 %v2541_v63, %v2374_v35  ;;  %v3701_v0 = vld [vmem:[#allocation19_spill] sm:$0xff] }
 0x245   :  { %v2641_v6 = vadd.f32 %v2541_v63, %v2378_v4  ;;  %v2645_v16 = vadd.f32 %v2541_v63, %v2382_v40  ;;  %v2649_v14 = vadd.f32 %v2541_v63, %v2386_v51  ;;  %v2653_v36 = vadd.f32 %v2541_v63, %v2390_v57 }
 0x246   :  { %v2657_v35 = vadd.f32 %v2541_v63, %v2394_v29  ;;  %v2661_v4 = vadd.f32 %v2541_v63, %v2398_v13  ;;  %v2665_v40 = vadd.f32 %v2541_v63, %v2402_v11  ;;  %v2669_v51 = vadd.f32 %v2541_v63, %v2406_v3 }
 0x247   :  { %v2673_v57 = vadd.f32 %v2541_v63, %v2410_v38  ;;  %v2677_v29 = vadd.f32 %v2541_v63, %v2414_v9  ;;  %v2681_v13 = vadd.f32 %v2541_v63, %v2418_v22  ;;  %v2685_v11 = vadd.f32 %v2541_v63, %v2422_v44 }
 0x248   :  { %v2689_v3 = vadd.f32 %v2541_v63, %v2426_v52  ;;  %v2693_v38 = vadd.f32 %v2541_v63, %v2430_v28  ;;  %v2697_v9 = vadd.f32 %v2541_v63, %v2434_v25  ;;  %v2701_v22 = vadd.f32 %v2541_v63, %v2438_v34 }
 0x249   :  { %v2705_v44 = vadd.f32 %v2541_v63, %v2442_v32  ;;  %v2709_v52 = vadd.f32 %v2541_v63, %v2446_v42  ;;  %v2713_v28 = vadd.f32 %v2541_v63, %v2450_v39  ;;  %v2717_v25 = vadd.f32 %v2541_v63, %v2454_v50 }
 0x24a   :  { %v2721_v34 = vadd.f32 %v2541_v63, %v2458_v47  ;;  %v2725_v32 = vadd.f32 %v2541_v63, %v2462_v58  ;;  %v2729_v42 = vadd.f32 %v2541_v63, %v2466_v55  ;;  %v2733_v39 = vadd.f32 %v2541_v63, %v2470_v2 }
 0x24b   :  { %v2737_v50 = vadd.f32 %v2541_v63, %v3695_v1  ;;  %v2741_v47 = vadd.f32 %v2541_v63, %v3697_v59  ;;  %v2745_v58 = vadd.f32 %v2541_v63, %v3699_v37  ;;  %v2749_v55 = vadd.f32 %v2541_v63, %v3701_v0 }
 0x24c   :  { %3694 = vst [vmem:[#allocation9_spill] sm:$0xff] %v2725_v32  ;;  %v2753_v2 = vadd.f32 %v2541_v63, %v2490_v15  ;;  %v2757_v1 = vadd.f32 %v2541_v63, %v2494_v30  ;;  %vm1027_vm1 = vcmp.gt.f32.partialorder %v2545_v23, 0.0  ;;  %vm1028_vm2 = vcmp.gt.f32.partialorder %v2549_v49, 0.0 }
 0x24d   :  { %3696 = vst [vmem:[#allocation8_spill] sm:$0xff] %v2737_v50  ;;  %3698 = vst [vmem:[#allocation12_spill] sm:$0xff] %v2741_v47  ;;  %v3705_v50 = vld [vmem:[#allocation3_spill] sm:$0xff]  ;;  %v3707_v47 = vld [vmem:[#allocation2_spill] sm:$0xff]  ;;  %vm1029_vm3 = vcmp.gt.f32.partialorder %v2553_v43, 0.0  ;;  %vm1030_vm4 = vcmp.gt.f32.partialorder %v2557_v41, 0.0 }
 0x24e   :  { %3700 = vst [vmem:[#allocation10_spill] sm:$0xff] %v2745_v58  ;;  %3702 = vst [vmem:[#allocation16_spill] sm:$0xff] %v2749_v55  ;;  %v2761_v59 = vadd.f32 %v2541_v63, %v3705_v50  ;;  %v2765_v37 = vadd.f32 %v2541_v63, %v3707_v47  ;;  %v3709_v58 = vld [vmem:[#allocation5_spill] sm:$0xff]  ;;  %v3711_v55 = vld [vmem:[#allocation4_spill] sm:$0xff]  ;;  %v2785_v47 = vadd.f32 %v2541_v63, %v2522_v10  ;;  %vm1031_vm5 = vcmp.gt.f32.partialorder %v2561_v19, 0.0 }
 0x24f   :  { %3703 = vst [vmem:[#allocation14_spill] sm:$0xff] %v2753_v2  ;;  %3704 = vst [vmem:[#allocation20_spill] sm:$0xff] %v2757_v1  ;;  %v2769_v0 = vadd.f32 %v2541_v63, %v3709_v58  ;;  %v2773_v15 = vadd.f32 %v2541_v63, %v3711_v55  ;;  %v3713_v2 = vld [vmem:[#allocation7_spill] sm:$0xff]  ;;  %v3715_v1 = vld [vmem:[#allocation6_spill] sm:$0xff]  ;;  %v2789_v58 = vadd.f32 %v2541_v63, %v2526_v7  ;;  %vm1032_vm6 = vcmp.gt.f32.partialorder %v2565_v12, 0.0 }
 0x250   :  { %3706 = vst [vmem:[#allocation18_spill] sm:$0xff] %v2761_v59  ;;  %3708 = vst [vmem:[#allocation24_spill] sm:$0xff] %v2765_v37  ;;  %v2777_v30 = vadd.f32 %v2541_v63, %v3713_v2  ;;  %v2781_v50 = vadd.f32 %v2541_v63, %v3715_v1  ;;  %v2793_v55 = vadd.f32 %v2541_v63, %v2530_v18  ;;  %vm1033_vm7 = vcmp.gt.f32.partialorder %v2569_v53, 0.0 }
 0x251   :  { %3710 = vst [vmem:[#allocation13_spill] sm:$0xff] %v2769_v0  ;;  %3712 = vst [vmem:[#allocation11_spill] sm:$0xff] %v2773_v15  ;;  %v2797_v2 = vadd.f32 %v2541_v63, %v2534_v26  ;;  %vm1034_vm8 = vcmp.gt.f32.partialorder %v2573_v45, 0.0  ;;  %vm1035_vm9 = vcmp.gt.f32.partialorder %v2577_v20, 0.0  ;;  %vm1036_vm10 = vcmp.gt.f32.partialorder %v2581_v61, 0.0 }
 0x252   :  { %3714 = vst [vmem:[#allocation17_spill] sm:$0xff] %v2777_v30  ;;  %3716 = vst [vmem:[#allocation15_spill] sm:$0xff] %v2781_v50  ;;  %v1091_v63 = vmul.f32 0.2, %v2545_v23  ;;  %v1092_v10 = vmul.f32 0.2, %v2549_v49 }
 0x253   :  { %3717 = vst [vmem:[#allocation25_spill] sm:$0xff] %v2785_v47  ;;  %3718 = vst [vmem:[#allocation23_spill] sm:$0xff] %v2789_v58  ;;  %v1093_v7 = vmul.f32 0.2, %v2553_v43  ;;  %vm1037_vm11 = vcmp.gt.f32.partialorder %v2585_v60, 0.0  ;;  %vm1038_vm12 = vcmp.gt.f32.partialorder %v2589_v5, 0.0 }
 0x254   :  { %3719 = vst [vmem:[#allocation29_spill] sm:$0xff] %v2793_v55  ;;  %3720 = vst [vmem:[#allocation27_spill] sm:$0xff] %v2797_v2  ;;  %v1094_v18 = vmul.f32 0.2, %v2557_v41  ;;  %v1095_v26 = vmul.f32 0.2, %v2561_v19  ;;  %v1155_v47 = vsel %vm1027_vm1, %v2545_v23, %v1091_v63  ;;  %v1156_v0 = vsel %vm1028_vm2, %v2549_v49, %v1092_v10 }
 0x255   :  { %v1096_v1 = vmul.f32 0.2, %v2565_v12  ;;  %v1097_v2 = vmul.f32 0.2, %v2569_v53  ;;  %v1098_v55 = vmul.f32 0.2, %v2573_v45  ;;  %v1157_v49 = vsel %vm1029_vm3, %v2553_v43, %v1093_v7 }
 0x256   :  { %v1099_v58 = vmul.f32 0.2, %v2577_v20  ;;  %vm1039_vm13 = vcmp.gt.f32.partialorder %v2593_v27, 0.0  ;;  %v1100_v50 = vmul.f32 0.2, %v2581_v61  ;;  %1219 = vst.msk [vmem:[%s3541_s4] sm:$0xff] %vm482_vm0, %v1155_v47  ;;  %v1158_v43 = vsel %vm1030_vm4, %v2557_v41, %v1094_v18 }
 0x257   :  { %v2826_v30 = vmul.f32 0.2, %v2585_v60  ;;  %v2829_v15 = vmul.f32 0.2, %v2589_v5  ;;  %vm1040_vm14 = vcmp.gt.f32.partialorder %v2597_v24, 0.0  ;;  %1220 = vst.msk [vmem:[%s3541_s4 + $0x8] sm:$0xff] %vm482_vm0, %v1156_v0  ;;  %v1159_v41 = vsel %vm1031_vm5, %v2561_v19, %v1095_v26 }
 0x258   :  { %v2840_v23 = vmul.f32 0.2, %v2593_v27  ;;  %v2843_v63 = vmul.f32 0.2, %v2597_v24  ;;  %v2846_v37 = vmul.f32 0.2, %v2601_v33  ;;  %v1160_v19 = vsel %vm1032_vm6, %v2565_v12, %v1096_v1 }
 0x259   :  { %vm1041_vm15 = vcmp.gt.f32.partialorder %v2601_v33, 0.0  ;;  %v2857_v47 = vmul.f32 0.2, %v2605_v31  ;;  %v2860_v10 = vmul.f32 0.2, %v2609_v17  ;;  %1221 = vst.msk [vmem:[%s3541_s4 + $0x10] sm:$0xff] %vm482_vm0, %v1157_v49  ;;  %v1161_v12 = vsel %vm1033_vm7, %v2569_v53, %v1097_v2 }
 0x25a   :  { %v2863_v59 = vmul.f32 0.2, %v2613_v21  ;;  %vm1042_vm1 = vcmp.gt.f32.partialorder %v2605_v31, 0.0  ;;  %v2874_v0 = vmul.f32 0.2, %v2617_v48  ;;  %1222 = vst.msk [vmem:[%s3541_s4 + $0x18] sm:$0xff] %vm482_vm0, %v1158_v43  ;;  %v1162_v53 = vsel %vm1034_vm8, %v2573_v45, %v1098_v55 }
 0x25b   :  { %3721 = vst [vmem:[#allocation22_spill] sm:$0xff] %v2860_v10  ;;  %v2877_v7 = vmul.f32 0.2, %v2621_v46  ;;  %v2880_v10 = vmul.f32 0.2, %v2625_v56  ;;  %vm1043_vm2 = vcmp.gt.f32.partialorder %v2609_v17, 0.0  ;;  %v1163_v45 = vsel %vm1035_vm9, %v2577_v20, %v1099_v58 }
 0x25c   :  { %v2891_v18 = vmul.f32 0.2, %v2629_v54  ;;  %v2894_v49 = vmul.f32 0.2, %v2633_v62  ;;  %1223 = vst.msk [vmem:[%s3541_s4 + $0x20] sm:$0xff] %vm482_vm0, %v1159_v41  ;;  %vm1044_vm3 = vcmp.gt.f32.partialorder %v2613_v21, 0.0  ;;  %v1164_v58 = vsel %vm1036_vm10, %v2581_v61, %v1100_v50 }
 0x25d   :  { %3722 = vst [vmem:[#allocation28_spill] sm:$0xff] %v2877_v7  ;;  %v2897_v7 = vmul.f32 0.2, %v2637_v8  ;;  %v2908_v26 = vmul.f32 0.2, %v2641_v6  ;;  %1224 = vst.msk [vmem:[%s3541_s4 + $0x28] sm:$0xff] %vm482_vm0, %v1160_v19  ;;  %v1165_v50 = vsel %vm1037_vm11, %v2585_v60, %v2826_v30  ;;  %v1166_v30 = vsel %vm1038_vm12, %v2589_v5, %v2829_v15 }
 0x25e   :  { %3723 = vst [vmem:[#allocation26_spill] sm:$0xff] %v2894_v49  ;;  %v2911_v43 = vmul.f32 0.2, %v2645_v16  ;;  %v2914_v49 = vmul.f32 0.2, %v2649_v14  ;;  %vm1045_vm4 = vcmp.gt.f32.partialorder %v2617_v48, 0.0  ;;  %v1167_v15 = vsel %vm1039_vm13, %v2593_v27, %v2840_v23 }
 0x25f   :  { %v2925_v1 = vmul.f32 0.2, %v2653_v36  ;;  %v2928_v41 = vmul.f32 0.2, %v2657_v35  ;;  %1225 = vst.msk [vmem:[%s3541_s4 + $0x30] sm:$0xff] %vm482_vm0, %v1161_v12  ;;  %1226 = vst.msk [vmem:[%s3541_s4 + $0x38] sm:$0xff] %vm482_vm0, %v1162_v53  ;;  %v1168_v23 = vsel %vm1040_vm14, %v2597_v24, %v2843_v63 }
 0x260   :  { %3724 = vst [vmem:[#allocation21_spill] sm:$0xff] %v2911_v43  ;;  %v2931_v43 = vmul.f32 0.2, %v2661_v4  ;;  %v2944_v2 = vmul.f32 0.2, %v2665_v40  ;;  %vm1049_vm8 = vcmp.gt.f32.partialorder %v2633_v62, 0.0 }
 0x261   :  { %v2947_v19 = vmul.f32 0.2, %v2669_v51  ;;  %v2964_v55 = vmul.f32 0.2, %v2677_v29  ;;  %v2967_v12 = vmul.f32 0.2, %v2681_v13 }
 0x262   :  { %3725 = vst [vmem:[#allocation19_spill] sm:$0xff] %v2931_v43  ;;  %v2950_v43 = vmul.f32 0.2, %v2673_v57  ;;  %v2970_v20 = vmul.f32 0.2, %v2685_v11  ;;  %1227 = vst.msk [vmem:[%s3541_s4 + $0x40] sm:$0xff] %vm482_vm0, %v1163_v45 }
 0x263   :  { %vm1053_vm9 = vcmp.gt.f32.partialorder %v2649_v14, 0.0  ;;  %v2984_v53 = vmul.f32 0.2, %v2689_v3  ;;  %v2990_v61 = vmul.f32 0.2, %v2697_v9  ;;  %1228 = vst.msk [vmem:[%s3541_s4 + $0x48] sm:$0xff] %vm482_vm0, %v1164_v58 }
 0x264   :  { %3726 = vst [vmem:[#allocation3_spill] sm:$0xff] %v2970_v20  ;;  %v2987_v20 = vmul.f32 0.2, %v2693_v38  ;;  %vm1057_vm10 = vcmp.gt.f32.partialorder %v2665_v40, 0.0  ;;  %v3005_v45 = vmul.f32 0.2, %v2701_v22 }
 0x265   :  { %3727 = vst [vmem:[#allocation2_spill] sm:$0xff] %v2990_v61  ;;  %v3008_v61 = vmul.f32 0.2, %v2705_v44  ;;  %v3011_v60 = vmul.f32 0.2, %v2709_v52  ;;  %1229 = vst.msk [vmem:[%s3541_s4 + $0x50] sm:$0xff] %vm482_vm0, %v1165_v50 }
 0x266   :  { %vm1061_vm11 = vcmp.gt.f32.partialorder %v2681_v13, 0.0  ;;  %v3026_v58 = vmul.f32 0.2, %v2713_v28  ;;  %v3032_v5 = vmul.f32 0.2, %v2721_v34  ;;  %1230 = vst.msk [vmem:[%s3541_s4 + $0x58] sm:$0xff] %vm482_vm0, %v1166_v30 }
 0x267   :  { %3728 = vst [vmem:[#allocation5_spill] sm:$0xff] %v3011_v60  ;;  %v3029_v60 = vmul.f32 0.2, %v2717_v25  ;;  %vm1065_vm12 = vcmp.gt.f32.partialorder %v2697_v9, 0.0  ;;  %v3047_v50 = vmul.f32 0.2, %v2725_v32 }
 0x268   :  { %3729 = vst [vmem:[#allocation4_spill] sm:$0xff] %v3032_v5  ;;  %v3050_v5 = vmul.f32 0.2, %v2729_v42  ;;  %v3053_v27 = vmul.f32 0.2, %v2733_v39  ;;  %1231 = vst.msk [vmem:[%s3541_s4 + $0x60] sm:$0xff] %vm482_vm0, %v1167_v15  ;;  %v1169_v15 = vsel %vm1041_vm15, %v2601_v33, %v2846_v37 }
 0x269   :  { %3730 = vst [vmem:[#allocation7_spill] sm:$0xff] %v3047_v50  ;;  %vm1069_vm13 = vcmp.gt.f32.partialorder %v2713_v28, 0.0  ;;  %v3733_v30 = vld [vmem:[#allocation8_spill] sm:$0xff]  ;;  %v3737_v24 = vld [vmem:[#allocation10_spill] sm:$0xff]  ;;  %1232 = vst.msk [vmem:[%s3541_s4 + $0x68] sm:$0xff] %vm482_vm0, %v1168_v23  ;;  %vm1073_vm14 = vcmp.gt.f32.partialorder %v2729_v42, 0.0  ;;  %v1170_v23 = vsel %vm1042_vm1, %v2605_v31, %v2857_v47 }
 0x26a   :  { %3731 = vst [vmem:[#allocation6_spill] sm:$0xff] %v3050_v5  ;;  %3732 = vst [vmem:[#allocation30_spill] sm:$0xff] %v3053_v27  ;;  %v3068_v27 = vmul.f32 0.2, %v3733_v30  ;;  %v3735_v5 = vld [vmem:[#allocation12_spill] sm:$0xff]  ;;  %vm1077_vm15 = vcmp.gt.f32.partialorder %v3737_v24, 0.0 }
 0x26b   :  { %v3071_v50 = vmul.f32 0.2, %v3735_v5  ;;  %v3074_v63 = vmul.f32 0.2, %v3737_v24  ;;  %v3743_v33 = vld [vmem:[#allocation20_spill] sm:$0xff]  ;;  %1233 = vst.msk [vmem:[%s3541_s4 + $0x70] sm:$0xff] %vm482_vm0, %v1169_v15 }
 0x26c   :  { %3734 = vst [vmem:[#allocation31_spill] sm:$0xff] %v3068_v27  ;;  %v3741_v27 = vld [vmem:[#allocation14_spill] sm:$0xff]  ;;  %v3095_v37 = vmul.f32 0.2, %v3743_v33  ;;  %v3749_v31 = vld [vmem:[#allocation13_spill] sm:$0xff]  ;;  %1234 = vst.msk [vmem:[%s3541_s4 + $0x78] sm:$0xff] %vm482_vm0, %v1170_v23  ;;  %v1172_v23 = vsel %vm1044_vm3, %v2613_v21, %v2863_v59 }
 0x26d   :  { %3736 = vst [vmem:[#allocation32_spill] sm:$0xff] %v3071_v50  ;;  %3738 = vst [vmem:[#allocation10_spill] sm:$0xff] %v3074_v63  ;;  %v3739_v50 = vld [vmem:[#allocation16_spill] sm:$0xff]  ;;  %v3092_v32 = vmul.f32 0.2, %v3741_v27  ;;  %v3751_v30 = vld [vmem:[#allocation22_spill] sm:$0xff] }
 0x26e   :  { %v3089_v63 = vmul.f32 0.2, %v3739_v50  ;;  %3744 = vst [vmem:[#allocation33_spill] sm:$0xff] %v3095_v37  ;;  %v3116_v47 = vmul.f32 0.2, %v3749_v31  ;;  %v1171_v15 = vsel %vm1043_vm2, %v2609_v17, %v3751_v30  ;;  %v3756_v17 = vld [vmem:[#allocation15_spill] sm:$0xff] }
 0x26f   :  { %3742 = vst [vmem:[#allocation14_spill] sm:$0xff] %v3092_v32  ;;  %v3745_v32 = vld [vmem:[#allocation18_spill] sm:$0xff]  ;;  %v3137_v30 = vmul.f32 0.2, %v3756_v17  ;;  %1235 = vst.msk [vmem:[%s3541_s4 + $0x80] sm:$0xff] %vm482_vm0, %v1171_v15  ;;  %v3761_v21 = vld [vmem:[#allocation29_spill] sm:$0xff]  ;;  %v1173_v15 = vsel %vm1045_vm4, %v2617_v48, %v2874_v0 }
 0x270   :  { %3740 = vst [vmem:[#allocation16_spill] sm:$0xff] %v3089_v63  ;;  %v3110_v37 = vmul.f32 0.2, %v3745_v32  ;;  %v3747_v63 = vld [vmem:[#allocation24_spill] sm:$0xff]  ;;  %3750 = vst [vmem:[#allocation13_spill] sm:$0xff] %v3116_v47  ;;  %vm1081_vm1 = vcmp.gt.f32.partialorder %v3745_v32, 0.0 }
 0x271   :  { %v3113_v5 = vmul.f32 0.2, %v3747_v63  ;;  %3757 = vst [vmem:[#allocation15_spill] sm:$0xff] %v3137_v30  ;;  %v3158_v59 = vmul.f32 0.2, %v3761_v21  ;;  %1236 = vst.msk [vmem:[%s3541_s4 + $0x88] sm:$0xff] %vm482_vm0, %v1172_v23 }
 0x272   :  { %3746 = vst [vmem:[#allocation18_spill] sm:$0xff] %v3110_v37  ;;  %v3754_v37 = vld [vmem:[#allocation17_spill] sm:$0xff]  ;;  %vm1089_vm3 = vcmp.gt.f32.partialorder %v3761_v21, 0.0  ;;  %vm3765_vm6 = vcmp.gt.f32.partialorder %v2621_v46, 0.0  ;;  %vm3766_vm4 = vcmp.gt.f32.partialorder %v2625_v56, 0.0  ;;  %vm3767_vm5 = vcmp.gt.f32.partialorder %v2629_v54, 0.0 }
 0x273   :  { %3748 = vst [vmem:[#allocation24_spill] sm:$0xff] %v3113_v5  ;;  %v3752_v5 = vld [vmem:[#allocation11_spill] sm:$0xff]  ;;  %v3134_v33 = vmul.f32 0.2, %v3754_v37  ;;  %vm1085_vm2 = vcmp.gt.f32.partialorder %v3754_v37, 0.0  ;;  %3762 = vst [vmem:[#allocation29_spill] sm:$0xff] %v3158_v59  ;;  %v1175_v48 = vsel %vm3766_vm4, %v2625_v56, %v2880_v10  ;;  %v1176_v0 = vsel %vm3767_vm5, %v2629_v54, %v2891_v18 }
 0x274   :  { %v3131_v47 = vmul.f32 0.2, %v3752_v5  ;;  %v3758_v5 = vld [vmem:[#allocation25_spill] sm:$0xff]  ;;  %1237 = vst.msk [vmem:[%s3541_s4 + $0x90] sm:$0xff] %vm482_vm0, %v1173_v15  ;;  %v3768_v23 = vld [vmem:[#allocation26_spill] sm:$0xff]  ;;  %vm3770_vm4 = vcmp.gt.f32.partialorder %v2641_v6, 0.0 }
 0x275   :  { %3755 = vst [vmem:[#allocation17_spill] sm:$0xff] %v3134_v33  ;;  %v3759_v33 = vld [vmem:[#allocation23_spill] sm:$0xff]  ;;  %v3152_v30 = vmul.f32 0.2, %v3758_v5  ;;  %v1179_v54 = vsel %vm3770_vm4, %v2641_v6, %v2908_v26  ;;  %v3771_v10 = vld [vmem:[#allocation21_spill] sm:$0xff]  ;;  %vm3772_vm5 = vcmp.gt.f32.partialorder %v2645_v16, 0.0 }
 0x276   :  { %3753 = vst [vmem:[#allocation22_spill] sm:$0xff] %v3131_v47  ;;  %v3155_v47 = vmul.f32 0.2, %v3759_v33  ;;  %v3763_v5 = vld [vmem:[#allocation27_spill] sm:$0xff]  ;;  %v1180_v18 = vsel %vm3772_vm5, %v2645_v16, %v3771_v10  ;;  %1239 = vst.msk [vmem:[%s3541_s4 + $0xa0] sm:$0xff] %vm482_vm0, %v1175_v48  ;;  %vm3776_vm4 = vcmp.gt.f32.partialorder %v2661_v4, 0.0 }
 0x277   :  { %vm1090_vm7 = vcmp.gt.f32.partialorder %v3763_v5, 0.0  ;;  %v3171_v33 = vmul.f32 0.2, %v3763_v5  ;;  %1240 = vst.msk [vmem:[%s3541_s4 + $0xa8] sm:$0xff] %vm482_vm0, %v1176_v0  ;;  %v3775_v16 = vld [vmem:[#allocation19_spill] sm:$0xff]  ;;  %1243 = vst.msk [vmem:[%s3541_s4 + $0xc0] sm:$0xff] %vm482_vm0, %v1179_v54 }
 0x278   :  { %3760 = vst [vmem:[#allocation34_spill] sm:$0xff] %v3155_v47  ;;  %v3764_v47 = vld [vmem:[#allocation28_spill] sm:$0xff]  ;;  %1244 = vst.msk [vmem:[%s3541_s4 + $0xc8] sm:$0xff] %vm482_vm0, %v1180_v18  ;;  %vm3778_vm5 = vcmp.gt.f32.partialorder %v2673_v57, 0.0  ;;  %v3787_v26 = vld [vmem:[#allocation5_spill] sm:$0xff] }
 0x279   :  { %v1174_v59 = vsel %vm3765_vm6, %v2621_v46, %v3764_v47  ;;  %v1177_v46 = vsel %vm1049_vm8, %v2633_v62, %v3768_v23  ;;  %vm3769_vm6 = vcmp.gt.f32.partialorder %v2637_v8, 0.0  ;;  %v1181_v62 = vsel %vm1053_vm9, %v2649_v14, %v2914_v49  ;;  %v3807_v47 = vld [vmem:[#allocation14_spill] sm:$0xff]  ;;  %v3809_v15 = vld [vmem:[#allocation33_spill] sm:$0xff]  ;;  %v3810_v48 = vld [vmem:[#allocation20_spill] sm:$0xff] }
 0x27a   :  { %v1178_v56 = vsel %vm3769_vm6, %v2637_v8, %v2897_v7  ;;  %1238 = vst.msk [vmem:[%s3541_s4 + $0x98] sm:$0xff] %vm482_vm0, %v1174_v59  ;;  %vm3773_vm8 = vcmp.gt.f32.partialorder %v2653_v36, 0.0  ;;  %vm3774_vm6 = vcmp.gt.f32.partialorder %v2657_v35, 0.0  ;;  %v1184_v7 = vsel %vm3776_vm4, %v2661_v4, %v3775_v16  ;;  %1241 = vst.msk [vmem:[%s3541_s4 + $0xb0] sm:$0xff] %vm482_vm0, %v1177_v46  ;;  %v3815_v46 = vld [vmem:[#allocation13_spill] sm:$0xff]  ;;  %v3818_v10 = vld [vmem:[#allocation11_spill] sm:$0xff] }
 0x27b   :  { %v1182_v8 = vsel %vm3773_vm8, %v2653_v36, %v2925_v1  ;;  %v1183_v6 = vsel %vm3774_vm6, %v2657_v35, %v2928_v41  ;;  %1242 = vst.msk [vmem:[%s3541_s4 + $0xb8] sm:$0xff] %vm482_vm0, %v1178_v56  ;;  %v1185_v14 = vsel %vm1057_vm10, %v2665_v40, %v2944_v2  ;;  %vm3777_vm9 = vcmp.gt.f32.partialorder %v2669_v51, 0.0  ;;  %1245 = vst.msk [vmem:[%s3541_s4 + $0xd0] sm:$0xff] %vm482_vm0, %v1181_v62  ;;  %v3792_v1 = vld [vmem:[#allocation7_spill] sm:$0xff]  ;;  %v3793_v41 = vld [vmem:[#allocation9_spill] sm:$0xff] }
 0x27c   :  { %v1186_v36 = vsel %vm3777_vm9, %v2669_v51, %v2947_v19  ;;  %v1187_v35 = vsel %vm3778_vm5, %v2673_v57, %v2950_v43  ;;  %vm3779_vm8 = vcmp.gt.f32.partialorder %v2677_v29, 0.0  ;;  %1246 = vst.msk [vmem:[%s3541_s4 + $0xd8] sm:$0xff] %vm482_vm0, %v1182_v8  ;;  %1247 = vst.msk [vmem:[%s3541_s4 + $0xe0] sm:$0xff] %vm482_vm0, %v1183_v6  ;;  %v1189_v40 = vsel %vm1061_vm11, %v2681_v13, %v2967_v12  ;;  %v3780_v51 = vld [vmem:[#allocation3_spill] sm:$0xff]  ;;  %v3784_v13 = vld [vmem:[#allocation2_spill] sm:$0xff] }
 0x27d   :  { %v1188_v4 = vsel %vm3779_vm8, %v2677_v29, %v2964_v55  ;;  %1248 = vst.msk [vmem:[%s3541_s4 + $0xe8] sm:$0xff] %vm482_vm0, %v1184_v7  ;;  %vm3781_vm10 = vcmp.gt.f32.partialorder %v2685_v11, 0.0  ;;  %vm3782_vm6 = vcmp.gt.f32.partialorder %v2689_v3, 0.0  ;;  %vm3783_vm4 = vcmp.gt.f32.partialorder %v2693_v38, 0.0  ;;  %1249 = vst.msk [vmem:[%s3541_s4 + $0xf0] sm:$0xff] %vm482_vm0, %v1185_v14  ;;  %v3798_v55 = vld [vmem:[#allocation31_spill] sm:$0xff] }
 0x27e   :  { %v1190_v57 = vsel %vm3781_vm10, %v2685_v11, %v3780_v51  ;;  %v1191_v29 = vsel %vm3782_vm6, %v2689_v3, %v2984_v53  ;;  %v1192_v49 = vsel %vm3783_vm4, %v2693_v38, %v2987_v20  ;;  %1250 = vst.msk [vmem:[%s3541_s4 + $0xf8] sm:$0xff] %vm482_vm0, %v1186_v36  ;;  %1251 = vst.msk [vmem:[%s3541_s4 + $0x100] sm:$0xff] %vm482_vm0, %v1187_v35  ;;  %vm3785_vm11 = vcmp.gt.f32.partialorder %v2701_v22, 0.0  ;;  %v3799_v12 = vld [vmem:[#allocation8_spill] sm:$0xff]  ;;  %v3817_v54 = vld [vmem:[#allocation22_spill] sm:$0xff] }
 0x27f   :  { %1252 = vst.msk [vmem:[%s3541_s4 + $0x108] sm:$0xff] %vm482_vm0, %v1188_v4  ;;  %v1193_v11 = vsel %vm1065_vm12, %v2697_v9, %v3784_v13  ;;  %v1194_v3 = vsel %vm3785_vm11, %v2701_v22, %v3005_v45  ;;  %vm3786_vm9 = vcmp.gt.f32.partialorder %v2705_v44, 0.0  ;;  %vm3788_vm5 = vcmp.gt.f32.partialorder %v2709_v52, 0.0  ;;  %1253 = vst.msk [vmem:[%s3541_s4 + $0x110] sm:$0xff] %vm482_vm0, %v1189_v40  ;;  %v3801_v53 = vld [vmem:[#allocation32_spill] sm:$0xff]  ;;  %v3823_v8 = vld [vmem:[#allocation25_spill] sm:$0xff] }
 0x280   :  { %v1195_v38 = vsel %vm3786_vm9, %v2705_v44, %v3008_v61  ;;  %v1196_v43 = vsel %vm3788_vm5, %v2709_v52, %v3787_v26  ;;  %1254 = vst.msk [vmem:[%s3541_s4 + $0x118] sm:$0xff] %vm482_vm0, %v1190_v57  ;;  %1255 = vst.msk [vmem:[%s3541_s4 + $0x120] sm:$0xff] %vm482_vm0, %v1191_v29  ;;  %v1197_v9 = vsel %vm1069_vm13, %v2713_v28, %v3026_v58  ;;  %vm3789_vm12 = vcmp.gt.f32.partialorder %v2717_v25, 0.0  ;;  %v3790_v44 = vld [vmem:[#allocation4_spill] sm:$0xff]  ;;  %v3795_v28 = vld [vmem:[#allocation6_spill] sm:$0xff] }
 0x281   :  { %1256 = vst.msk [vmem:[%s3541_s4 + $0x128] sm:$0xff] %vm482_vm0, %v1192_v49  ;;  %v1198_v22 = vsel %vm3789_vm12, %v2717_v25, %v3029_v60  ;;  %vm3791_vm8 = vcmp.gt.f32.partialorder %v2721_v34, 0.0  ;;  %vm3794_vm10 = vcmp.gt.f32.partialorder %v3793_v41, 0.0  ;;  %1257 = vst.msk [vmem:[%s3541_s4 + $0x130] sm:$0xff] %vm482_vm0, %v1193_v11  ;;  %v1201_v25 = vsel %vm1073_vm14, %v2729_v42, %v3795_v28  ;;  %v3802_v61 = vld [vmem:[#allocation12_spill] sm:$0xff]  ;;  %v3804_v42 = vld [vmem:[#allocation10_spill] sm:$0xff] }
 0x282   :  { %v1199_v52 = vsel %vm3791_vm8, %v2721_v34, %v3790_v44  ;;  %v1200_v2 = vsel %vm3794_vm10, %v3793_v41, %v3792_v1  ;;  %1258 = vst.msk [vmem:[%s3541_s4 + $0x138] sm:$0xff] %vm482_vm0, %v1194_v3  ;;  %1259 = vst.msk [vmem:[%s3541_s4 + $0x140] sm:$0xff] %vm482_vm0, %v1195_v38  ;;  %v3796_v34 = vld [vmem:[#allocation30_spill] sm:$0xff]  ;;  %vm3797_vm13 = vcmp.gt.f32.partialorder %v2733_v39, 0.0  ;;  %vm3800_vm6 = vcmp.gt.f32.partialorder %v3799_v12, 0.0  ;;  %v3805_v60 = vld [vmem:[#allocation16_spill] sm:$0xff] }
 0x283   :  { %1260 = vst.msk [vmem:[%s3541_s4 + $0x148] sm:$0xff] %vm482_vm0, %v1196_v43  ;;  %v1202_v19 = vsel %vm3797_vm13, %v2733_v39, %v3796_v34  ;;  %v1203_v20 = vsel %vm3800_vm6, %v3799_v12, %v3798_v55  ;;  %vm3803_vm4 = vcmp.gt.f32.partialorder %v3802_v61, 0.0  ;;  %1261 = vst.msk [vmem:[%s3541_s4 + $0x150] sm:$0xff] %vm482_vm0, %v1197_v9  ;;  %v1205_v39 = vsel %vm1077_vm15, %v3737_v24, %v3804_v42  ;;  %v3813_v24 = vld [vmem:[#allocation24_spill] sm:$0xff]  ;;  %v3825_v16 = vld [vmem:[#allocation34_spill] sm:$0xff] }
 0x284   :  { %v1204_v45 = vsel %vm3803_vm4, %v3802_v61, %v3801_v53  ;;  %1262 = vst.msk [vmem:[%s3541_s4 + $0x158] sm:$0xff] %vm482_vm0, %v1198_v22  ;;  %1263 = vst.msk [vmem:[%s3541_s4 + $0x160] sm:$0xff] %vm482_vm0, %v1199_v52  ;;  %vm3806_vm14 = vcmp.gt.f32.partialorder %v3739_v50, 0.0  ;;  %vm3808_vm11 = vcmp.gt.f32.partialorder %v3741_v27, 0.0  ;;  %vm3811_vm9 = vcmp.gt.f32.partialorder %v3810_v48, 0.0  ;;  %v3826_v7 = vld [vmem:[#allocation23_spill] sm:$0xff] }
 0x285   :  { %1264 = vst.msk [vmem:[%s3541_s4 + $0x168] sm:$0xff] %vm482_vm0, %v1200_v2  ;;  %v1206_v58 = vsel %vm3806_vm14, %v3739_v50, %v3805_v60  ;;  %v1207_v59 = vsel %vm3808_vm11, %v3741_v27, %v3807_v47  ;;  %v1208_v0 = vsel %vm3811_vm9, %v3810_v48, %v3809_v15  ;;  %1265 = vst.msk [vmem:[%s3541_s4 + $0x170] sm:$0xff] %vm482_vm0, %v1201_v25  ;;  %v3812_v50 = vld [vmem:[#allocation18_spill] sm:$0xff]  ;;  %vm3814_vm15 = vcmp.gt.f32.partialorder %v3747_v63, 0.0 }
 0x286   :  { %1266 = vst.msk [vmem:[%s3541_s4 + $0x178] sm:$0xff] %vm482_vm0, %v1202_v19  ;;  %1267 = vst.msk [vmem:[%s3541_s4 + $0x180] sm:$0xff] %vm482_vm0, %v1203_v20  ;;  %v1209_v27 = vsel %vm1081_vm1, %v3745_v32, %v3812_v50  ;;  %v1210_v23 = vsel %vm3814_vm15, %v3747_v63, %v3813_v24  ;;  %vm3816_vm5 = vcmp.gt.f32.partialorder %v3749_v31, 0.0  ;;  %vm3819_vm12 = vcmp.gt.f32.partialorder %v3818_v10, 0.0  ;;  %v3820_v32 = vld [vmem:[#allocation17_spill] sm:$0xff] }
 0x287   :  { %1268 = vst.msk [vmem:[%s3541_s4 + $0x188] sm:$0xff] %vm482_vm0, %v1204_v45  ;;  %v1211_v56 = vsel %vm3816_vm5, %v3749_v31, %v3815_v46  ;;  %v1212_v18 = vsel %vm3819_vm12, %v3818_v10, %v3817_v54  ;;  %1269 = vst.msk [vmem:[%s3541_s4 + $0x190] sm:$0xff] %vm482_vm0, %v1205_v39  ;;  %v1213_v63 = vsel %vm1085_vm2, %v3754_v37, %v3820_v32  ;;  %v3821_v31 = vld [vmem:[#allocation15_spill] sm:$0xff]  ;;  %vm3822_vm1 = vcmp.gt.f32.partialorder %v3756_v17, 0.0  ;;  %v3828_v37 = vld [vmem:[#allocation29_spill] sm:$0xff] }
 0x288   :  { %1270 = vst.msk [vmem:[%s3541_s4 + $0x198] sm:$0xff] %vm482_vm0, %v1206_v58  ;;  %1271 = vst.msk [vmem:[%s3541_s4 + $0x1a0] sm:$0xff] %vm482_vm0, %v1207_v59  ;;  %v1214_v62 = vsel %vm3822_vm1, %v3756_v17, %v3821_v31  ;;  %vm3824_vm8 = vcmp.gt.f32.partialorder %v3823_v8, 0.0  ;;  %vm3827_vm10 = vcmp.gt.f32.partialorder %v3826_v7, 0.0  ;;  %v1217_v17 = vsel %vm1089_vm3, %v3761_v21, %v3828_v37 }
 0x289   :  { %1272 = vst.msk [vmem:[%s3541_s4 + $0x1a8] sm:$0xff] %vm482_vm0, %v1208_v0  ;;  %v1215_v6 = vsel %vm3824_vm8, %v3823_v8, %v3152_v30  ;;  %v1216_v14 = vsel %vm3827_vm10, %v3826_v7, %v3825_v16  ;;  %1273 = vst.msk [vmem:[%s3541_s4 + $0x1b0] sm:$0xff] %vm482_vm0, %v1209_v27  ;;  %v1218_v30 = vsel %vm1090_vm7, %v3763_v5, %v3171_v33 }
 0x28a   :  { %1274 = vst.msk [vmem:[%s3541_s4 + $0x1b8] sm:$0xff] %vm482_vm0, %v1210_v23  ;;  %1275 = vst.msk [vmem:[%s3541_s4 + $0x1c0] sm:$0xff] %vm482_vm0, %v1211_v56 }
 0x28b   :  { %1276 = vst.msk [vmem:[%s3541_s4 + $0x1c8] sm:$0xff] %vm482_vm0, %v1212_v18  ;;  %1277 = vst.msk [vmem:[%s3541_s4 + $0x1d0] sm:$0xff] %vm482_vm0, %v1213_v63 }
 0x28c   :  { %1278 = vst.msk [vmem:[%s3541_s4 + $0x1d8] sm:$0xff] %vm482_vm0, %v1214_v62  ;;  %1279 = vst.msk [vmem:[%s3541_s4 + $0x1e0] sm:$0xff] %vm482_vm0, %v1215_v6 }
 0x28d   :  { %1280 = vst.msk [vmem:[%s3541_s4 + $0x1e8] sm:$0xff] %vm482_vm0, %v1216_v14  ;;  %1281 = vst.msk [vmem:[%s3541_s4 + $0x1f0] sm:$0xff] %vm482_vm0, %v1217_v17 }
 0x28e   :  { %1282 = vst.msk [vmem:[%s3541_s4 + $0x1f8] sm:$0xff] %vm482_vm0, %v1218_v30 }

// kernel: classifier_forward.7
= control target key start
LH: loop header
LB: loop body
LE: loop exit
PB: predicated region body
PF: predicated region fallthrough
CT: control target
= control target key end

     0   :  { %vm1024_vm0 = vcmask 261120   ;;  %vm1025_vm13 = vcmask 261120   ;;  %s1019_s1 = inlined_call_operand.vmem [shape: f32[256,32], index: 1, kind: input, shape index: {}]   ;;  %s1020_s0 = inlined_call_operand.vmem [shape: f32[128,256], index: 0, kind: input, shape index: {}]   ;;  %s1021_s2 = inlined_call_operand.vmem [shape: f32[1,32], index: 2, kind: input, shape index: {}]   ;;  %s1022_s3 = inlined_call_operand.vmem [shape: f32[1,32], index: 3, kind: input, shape index: {}]   ;;  %s1023_s4 = inlined_call_operand.vmem [shape: f32[128,32], index: 4, kind: output, shape index: {}]  }
   0x1   :  { %v65_v0 = vld [vmem:[%s1019_s1 + $0x80] sm:$0xff]  ;;  %v66_v1 = vld [vmem:[%s1019_s1 + $0x88] sm:$0xff]  ;;  %v67_v5 = vld [vmem:[%s1019_s1 + $0x90] sm:$0xff] }
   0x2   :  { %v49_v2 = vld [vmem:[%s1019_s1] sm:$0xff]  ;;  %v535_v3 = vpack.c.bf16 %v66_v1, %v65_v0  ;;  %v50_v4 = vld [vmem:[%s1019_s1 + $0x8] sm:$0xff]  ;;  %v68_v6 = vld [vmem:[%s1019_s1 + $0x98] sm:$0xff] }
   0x3   :  { %v537_v7 = vpack.c.bf16 %v50_v4, %v49_v2  ;;  %v539_v8 = vpack.c.bf16 %v68_v6, %v67_v5  ;;  %v51_v9 = vld [vmem:[%s1019_s1 + $0x10] sm:$0xff]  ;;  %v52_v10 = vld [vmem:[%s1019_s1 + $0x18] sm:$0xff]  ;;  %v69_v11 = vld [vmem:[%s1019_s1 + $0xa0] sm:$0xff] }
   0x4   :  { %536 = vmatprep.subr.bf16.mxu0 %v535_v3  ;;  %v70_v12 = vld [vmem:[%s1019_s1 + $0xa8] sm:$0xff]  ;;  %567 = vmatprep.subr.bf16.mxu1 %v535_v3  ;;  %v541_v13 = vpack.c.bf16 %v52_v10, %v51_v9  ;;  %v53_v15 = vld [vmem:[%s1019_s1 + $0x20] sm:$0xff]  ;;  %v71_v17 = vld [vmem:[%s1019_s1 + $0xb0] sm:$0xff] }
   0x5   :  { %538 = vmatpush3.bf16.msra.mxu0 %v537_v7  ;;  %575 = vmatpush3.bf16.msra.mxu1 %v537_v7  ;;  %v543_v14 = vpack.c.bf16 %v70_v12, %v69_v11  ;;  %v54_v16 = vld [vmem:[%s1019_s1 + $0x28] sm:$0xff]  ;;  %v72_v18 = vld [vmem:[%s1019_s1 + $0xb8] sm:$0xff]  ;;  %v55_v21 = vld [vmem:[%s1019_s1 + $0x30] sm:$0xff] }
   0x6   :  { %540 = vmatprep.subr.bf16.mxu0 %v539_v8  ;;  %568 = vmatprep.subr.bf16.mxu1 %v539_v8  ;;  %v545_v19 = vpack.c.bf16 %v54_v16, %v53_v15  ;;  %v547_v20 = vpack.c.bf16 %v72_v18, %v71_v17  ;;  %v56_v22 = vld [vmem:[%s1019_s1 + $0x38] sm:$0xff]  ;;  %v73_v23 = vld [vmem:[%s1019_s1 + $0xc0] sm:$0xff]  ;;  %v74_v24 = vld [vmem:[%s1019_s1 + $0xc8] sm:$0xff] }
   0x7   :  { %v18_v25 = vld [vmem:[%s1020_s0 + $0x8] sm:$0xff]  ;;  %v549_v26 = vpack.c.bf16 %v56_v22, %v55_v21  ;;  %v551_v27 = vpack.c.bf16 %v74_v24, %v73_v23  ;;  %v57_v28 = vld [vmem:[%s1019_s1 + $0x40] sm:$0xff]  ;;  %v75_v31 = vld [vmem:[%s1019_s1 + $0xd0] sm:$0xff] }
   0x8   :  { %145 = vmatprep.mubr.f32.mxu0 %v18_v25  ;;  %v58_v29 = vld [vmem:[%s1019_s1 + $0x48] sm:$0xff]  ;;  %v76_v32 = vld [vmem:[%s1019_s1 + $0xd8] sm:$0xff]  ;;  %v59_v35 = vld [vmem:[%s1019_s1 + $0x50] sm:$0xff] }
   0x9   :  { %542 = vmatpush3.bf16.msra.mxu0 %v541_v13  ;;  %576 = vmatpush3.bf16.msra.mxu1 %v541_v13  ;;  %v34_v30 = vld [vmem:[%s1020_s0 + $0x88] sm:$0xff]  ;;  %v553_v33 = vpack.c.bf16 %v58_v29, %v57_v28  ;;  %v555_v34 = vpack.c.bf16 %v76_v32, %v75_v31  ;;  %v60_v36 = vld [vmem:[%s1019_s1 + $0x58] sm:$0xff]  ;;  %v77_v37 = vld [vmem:[%s1019_s1 + $0xe0] sm:$0xff] }
   0xa   :  { %544 = vmatprep.subr.bf16.mxu0 %v543_v14  ;;  %569 = vmatprep.subr.bf16.mxu1 %v543_v14  ;;  %v78_v38 = vld [vmem:[%s1019_s1 + $0xe8] sm:$0xff]  ;;  %v557_v39 = vpack.c.bf16 %v60_v36, %v59_v35  ;;  %v61_v41 = vld [vmem:[%s1019_s1 + $0x60] sm:$0xff]  ;;  %v79_v43 = vld [vmem:[%s1019_s1 + $0xf0] sm:$0xff] }
   0xb   :  { %185 = vmatprep.mubr.f32.mxu1 %v34_v30  ;;  %v559_v40 = vpack.c.bf16 %v78_v38, %v77_v37  ;;  %v62_v42 = vld [vmem:[%s1019_s1 + $0x68] sm:$0xff]  ;;  %v80_v44 = vld [vmem:[%s1019_s1 + $0xf8] sm:$0xff]  ;;  %v63_v47 = vld [vmem:[%s1019_s1 + $0x70] sm:$0xff] }
   0xc   :  { %v561_v45 = vpack.c.bf16 %v62_v42, %v61_v41  ;;  %v563_v46 = vpack.c.bf16 %v80_v44, %v79_v43  ;;  %v64_v48 = vld [vmem:[%s1019_s1 + $0x78] sm:$0xff]  ;;  %v17_v50 = vld [vmem:[%s1020_s0] sm:$0xff]  ;;  %v19_v54 = vld [vmem:[%s1020_s0 + $0x10] sm:$0xff] }
   0xd   :  { %546 = vmatpush3.bf16.msra.mxu0 %v545_v19  ;;  %577 = vmatpush3.bf16.msra.mxu1 %v545_v19  ;;  %v565_v49 = vpack.c.bf16 %v64_v48, %v63_v47  ;;  %v33_v51 = vld [vmem:[%s1020_s0 + $0x80] sm:$0xff]  ;;  %v20_v52 = vld [vmem:[%s1020_s0 + $0x18] sm:$0xff]  ;;  %v35_v55 = vld [vmem:[%s1020_s0 + $0x90] sm:$0xff] }
   0xe   :  { %548 = vmatprep.subr.bf16.mxu0 %v547_v20  ;;  %570 = vmatprep.subr.bf16.mxu1 %v547_v20  ;;  %v36_v53 = vld [vmem:[%s1020_s0 + $0x98] sm:$0xff]  ;;  %v22_v56 = vld [vmem:[%s1020_s0 + $0x28] sm:$0xff]  ;;  %v21_v58 = vld [vmem:[%s1020_s0 + $0x20] sm:$0xff] }
   0xf   :  { %v38_v57 = vld [vmem:[%s1020_s0 + $0xa8] sm:$0xff]  ;;  %v37_v59 = vld [vmem:[%s1020_s0 + $0xa0] sm:$0xff]  ;;  %v24_v60 = vld [vmem:[%s1020_s0 + $0x38] sm:$0xff] }
  0x10   :  { %v40_v61 = vld [vmem:[%s1020_s0 + $0xb8] sm:$0xff]  ;;  %v23_v62 = vld [vmem:[%s1020_s0 + $0x30] sm:$0xff]  ;;  %v26_v0 = vld [vmem:[%s1020_s0 + $0x48] sm:$0xff] }
  0x11   :  { %550 = vmatpush3.bf16.msra.mxu0 %v549_v26  ;;  %578 = vmatpush3.bf16.msra.mxu1 %v549_v26  ;;  %v39_v63 = vld [vmem:[%s1020_s0 + $0xb0] sm:$0xff]  ;;  %v42_v1 = vld [vmem:[%s1020_s0 + $0xc8] sm:$0xff]  ;;  %v25_v2 = vld [vmem:[%s1020_s0 + $0x40] sm:$0xff] }
  0x12   :  { %552 = vmatprep.subr.bf16.mxu0 %v551_v27  ;;  %571 = vmatprep.subr.bf16.mxu1 %v551_v27  ;;  %v41_v3 = vld [vmem:[%s1020_s0 + $0xc0] sm:$0xff]  ;;  %v28_v4 = vld [vmem:[%s1020_s0 + $0x58] sm:$0xff]  ;;  %v27_v6 = vld [vmem:[%s1020_s0 + $0x50] sm:$0xff] }
  0x13   :  { %v44_v5 = vld [vmem:[%s1020_s0 + $0xd8] sm:$0xff]  ;;  %v43_v7 = vld [vmem:[%s1020_s0 + $0xd0] sm:$0xff]  ;;  %v30_v8 = vld [vmem:[%s1020_s0 + $0x68] sm:$0xff] }
  0x14   :  { %v46_v9 = vld [vmem:[%s1020_s0 + $0xe8] sm:$0xff]  ;;  %v29_v10 = vld [vmem:[%s1020_s0 + $0x60] sm:$0xff]  ;;  %v32_v12 = vld [vmem:[%s1020_s0 + $0x78] sm:$0xff] }
  0x15   :  { %554 = vmatpush3.bf16.msra.mxu0 %v553_v33  ;;  %579 = vmatpush3.bf16.msra.mxu1 %v553_v33  ;;  %v45_v11 = vld [vmem:[%s1020_s0 + $0xe0] sm:$0xff]  ;;  %v48_v13 = vld [vmem:[%s1020_s0 + $0xf8] sm:$0xff]  ;;  %v31_v14 = vld [vmem:[%s1020_s0 + $0x70] sm:$0xff] }
  0x16   :  { %556 = vmatprep.subr.bf16.mxu0 %v555_v34  ;;  %572 = vmatprep.subr.bf16.mxu1 %v555_v34  ;;  %v47_v15 = vld [vmem:[%s1020_s0 + $0xf0] sm:$0xff] }
  0x19   :  { %558 = vmatpush3.bf16.msra.mxu0 %v557_v39  ;;  %580 = vmatpush3.bf16.msra.mxu1 %v557_v39 }
  0x1a   :  { %560 = vmatprep.subr.bf16.mxu0 %v559_v40  ;;  %573 = vmatprep.subr.bf16.mxu1 %v559_v40 }
  0x1d   :  { %562 = vmatpush3.bf16.msra.mxu0 %v561_v45  ;;  %581 = vmatpush3.bf16.msra.mxu1 %v561_v45 }
  0x1e   :  { %564 = vmatprep.subr.bf16.mxu0 %v563_v46  ;;  %574 = vmatprep.subr.bf16.mxu1 %v563_v46 }
  0x21   :  { %566 = vmatpush3.bf16.msra.mxu0 %v565_v49  ;;  %582 = vmatpush3.bf16.msra.mxu1 %v565_v49 }
  0x24   :  { %146 = vmatmul.mubr.f32.vlgmr.msra.gmra.mrb[0].mxu0 %v17_v50  ;;  %186 = vmatmul.mubr.f32.vlgmr.msra.gmra.mrb[0].mxu1 %v33_v51 }
  0x25   :  { %150 = vmatprep.mubr.f32.mxu0 %v20_v52  ;;  %190 = vmatprep.mubr.f32.mxu1 %v36_v53 }
  0x28   :  { %151 = vmatmul.mubr.f32.gmra.mrb[2].mxu0 %v19_v54  ;;  %191 = vmatmul.mubr.f32.gmra.mrb[2].mxu1 %v35_v55 }
  0x29   :  { %155 = vmatprep.mubr.f32.mxu0 %v22_v56  ;;  %195 = vmatprep.mubr.f32.mxu1 %v38_v57 }
  0x2c   :  { %156 = vmatmul.mubr.f32.gmra.mrb[4].mxu0 %v21_v58  ;;  %196 = vmatmul.mubr.f32.gmra.mrb[4].mxu1 %v37_v59 }
  0x2d   :  { %160 = vmatprep.mubr.f32.mxu0 %v24_v60  ;;  %200 = vmatprep.mubr.f32.mxu1 %v40_v61 }
  0x30   :  { %161 = vmatmul.mubr.f32.gmra.mrb[6].mxu0 %v23_v62  ;;  %201 = vmatmul.mubr.f32.gmra.mrb[6].mxu1 %v39_v63 }
  0x31   :  { %165 = vmatprep.mubr.f32.mxu0 %v26_v0  ;;  %205 = vmatprep.mubr.f32.mxu1 %v42_v1 }
  0x34   :  { %166 = vmatmul.mubr.f32.gmra.mrb[8].mxu0 %v25_v2  ;;  %206 = vmatmul.mubr.f32.gmra.mrb[8].mxu1 %v41_v3 }
  0x35   :  { %170 = vmatprep.mubr.f32.mxu0 %v28_v4  ;;  %210 = vmatprep.mubr.f32.mxu1 %v44_v5 }
  0x38   :  { %171 = vmatmul.mubr.f32.gmra.mrb[10].mxu0 %v27_v6  ;;  %211 = vmatmul.mubr.f32.gmra.mrb[10].mxu1 %v43_v7 }
  0x39   :  { %175 = vmatprep.mubr.f32.mxu0 %v30_v8  ;;  %215 = vmatprep.mubr.f32.mxu1 %v46_v9 }
  0x3c   :  { %176 = vmatmul.mubr.f32.gmra.mrb[12].mxu0 %v29_v10  ;;  %216 = vmatmul.mubr.f32.gmra.mrb[12].mxu1 %v45_v11 }
  0x3d   :  { %180 = vmatprep.mubr.f32.mxu0 %v32_v12  ;;  %220 = vmatprep.mubr.f32.mxu1 %v48_v13 }
  0x40   :  { %181 = vmatmul.mubr.f32.gmra.mrb[14].mxu0 %v31_v14  ;;  %221 = vmatmul.mubr.f32.gmra.mrb[14].mxu1 %v47_v15 }
  0xf7   :  { %v487_v16 = vpop.f32.mrb[0].mxu0  ;;  %v511_v17 = vpop.f32.mrb[0].mxu1 }
  0xf8   :  { %v488_v18 = vpop.f32.mrb[1].mxu0  ;;  %v512_v19 = vpop.f32.mrb[1].mxu1 }
  0xf9   :  { %v802_v20 = vadd.f32 %v488_v18, %v487_v16  ;;  %v804_v21 = vadd.f32 %v512_v19, %v511_v17 }
  0xfb   :  { %v490_v22 = vpop.f32.mrb[2].mxu0  ;;  %v514_v23 = vpop.f32.mrb[2].mxu1  ;;  %v227_v47 = vsel %vm1024_vm0, %v802_v20, 0.0  ;;  %v242_v15 = vsel %vm1024_vm0, %v804_v21, 0.0 }
  0xfc   :  { %v491_v24 = vpop.f32.mrb[3].mxu0  ;;  %v515_v25 = vpop.f32.mrb[3].mxu1 }
  0xfd   :  { %v806_v26 = vadd.f32 %v491_v24, %v490_v22  ;;  %v808_v27 = vadd.f32 %v515_v25, %v514_v23 }
  0xff   :  { %v493_v28 = vpop.f32.mrb[4].mxu0  ;;  %v517_v29 = vpop.f32.mrb[4].mxu1  ;;  %v228_v44 = vsel %vm1024_vm0, %v806_v26, 0.0  ;;  %v244_v17 = vsel %vm1024_vm0, %v808_v27, 0.0 }
 0x100   :  { %v494_v30 = vpop.f32.mrb[5].mxu0  ;;  %v518_v31 = vpop.f32.mrb[5].mxu1  ;;  %v229_v51 = vadd.f32 %v228_v44, %v227_v47 }
 0x101   :  { %v810_v32 = vadd.f32 %v494_v30, %v493_v28  ;;  %v812_v33 = vadd.f32 %v518_v31, %v517_v29 }
 0x103   :  { %v496_v34 = vpop.f32.mrb[6].mxu0  ;;  %v520_v35 = vpop.f32.mrb[6].mxu1  ;;  %v230_v48 = vsel %vm1024_vm0, %v810_v32, 0.0  ;;  %v246_v19 = vsel %vm1024_vm0, %v812_v33, 0.0 }
 0x104   :  { %v497_v36 = vpop.f32.mrb[7].mxu0  ;;  %v521_v37 = vpop.f32.mrb[7].mxu1  ;;  %v231_v57 = vadd.f32 %v230_v48, %v229_v51 }
 0x105   :  { %v814_v38 = vadd.f32 %v497_v36, %v496_v34  ;;  %v816_v39 = vadd.f32 %v521_v37, %v520_v35 }
 0x107   :  { %v499_v40 = vpop.f32.mrb[8].mxu0  ;;  %v523_v41 = vpop.f32.mrb[8].mxu1  ;;  %v232_v54 = vsel %vm1024_vm0, %v814_v38, 0.0  ;;  %v248_v23 = vsel %vm1024_vm0, %v816_v39, 0.0 }
 0x108   :  { %v500_v42 = vpop.f32.mrb[9].mxu0  ;;  %v524_v43 = vpop.f32.mrb[9].mxu1  ;;  %v233_v61 = vadd.f32 %v232_v54, %v231_v57 }
 0x109   :  { %v820_v45 = vadd.f32 %v500_v42, %v499_v40  ;;  %v822_v46 = vadd.f32 %v524_v43, %v523_v41 }
 0x10b   :  { %v502_v49 = vpop.f32.mrb[10].mxu0  ;;  %v526_v50 = vpop.f32.mrb[10].mxu1  ;;  %v234_v58 = vsel %vm1024_vm0, %v820_v45, 0.0  ;;  %v250_v25 = vsel %vm1024_vm0, %v822_v46, 0.0 }
 0x10c   :  { %v503_v52 = vpop.f32.mrb[11].mxu0  ;;  %v527_v53 = vpop.f32.mrb[11].mxu1  ;;  %v235_v3 = vadd.f32 %v234_v58, %v233_v61 }
 0x10d   :  { %v830_v55 = vadd.f32 %v503_v52, %v502_v49  ;;  %v832_v56 = vadd.f32 %v527_v53, %v526_v50 }
 0x10f   :  { %v505_v59 = vpop.f32.mrb[12].mxu0  ;;  %v529_v60 = vpop.f32.mrb[12].mxu1  ;;  %v236_v0 = vsel %vm1024_vm0, %v830_v55, 0.0  ;;  %v252_v29 = vsel %vm1024_vm0, %v832_v56, 0.0 }
 0x110   :  { %v506_v62 = vpop.f32.mrb[13].mxu0  ;;  %v530_v63 = vpop.f32.mrb[13].mxu1  ;;  %v237_v7 = vadd.f32 %v236_v0, %v235_v3 }
 0x111   :  { %v838_v1 = vadd.f32 %v506_v62, %v505_v59  ;;  %v840_v2 = vadd.f32 %v530_v63, %v529_v60 }
 0x113   :  { %v238_v4 = vsel %vm1024_vm0, %v838_v1, 0.0  ;;  %v508_v5 = vpop.f32.mrb[14].mxu0  ;;  %v532_v6 = vpop.f32.mrb[14].mxu1  ;;  %v254_v31 = vsel %vm1024_vm0, %v840_v2, 0.0 }
 0x114   :  { %v509_v8 = vpop.f32.mrb[15].mxu0  ;;  %v533_v9 = vpop.f32.mrb[15].mxu1  ;;  %v239_v12 = vadd.f32 %v238_v4, %v237_v7 }
 0x115   :  { %v844_v10 = vadd.f32 %v509_v8, %v508_v5  ;;  %v846_v11 = vadd.f32 %v533_v9, %v532_v6 }
 0x117   :  { %v240_v13 = vsel %vm1024_vm0, %v844_v10, 0.0  ;;  %v256_v34 = vsel %vm1024_vm0, %v846_v11, 0.0 }
 0x118   :  { %v241_v14 = vadd.f32 %v240_v13, %v239_v12 }
 0x11a   :  { %v243_v16 = vadd.f32 %v242_v15, %v241_v14 }
 0x11c   :  { %v245_v18 = vadd.f32 %v244_v17, %v243_v16 }
 0x11e   :  { %v247_v22 = vadd.f32 %v246_v19, %v245_v18 }
 0x120   :  { %v249_v24 = vadd.f32 %v248_v23, %v247_v22 }
 0x122   :  { %v251_v28 = vadd.f32 %v250_v25, %v249_v24 }
 0x124   :  { %v253_v30 = vadd.f32 %v252_v29, %v251_v28 }
 0x126   :  { %v255_v35 = vadd.f32 %v254_v31, %v253_v30 }
 0x128   :  { %v257_v36 = vadd.f32 %v256_v34, %v255_v35 }
 0x12a   :  { %v258_v37 = vrot.slane %v257_v36, 4 }
 0x12c   :  { %v259_v40 = vadd.f32 %v258_v37, %v257_v36 }
 0x12e   :  { %v260_v41 = vrot.slane %v259_v40, 2 }
 0x130   :  { %v261_v42 = vadd.f32 %v260_v41, %v259_v40 }
 0x132   :  { %v262_v43 = vrot.slane %v261_v42, 1 }
 0x134   :  { %v263_v44 = vadd.f32 %v262_v43, %v261_v42 }
 0x136   :  { %v866_v47 = vmul.f32 0.0078125, %v263_v44 }
 0x138   :  { %v266_v48 = vsub.f32 %v802_v20, %v866_v47  ;;  %v267_v49 = vsub.f32 %v806_v26, %v866_v47  ;;  %v268_v50 = vsub.f32 %v810_v32, %v866_v47  ;;  %v269_v51 = vsub.f32 %v814_v38, %v866_v47 }
 0x139   :  { %v270_v54 = vsub.f32 %v820_v45, %v866_v47  ;;  %v271_v58 = vsub.f32 %v830_v55, %v866_v47  ;;  %v272_v63 = vsub.f32 %v838_v1, %v866_v47  ;;  %v273_v5 = vsub.f32 %v844_v10, %v866_v47 }
 0x13a   :  { %v282_v52 = vmul.f32 %v266_v48, %v266_v48  ;;  %v283_v53 = vmul.f32 %v267_v49, %v267_v49  ;;  %v284_v57 = vmul.f32 %v268_v50, %v268_v50  ;;  %v285_v59 = vmul.f32 %v269_v51, %v269_v51 }
 0x13b   :  { %v286_v0 = vmul.f32 %v270_v54, %v270_v54  ;;  %v287_v6 = vmul.f32 %v271_v58, %v271_v58  ;;  %v274_v9 = vsub.f32 %v804_v21, %v866_v47  ;;  %v288_v12 = vmul.f32 %v272_v63, %v272_v63 }
 0x13c   :  { %v298_v60 = vsel %vm1024_vm0, %v282_v52, 0.0  ;;  %v299_v61 = vsel %vm1024_vm0, %v283_v53, 0.0  ;;  %v301_v3 = vsel %vm1024_vm0, %v284_v57, 0.0  ;;  %v303_v7 = vsel %vm1024_vm0, %v285_v59, 0.0 }
 0x13d   :  { %v300_v62 = vadd.f32 %v299_v61, %v298_v60  ;;  %v305_v13 = vsel %vm1024_vm0, %v286_v0, 0.0  ;;  %v275_v15 = vsub.f32 %v808_v27, %v866_v47  ;;  %v289_v16 = vmul.f32 %v273_v5, %v273_v5 }
 0x13e   :  { %v307_v17 = vsel %vm1024_vm0, %v287_v6, 0.0  ;;  %v276_v19 = vsub.f32 %v812_v33, %v866_v47  ;;  %v290_v22 = vmul.f32 %v274_v9, %v274_v9  ;;  %v309_v23 = vsel %vm1024_vm0, %v288_v12, 0.0 }
 0x13f   :  { %v302_v4 = vadd.f32 %v301_v3, %v300_v62  ;;  %v277_v25 = vsub.f32 %v816_v39, %v866_v47  ;;  %v291_v28 = vmul.f32 %v275_v15, %v275_v15  ;;  %v311_v29 = vsel %vm1024_vm0, %v289_v16, 0.0  ;;  %v336_v16 = vld [vmem:[%s1021_s2] sm:$0x1] }
 0x140   :  { %v278_v31 = vsub.f32 %v822_v46, %v866_v47  ;;  %v292_v34 = vmul.f32 %v276_v19, %v276_v19  ;;  %v313_v35 = vsel %vm1024_vm0, %v290_v22, 0.0  ;;  %v279_v37 = vsub.f32 %v832_v56, %v866_v47  ;;  %v340_v22 = vld [vmem:[%s1022_s3] sm:$0x1] }
 0x141   :  { %v304_v8 = vadd.f32 %v303_v7, %v302_v4  ;;  %v293_v40 = vmul.f32 %v277_v25, %v277_v25  ;;  %v315_v41 = vsel %vm1024_vm0, %v291_v28, 0.0  ;;  %v280_v43 = vsub.f32 %v840_v2, %v866_v47 }
 0x142   :  { %v294_v44 = vmul.f32 %v278_v31, %v278_v31  ;;  %v317_v48 = vsel %vm1024_vm0, %v292_v34, 0.0  ;;  %v281_v50 = vsub.f32 %v846_v11, %v866_v47  ;;  %v295_v51 = vmul.f32 %v279_v37, %v279_v37 }
 0x143   :  { %v306_v14 = vadd.f32 %v305_v13, %v304_v8  ;;  %v319_v52 = vsel %vm1024_vm0, %v293_v40, 0.0  ;;  %v296_v54 = vmul.f32 %v280_v43, %v280_v43 }
 0x144   :  { %v321_v57 = vsel %vm1024_vm0, %v294_v44, 0.0  ;;  %v297_v59 = vmul.f32 %v281_v50, %v281_v50  ;;  %v323_v60 = vsel %vm1024_vm0, %v295_v51, 0.0 }
 0x145   :  { %v308_v18 = vadd.f32 %v307_v17, %v306_v14  ;;  %v325_v62 = vsel %vm1024_vm0, %v296_v54, 0.0  ;;  %v344_v14 = vlaneseq }
 0x146   :  { %v327_v0 = vsel %vm1024_vm0, %v297_v59, 0.0  ;;  %vm1026_vm0 = vmmov %vm1025_vm13 }
 0x147   :  { %v310_v24 = vadd.f32 %v309_v23, %v308_v18  ;;  %v345_v15 = vshrl.u32 %v344_v14, 7 }
 0x149   :  { %v312_v30 = vadd.f32 %v311_v29, %v310_v24  ;;  %v346_v17 = vsub.s32 0, %v345_v15 }
 0x14b   :  { %v314_v36 = vadd.f32 %v313_v35, %v312_v30 }
 0x14d   :  { %v316_v42 = vadd.f32 %v315_v41, %v314_v36 }
 0x14f   :  { %v318_v49 = vadd.f32 %v317_v48, %v316_v42 }
 0x151   :  { %v320_v53 = vadd.f32 %v319_v52, %v318_v49 }
 0x153   :  { %v322_v58 = vadd.f32 %v321_v57, %v320_v53 }
 0x155   :  { %v324_v61 = vadd.f32 %v323_v60, %v322_v58 }
 0x157   :  { %v326_v63 = vadd.f32 %v325_v62, %v324_v61 }
 0x159   :  { %v328_v3 = vadd.f32 %v327_v0, %v326_v63 }
 0x15b   :  { %v329_v4 = vrot.slane %v328_v3, 4 }
 0x15d   :  { %v330_v5 = vadd.f32 %v329_v4, %v328_v3 }
 0x15f   :  { %v331_v6 = vrot.slane %v330_v5, 2 }
 0x161   :  { %v332_v7 = vadd.f32 %v331_v6, %v330_v5 }
 0x163   :  { %v333_v8 = vrot.slane %v332_v7, 1 }
 0x165   :  { %v334_v9 = vadd.f32 %v333_v8, %v332_v7 }
 0x167   :  { %v335_v12 = vmul.f32 0.0078125, %v334_v9 }
 0x169   :  { %v337_v13 = vadd.f32 1e-05, %v335_v12 }
 0x16b   :  { %583 = vrsqrt.f32 %v337_v13 }
 0x175   :  { %v584_v18 = vpop.eup %583 }
 0x176   :  { %v339_v19 = vmul.f32 %v584_v18, %v336_v16 }
 0x178   :  { %v341_v23 = vmul.f32 %v339_v19, %v866_v47  ;;  %v347_v24 = vrot.slane %v339_v19, %v346_v17 }
 0x17a   :  { %v342_v25 = vsub.f32 %v340_v22, %v341_v23  ;;  %v349_v28 = vmul.f32 %v802_v20, %v347_v24  ;;  %v350_v29 = vmul.f32 %v806_v26, %v347_v24  ;;  %v351_v30 = vmul.f32 %v810_v32, %v347_v24 }
 0x17b   :  { %v352_v31 = vmul.f32 %v814_v38, %v347_v24  ;;  %v353_v34 = vmul.f32 %v820_v45, %v347_v24  ;;  %v354_v35 = vmul.f32 %v830_v55, %v347_v24  ;;  %v355_v36 = vmul.f32 %v838_v1, %v347_v24 }
 0x17c   :  { %v356_v37 = vmul.f32 %v844_v10, %v347_v24  ;;  %v357_v47 = vmul.f32 %v804_v21, %v347_v24  ;;  %v358_v40 = vmul.f32 %v808_v27, %v347_v24  ;;  %v359_v20 = vmul.f32 %v812_v33, %v347_v24 }
 0x17d   :  { %v360_v26 = vmul.f32 %v816_v39, %v347_v24  ;;  %v369_v41 = vrot.slane %v342_v25, %v346_v17  ;;  %v361_v32 = vmul.f32 %v822_v46, %v347_v24  ;;  %v362_v38 = vmul.f32 %v832_v56, %v347_v24 }
 0x17e   :  { %v363_v45 = vmul.f32 %v840_v2, %v347_v24  ;;  %v364_v55 = vmul.f32 %v846_v11, %v347_v24 }
 0x17f   :  { %v371_v1 = vadd.f32 %v369_v41, %v349_v28  ;;  %v372_v42 = vadd.f32 %v369_v41, %v350_v29  ;;  %v373_v10 = vadd.f32 %v369_v41, %v351_v30  ;;  %v374_v43 = vadd.f32 %v369_v41, %v352_v31 }
 0x180   :  { %v375_v21 = vadd.f32 %v369_v41, %v353_v34  ;;  %v376_v44 = vadd.f32 %v369_v41, %v354_v35  ;;  %v377_v27 = vadd.f32 %v369_v41, %v355_v36  ;;  %v378_v48 = vadd.f32 %v369_v41, %v356_v37 }
 0x181   :  { %v379_v33 = vadd.f32 %v369_v41, %v357_v47  ;;  %v380_v49 = vadd.f32 %v369_v41, %v358_v40  ;;  %v381_v39 = vadd.f32 %v369_v41, %v359_v20  ;;  %v382_v50 = vadd.f32 %v369_v41, %v360_v26 }
 0x182   :  { %v383_v51 = vadd.f32 %v369_v41, %v361_v32  ;;  %v384_v46 = vadd.f32 %v369_v41, %v362_v38  ;;  %v385_v52 = vadd.f32 %v369_v41, %v363_v45  ;;  %v386_v56 = vadd.f32 %v369_v41, %v364_v55 }
 0x183   :  { %vm387_vm1 = vcmp.gt.f32.partialorder %v371_v1, 0.0  ;;  %vm388_vm2 = vcmp.gt.f32.partialorder %v372_v42, 0.0  ;;  %vm389_vm3 = vcmp.gt.f32.partialorder %v373_v10, 0.0  ;;  %vm390_vm4 = vcmp.gt.f32.partialorder %v374_v43, 0.0 }
 0x184   :  { %vm391_vm5 = vcmp.gt.f32.partialorder %v375_v21, 0.0  ;;  %vm392_vm6 = vcmp.gt.f32.partialorder %v376_v44, 0.0  ;;  %vm393_vm7 = vcmp.gt.f32.partialorder %v377_v27, 0.0  ;;  %vm394_vm8 = vcmp.gt.f32.partialorder %v378_v48, 0.0 }
 0x185   :  { %vm395_vm9 = vcmp.gt.f32.partialorder %v379_v33, 0.0  ;;  %vm396_vm10 = vcmp.gt.f32.partialorder %v380_v49, 0.0  ;;  %vm397_vm11 = vcmp.gt.f32.partialorder %v381_v39, 0.0  ;;  %vm398_vm12 = vcmp.gt.f32.partialorder %v382_v50, 0.0 }
 0x186   :  { %vm400_vm14 = vcmp.gt.f32.partialorder %v384_v46, 0.0  ;;  %vm401_vm15 = vcmp.gt.f32.partialorder %v385_v52, 0.0  ;;  %v403_v2 = vmul.f32 0.2, %v371_v1  ;;  %v404_v11 = vmul.f32 0.2, %v372_v42 }
 0x187   :  { %v405_v53 = vmul.f32 0.2, %v373_v10  ;;  %v406_v54 = vmul.f32 0.2, %v374_v43  ;;  %v407_v57 = vmul.f32 0.2, %v375_v21 }
 0x188   :  { %v408_v58 = vmul.f32 0.2, %v376_v44  ;;  %v409_v59 = vmul.f32 0.2, %v377_v27  ;;  %v410_v60 = vmul.f32 0.2, %v378_v48  ;;  %v419_v62 = vsel %vm387_vm1, %v371_v1, %v403_v2  ;;  %vm1027_vm1 = vmmov %vm1026_vm0 }
 0x189   :  { %v411_v61 = vmul.f32 0.2, %v379_v33  ;;  %v412_v63 = vmul.f32 0.2, %v380_v49  ;;  %v413_v0 = vmul.f32 0.2, %v381_v39  ;;  %v420_v4 = vsel %vm388_vm2, %v372_v42, %v404_v11  ;;  %vm1028_vm2 = vmmov %vm1026_vm0 }
 0x18a   :  { %v414_v3 = vmul.f32 0.2, %v382_v50  ;;  %435 = vst.msk [vmem:[%s1023_s4] sm:$0xff] %vm1025_vm13, %v419_v62  ;;  %v415_v5 = vmul.f32 0.2, %v383_v51  ;;  %v421_v8 = vsel %vm389_vm3, %v373_v10, %v405_v53  ;;  %v422_v12 = vsel %vm390_vm4, %v374_v43, %v406_v54  ;;  %vm1029_vm3 = vmmov %vm1026_vm0 }
 0x18b   :  { %v416_v6 = vmul.f32 0.2, %v384_v46  ;;  %v417_v7 = vmul.f32 0.2, %v385_v52  ;;  %436 = vst.msk [vmem:[%s1023_s4 + $0x8] sm:$0xff] %vm1026_vm0, %v420_v4  ;;  %v423_v13 = vsel %vm391_vm5, %v375_v21, %v407_v57  ;;  %v424_v14 = vsel %vm392_vm6, %v376_v44, %v408_v58  ;;  %438 = vst.msk [vmem:[%s1023_s4 + $0x18] sm:$0xff] %vm1026_vm0, %v422_v12 }
 0x18c   :  { %v418_v9 = vmul.f32 0.2, %v386_v56  ;;  %437 = vst.msk [vmem:[%s1023_s4 + $0x10] sm:$0xff] %vm1027_vm1, %v421_v8  ;;  %v425_v15 = vsel %vm393_vm7, %v377_v27, %v409_v59  ;;  %v426_v16 = vsel %vm394_vm8, %v378_v48, %v410_v60  ;;  %v427_v17 = vsel %vm395_vm9, %v379_v33, %v411_v61  ;;  %vm1031_vm5 = vmmov %vm1026_vm0 }
 0x18d   :  { %v428_v18 = vsel %vm396_vm10, %v380_v49, %v412_v63  ;;  %439 = vst.msk [vmem:[%s1023_s4 + $0x20] sm:$0xff] %vm1028_vm2, %v423_v13  ;;  %v429_v19 = vsel %vm397_vm11, %v381_v39, %v413_v0  ;;  %v430_v22 = vsel %vm398_vm12, %v382_v50, %v414_v3  ;;  %vm1030_vm4 = vcmp.gt.f32.partialorder %v383_v51, 0.0  ;;  %vm1032_vm6 = vmmov %vm1026_vm0 }
 0x18e   :  { %440 = vst.msk [vmem:[%s1023_s4 + $0x28] sm:$0xff] %vm1029_vm3, %v424_v14  ;;  %v431_v23 = vsel %vm1030_vm4, %v383_v51, %v415_v5  ;;  %v432_v24 = vsel %vm400_vm14, %v384_v46, %v416_v6  ;;  %vm1033_vm7 = vmmov %vm1026_vm0  ;;  %v433_v25 = vsel %vm401_vm15, %v385_v52, %v417_v7  ;;  %vm1035_vm9 = vcmp.gt.f32.partialorder %v386_v56, 0.0 }
 0x18f   :  { %441 = vst.msk [vmem:[%s1023_s4 + $0x30] sm:$0xff] %vm1031_vm5, %v425_v15  ;;  %vm1034_vm8 = vmmov %vm1026_vm0  ;;  %v434_v28 = vsel %vm1035_vm9, %v386_v56, %v418_v9 }
 0x190   :  { %442 = vst.msk [vmem:[%s1023_s4 + $0x38] sm:$0xff] %vm1032_vm6, %v426_v16  ;;  %vm1036_vm10 = vmmov %vm1026_vm0 }
 0x191   :  { %443 = vst.msk [vmem:[%s1023_s4 + $0x40] sm:$0xff] %vm1033_vm7, %v427_v17  ;;  %vm1037_vm11 = vmmov %vm1026_vm0 }
 0x192   :  { %444 = vst.msk [vmem:[%s1023_s4 + $0x48] sm:$0xff] %vm1034_vm8, %v428_v18  ;;  %vm1038_vm12 = vmmov %vm1026_vm0 }
 0x193   :  { %445 = vst.msk [vmem:[%s1023_s4 + $0x50] sm:$0xff] %vm1036_vm10, %v429_v19  ;;  %vm1039_vm13 = vmmov %vm1026_vm0 }
 0x194   :  { %446 = vst.msk [vmem:[%s1023_s4 + $0x58] sm:$0xff] %vm1037_vm11, %v430_v22  ;;  %vm1040_vm14 = vmmov %vm1026_vm0 }
 0x195   :  { %447 = vst.msk [vmem:[%s1023_s4 + $0x60] sm:$0xff] %vm1038_vm12, %v431_v23  ;;  %vm1041_vm15 = vmmov %vm1026_vm0 }
 0x196   :  { %448 = vst.msk [vmem:[%s1023_s4 + $0x68] sm:$0xff] %vm1039_vm13, %v432_v24 }
 0x197   :  { %449 = vst.msk [vmem:[%s1023_s4 + $0x70] sm:$0xff] %vm1040_vm14, %v433_v25 }
 0x198   :  { %450 = vst.msk [vmem:[%s1023_s4 + $0x78] sm:$0xff] %vm1041_vm15, %v434_v28 }

// kernel: classifier_forward.8
= control target key start
LH: loop header
LB: loop body
LE: loop exit
PB: predicated region body
PF: predicated region fallthrough
CT: control target
= control target key end

     0   :  { %vm267_vm0 = vcmask 523264   ;;  %s811_s1 = inlined_call_operand.vmem [shape: f32[512,64], index: 1, kind: input, shape index: {}]   ;;  %s812_s0 = inlined_call_operand.vmem [shape: f32[32,512], index: 0, kind: input, shape index: {}]   ;;  %s813_s2 = inlined_call_operand.vmem [shape: f32[1,64], index: 2, kind: input, shape index: {}]   ;;  %s814_s3 = inlined_call_operand.vmem [shape: f32[1,64], index: 3, kind: input, shape index: {}]   ;;  %s815_s4 = inlined_call_operand.vmem [shape: f32[32,64], index: 4, kind: output, shape index: {}]  }
   0x1   :  { %v49_v0 = vld [vmem:[%s811_s1 + $0x80] sm:$0xff]  ;;  %v50_v1 = vld [vmem:[%s811_s1 + $0x88] sm:$0xff]  ;;  %v51_v11 = vld [vmem:[%s811_s1 + $0x90] sm:$0xff] }
   0x2   :  { %v81_v2 = vld [vmem:[%s811_s1 + $0x180] sm:$0xff]  ;;  %v440_v3 = vpack.c.bf16 %v50_v1, %v49_v0  ;;  %v82_v4 = vld [vmem:[%s811_s1 + $0x188] sm:$0xff]  ;;  %v52_v13 = vld [vmem:[%s811_s1 + $0x98] sm:$0xff] }
   0x3   :  { %v33_v5 = vld [vmem:[%s811_s1] sm:$0xff]  ;;  %v34_v6 = vld [vmem:[%s811_s1 + $0x8] sm:$0xff]  ;;  %v472_v7 = vpack.c.bf16 %v82_v4, %v81_v2  ;;  %v83_v14 = vld [vmem:[%s811_s1 + $0x190] sm:$0xff]  ;;  %v444_v16 = vpack.c.bf16 %v52_v13, %v51_v11 }
   0x4   :  { %v442_v8 = vpack.c.bf16 %v34_v6, %v33_v5  ;;  %v65_v9 = vld [vmem:[%s811_s1 + $0x100] sm:$0xff]  ;;  %v66_v10 = vld [vmem:[%s811_s1 + $0x108] sm:$0xff]  ;;  %441 = vmatprep.subr.bf16.mxu0 %v440_v3  ;;  %v84_v15 = vld [vmem:[%s811_s1 + $0x198] sm:$0xff] }
   0x5   :  { %v474_v12 = vpack.c.bf16 %v66_v10, %v65_v9  ;;  %473 = vmatprep.subr.bf16.mxu1 %v472_v7  ;;  %v476_v17 = vpack.c.bf16 %v84_v15, %v83_v14  ;;  %v35_v18 = vld [vmem:[%s811_s1 + $0x10] sm:$0xff]  ;;  %v36_v19 = vld [vmem:[%s811_s1 + $0x18] sm:$0xff]  ;;  %v53_v23 = vld [vmem:[%s811_s1 + $0xa0] sm:$0xff] }
   0x6   :  { %443 = vmatpush3.bf16.msra.mxu0 %v442_v8  ;;  %v67_v20 = vld [vmem:[%s811_s1 + $0x110] sm:$0xff]  ;;  %v446_v21 = vpack.c.bf16 %v36_v19, %v35_v18  ;;  %v68_v22 = vld [vmem:[%s811_s1 + $0x118] sm:$0xff]  ;;  %v54_v24 = vld [vmem:[%s811_s1 + $0xa8] sm:$0xff] }
   0x7   :  { %475 = vmatpush3.bf16.msra.mxu1 %v474_v12  ;;  %445 = vmatprep.subr.bf16.mxu0 %v444_v16  ;;  %v478_v25 = vpack.c.bf16 %v68_v22, %v67_v20  ;;  %v448_v26 = vpack.c.bf16 %v54_v24, %v53_v23  ;;  %v85_v27 = vld [vmem:[%s811_s1 + $0x1a0] sm:$0xff]  ;;  %v86_v28 = vld [vmem:[%s811_s1 + $0x1a8] sm:$0xff]  ;;  %v55_v35 = vld [vmem:[%s811_s1 + $0xb0] sm:$0xff] }
   0x8   :  { %477 = vmatprep.subr.bf16.mxu1 %v476_v17  ;;  %v37_v29 = vld [vmem:[%s811_s1 + $0x20] sm:$0xff]  ;;  %v480_v30 = vpack.c.bf16 %v86_v28, %v85_v27  ;;  %v38_v31 = vld [vmem:[%s811_s1 + $0x28] sm:$0xff]  ;;  %v56_v36 = vld [vmem:[%s811_s1 + $0xb8] sm:$0xff] }
   0x9   :  { %v69_v32 = vld [vmem:[%s811_s1 + $0x120] sm:$0xff]  ;;  %v70_v33 = vld [vmem:[%s811_s1 + $0x128] sm:$0xff]  ;;  %v450_v34 = vpack.c.bf16 %v38_v31, %v37_v29  ;;  %v87_v37 = vld [vmem:[%s811_s1 + $0x1b0] sm:$0xff]  ;;  %v452_v39 = vpack.c.bf16 %v56_v36, %v55_v35 }
   0xa   :  { %447 = vmatpush3.bf16.msra.mxu0 %v446_v21  ;;  %v482_v38 = vpack.c.bf16 %v70_v33, %v69_v32  ;;  %v88_v40 = vld [vmem:[%s811_s1 + $0x1b8] sm:$0xff]  ;;  %v39_v41 = vld [vmem:[%s811_s1 + $0x30] sm:$0xff]  ;;  %v57_v46 = vld [vmem:[%s811_s1 + $0xc0] sm:$0xff] }
   0xb   :  { %479 = vmatpush3.bf16.msra.mxu1 %v478_v25  ;;  %449 = vmatprep.subr.bf16.mxu0 %v448_v26  ;;  %v40_v42 = vld [vmem:[%s811_s1 + $0x38] sm:$0xff]  ;;  %v484_v43 = vpack.c.bf16 %v88_v40, %v87_v37  ;;  %v71_v44 = vld [vmem:[%s811_s1 + $0x130] sm:$0xff]  ;;  %v58_v47 = vld [vmem:[%s811_s1 + $0xc8] sm:$0xff] }
   0xc   :  { %481 = vmatprep.subr.bf16.mxu1 %v480_v30  ;;  %v72_v45 = vld [vmem:[%s811_s1 + $0x138] sm:$0xff]  ;;  %v89_v48 = vld [vmem:[%s811_s1 + $0x1c0] sm:$0xff]  ;;  %v90_v49 = vld [vmem:[%s811_s1 + $0x1c8] sm:$0xff]  ;;  %v454_v50 = vpack.c.bf16 %v40_v42, %v39_v41  ;;  %v456_v52 = vpack.c.bf16 %v58_v47, %v57_v46 }
   0xd   :  { %v486_v51 = vpack.c.bf16 %v72_v45, %v71_v44  ;;  %v41_v53 = vld [vmem:[%s811_s1 + $0x40] sm:$0xff]  ;;  %v42_v54 = vld [vmem:[%s811_s1 + $0x48] sm:$0xff]  ;;  %v488_v56 = vpack.c.bf16 %v90_v49, %v89_v48  ;;  %v59_v58 = vld [vmem:[%s811_s1 + $0xd0] sm:$0xff] }
   0xe   :  { %451 = vmatpush3.bf16.msra.mxu0 %v450_v34  ;;  %v73_v55 = vld [vmem:[%s811_s1 + $0x140] sm:$0xff]  ;;  %v74_v57 = vld [vmem:[%s811_s1 + $0x148] sm:$0xff]  ;;  %v60_v59 = vld [vmem:[%s811_s1 + $0xd8] sm:$0xff]  ;;  %v458_v62 = vpack.c.bf16 %v42_v54, %v41_v53 }
   0xf   :  { %483 = vmatpush3.bf16.msra.mxu1 %v482_v38  ;;  %453 = vmatprep.subr.bf16.mxu0 %v452_v39  ;;  %v91_v60 = vld [vmem:[%s811_s1 + $0x1d0] sm:$0xff]  ;;  %v92_v61 = vld [vmem:[%s811_s1 + $0x1d8] sm:$0xff]  ;;  %v490_v63 = vpack.c.bf16 %v74_v57, %v73_v55  ;;  %v460_v0 = vpack.c.bf16 %v60_v59, %v59_v58  ;;  %v61_v6 = vld [vmem:[%s811_s1 + $0xe0] sm:$0xff] }
  0x10   :  { %485 = vmatprep.subr.bf16.mxu1 %v484_v43  ;;  %v43_v1 = vld [vmem:[%s811_s1 + $0x50] sm:$0xff]  ;;  %v44_v2 = vld [vmem:[%s811_s1 + $0x58] sm:$0xff]  ;;  %v492_v4 = vpack.c.bf16 %v92_v61, %v91_v60  ;;  %v62_v7 = vld [vmem:[%s811_s1 + $0xe8] sm:$0xff] }
  0x11   :  { %v75_v3 = vld [vmem:[%s811_s1 + $0x150] sm:$0xff]  ;;  %v76_v5 = vld [vmem:[%s811_s1 + $0x158] sm:$0xff]  ;;  %v93_v8 = vld [vmem:[%s811_s1 + $0x1e0] sm:$0xff]  ;;  %v462_v10 = vpack.c.bf16 %v44_v2, %v43_v1  ;;  %v464_v14 = vpack.c.bf16 %v62_v7, %v61_v6 }
  0x12   :  { %455 = vmatpush3.bf16.msra.mxu0 %v454_v50  ;;  %v94_v9 = vld [vmem:[%s811_s1 + $0x1e8] sm:$0xff]  ;;  %v45_v11 = vld [vmem:[%s811_s1 + $0x60] sm:$0xff]  ;;  %v494_v13 = vpack.c.bf16 %v76_v5, %v75_v3  ;;  %v20_v17 = vld [vmem:[%s812_s0 + $0x18] sm:$0xff] }
  0x13   :  { %487 = vmatpush3.bf16.msra.mxu1 %v486_v51  ;;  %457 = vmatprep.subr.bf16.mxu0 %v456_v52  ;;  %v46_v12 = vld [vmem:[%s811_s1 + $0x68] sm:$0xff]  ;;  %v77_v15 = vld [vmem:[%s811_s1 + $0x160] sm:$0xff]  ;;  %v496_v18 = vpack.c.bf16 %v94_v9, %v93_v8  ;;  %v63_v20 = vld [vmem:[%s811_s1 + $0xf0] sm:$0xff] }
  0x14   :  { %489 = vmatprep.subr.bf16.mxu1 %v488_v56  ;;  %v18_v16 = vld [vmem:[%s812_s0 + $0x8] sm:$0xff]  ;;  %v64_v21 = vld [vmem:[%s811_s1 + $0xf8] sm:$0xff]  ;;  %v95_v22 = vld [vmem:[%s811_s1 + $0x1f0] sm:$0xff]  ;;  %246 = vmatprep.mubr.f32.mxu1 %v20_v17  ;;  %v466_v24 = vpack.c.bf16 %v46_v12, %v45_v11 }
  0x15   :  { %v78_v19 = vld [vmem:[%s811_s1 + $0x168] sm:$0xff]  ;;  %161 = vmatprep.mubr.f32.mxu0 %v18_v16  ;;  %v96_v23 = vld [vmem:[%s811_s1 + $0x1f8] sm:$0xff]  ;;  %v468_v26 = vpack.c.bf16 %v64_v21, %v63_v20  ;;  %v47_v27 = vld [vmem:[%s811_s1 + $0x70] sm:$0xff] }
  0x16   :  { %459 = vmatpush3.bf16.msra.mxu0 %v458_v62  ;;  %v498_v25 = vpack.c.bf16 %v78_v19, %v77_v15  ;;  %v48_v28 = vld [vmem:[%s811_s1 + $0x78] sm:$0xff]  ;;  %v500_v29 = vpack.c.bf16 %v96_v23, %v95_v22  ;;  %v79_v30 = vld [vmem:[%s811_s1 + $0x170] sm:$0xff]  ;;  %v17_v34 = vld [vmem:[%s812_s0] sm:$0xff] }
  0x17   :  { %491 = vmatpush3.bf16.msra.mxu1 %v490_v63  ;;  %461 = vmatprep.subr.bf16.mxu0 %v460_v0  ;;  %v80_v31 = vld [vmem:[%s811_s1 + $0x178] sm:$0xff]  ;;  %v470_v32 = vpack.c.bf16 %v48_v28, %v47_v27  ;;  %v19_v35 = vld [vmem:[%s812_s0 + $0x10] sm:$0xff]  ;;  %v22_v36 = vld [vmem:[%s812_s0 + $0x28] sm:$0xff] }
  0x18   :  { %493 = vmatprep.subr.bf16.mxu1 %v492_v4  ;;  %v502_v33 = vpack.c.bf16 %v80_v31, %v79_v30  ;;  %v24_v37 = vld [vmem:[%s812_s0 + $0x38] sm:$0xff]  ;;  %v21_v38 = vld [vmem:[%s812_s0 + $0x20] sm:$0xff]  ;;  %v23_v39 = vld [vmem:[%s812_s0 + $0x30] sm:$0xff] }
  0x19   :  { %v26_v40 = vld [vmem:[%s812_s0 + $0x48] sm:$0xff]  ;;  %v28_v41 = vld [vmem:[%s812_s0 + $0x58] sm:$0xff]  ;;  %v25_v42 = vld [vmem:[%s812_s0 + $0x40] sm:$0xff] }
  0x1a   :  { %463 = vmatpush3.bf16.msra.mxu0 %v462_v10  ;;  %v27_v43 = vld [vmem:[%s812_s0 + $0x50] sm:$0xff]  ;;  %v30_v44 = vld [vmem:[%s812_s0 + $0x68] sm:$0xff]  ;;  %v32_v45 = vld [vmem:[%s812_s0 + $0x78] sm:$0xff] }
  0x1b   :  { %495 = vmatpush3.bf16.msra.mxu1 %v494_v13  ;;  %465 = vmatprep.subr.bf16.mxu0 %v464_v14  ;;  %v29_v46 = vld [vmem:[%s812_s0 + $0x60] sm:$0xff]  ;;  %v31_v47 = vld [vmem:[%s812_s0 + $0x70] sm:$0xff] }
  0x1c   :  { %497 = vmatprep.subr.bf16.mxu1 %v496_v18 }
  0x1e   :  { %467 = vmatpush3.bf16.msra.mxu0 %v466_v24 }
  0x1f   :  { %499 = vmatpush3.bf16.msra.mxu1 %v498_v25  ;;  %469 = vmatprep.subr.bf16.mxu0 %v468_v26 }
  0x20   :  { %501 = vmatprep.subr.bf16.mxu1 %v500_v29 }
  0x22   :  { %471 = vmatpush3.bf16.msra.mxu0 %v470_v32 }
  0x23   :  { %503 = vmatpush3.bf16.msra.mxu1 %v502_v33 }
  0x25   :  { %162 = vmatmul.mubr.f32.vlgmr.msra.gmra.mrb[0].mxu0 %v17_v34 }
  0x26   :  { %247 = vmatmul.mubr.f32.vlgmr.msra.gmra.mrb[0].mxu1 %v19_v35  ;;  %166 = vmatprep.mubr.f32.mxu0 %v22_v36 }
  0x27   :  { %251 = vmatprep.mubr.f32.mxu1 %v24_v37 }
  0x29   :  { %167 = vmatmul.mubr.f32.gmra.mrb[2].mxu0 %v21_v38 }
  0x2a   :  { %252 = vmatmul.mubr.f32.gmra.mrb[2].mxu1 %v23_v39  ;;  %171 = vmatprep.mubr.f32.mxu0 %v26_v40 }
  0x2b   :  { %256 = vmatprep.mubr.f32.mxu1 %v28_v41 }
  0x2d   :  { %172 = vmatmul.mubr.f32.gmra.mrb[4].mxu0 %v25_v42 }
  0x2e   :  { %257 = vmatmul.mubr.f32.gmra.mrb[4].mxu1 %v27_v43  ;;  %176 = vmatprep.mubr.f32.mxu0 %v30_v44 }
  0x2f   :  { %261 = vmatprep.mubr.f32.mxu1 %v32_v45 }
  0x31   :  { %177 = vmatmul.mubr.f32.gmra.mrb[6].mxu0 %v29_v46 }
  0x32   :  { %262 = vmatmul.mubr.f32.gmra.mrb[6].mxu1 %v31_v47 }
  0xf8   :  { %v384_v48 = vpop.f32.mrb[0].mxu0 }
  0xf9   :  { %v428_v49 = vpop.f32.mrb[0].mxu1  ;;  %v385_v50 = vpop.f32.mrb[1].mxu0 }
  0xfa   :  { %v386_v51 = vadd.f32 %v385_v50, %v384_v48  ;;  %v429_v52 = vpop.f32.mrb[1].mxu1 }
  0xfb   :  { %v430_v53 = vadd.f32 %v429_v52, %v428_v49  ;;  %v313_v49 = vlaneseq }
  0xfc   :  { %v387_v54 = vpop.f32.mrb[2].mxu0 }
  0xfd   :  { %v771_v55 = vadd.f32 %v430_v53, %v386_v51  ;;  %v431_v56 = vpop.f32.mrb[2].mxu1  ;;  %v388_v57 = vpop.f32.mrb[3].mxu0  ;;  %v314_v50 = vshrl.u32 %v313_v49, 7  ;;  %v305_v51 = vld [vmem:[%s813_s2] sm:$0x1] }
  0xfe   :  { %v389_v58 = vadd.f32 %v388_v57, %v387_v54  ;;  %v432_v59 = vpop.f32.mrb[3].mxu1 }
  0xff   :  { %v433_v60 = vadd.f32 %v432_v59, %v431_v56  ;;  %v268_v11 = vsel %vm267_vm0, %v771_v55, 0.0  ;;  %v315_v52 = vsub.s32 0, %v314_v50  ;;  %v309_v56 = vld [vmem:[%s814_s3] sm:$0x1] }
 0x100   :  { %v390_v61 = vpop.f32.mrb[4].mxu0 }
 0x101   :  { %v773_v62 = vadd.f32 %v433_v60, %v389_v58  ;;  %v434_v63 = vpop.f32.mrb[4].mxu1  ;;  %v391_v0 = vpop.f32.mrb[5].mxu0 }
 0x102   :  { %v392_v1 = vadd.f32 %v391_v0, %v390_v61  ;;  %v435_v2 = vpop.f32.mrb[5].mxu1 }
 0x103   :  { %v436_v3 = vadd.f32 %v435_v2, %v434_v63  ;;  %v269_v5 = vsel %vm267_vm0, %v773_v62, 0.0 }
 0x104   :  { %v393_v4 = vpop.f32.mrb[6].mxu0  ;;  %v270_v14 = vadd.f32 %v269_v5, %v268_v11 }
 0x105   :  { %v259_v6 = vadd.f32 %v436_v3, %v392_v1  ;;  %v437_v7 = vpop.f32.mrb[6].mxu1  ;;  %v394_v8 = vpop.f32.mrb[7].mxu0 }
 0x106   :  { %v395_v9 = vadd.f32 %v394_v8, %v393_v4  ;;  %v438_v10 = vpop.f32.mrb[7].mxu1 }
 0x107   :  { %v271_v12 = vsel %vm267_vm0, %v259_v6, 0.0  ;;  %v439_v13 = vadd.f32 %v438_v10, %v437_v7 }
 0x108   :  { %v272_v16 = vadd.f32 %v271_v12, %v270_v14 }
 0x109   :  { %v264_v15 = vadd.f32 %v439_v13, %v395_v9 }
 0x10b   :  { %v273_v17 = vsel %vm267_vm0, %v264_v15, 0.0 }
 0x10c   :  { %v274_v18 = vadd.f32 %v273_v17, %v272_v16 }
 0x10e   :  { %v275_v19 = vrot.slane %v274_v18, 4 }
 0x110   :  { %v276_v20 = vadd.f32 %v275_v19, %v274_v18 }
 0x112   :  { %v277_v21 = vrot.slane %v276_v20, 2 }
 0x114   :  { %v278_v22 = vadd.f32 %v277_v21, %v276_v20 }
 0x116   :  { %v279_v23 = vrot.slane %v278_v22, 1 }
 0x118   :  { %v280_v24 = vadd.f32 %v279_v23, %v278_v22 }
 0x11a   :  { %v282_v25 = vmul.f32 0.03125, %v280_v24 }
 0x11c   :  { %v283_v26 = vsub.f32 %v771_v55, %v282_v25  ;;  %v284_v27 = vsub.f32 %v773_v62, %v282_v25  ;;  %v285_v28 = vsub.f32 %v259_v6, %v282_v25  ;;  %v286_v29 = vsub.f32 %v264_v15, %v282_v25 }
 0x11e   :  { %v287_v30 = vmul.f32 %v283_v26, %v283_v26  ;;  %v288_v31 = vmul.f32 %v284_v27, %v284_v27  ;;  %v289_v32 = vmul.f32 %v285_v28, %v285_v28  ;;  %v290_v33 = vmul.f32 %v286_v29, %v286_v29 }
 0x120   :  { %v291_v34 = vsel %vm267_vm0, %v287_v30, 0.0  ;;  %v292_v35 = vsel %vm267_vm0, %v288_v31, 0.0  ;;  %v294_v37 = vsel %vm267_vm0, %v289_v32, 0.0  ;;  %v296_v39 = vsel %vm267_vm0, %v290_v33, 0.0 }
 0x121   :  { %v293_v36 = vadd.f32 %v292_v35, %v291_v34 }
 0x123   :  { %v295_v38 = vadd.f32 %v294_v37, %v293_v36 }
 0x125   :  { %v297_v40 = vadd.f32 %v296_v39, %v295_v38 }
 0x127   :  { %v298_v41 = vrot.slane %v297_v40, 4 }
 0x129   :  { %v299_v42 = vadd.f32 %v298_v41, %v297_v40 }
 0x12b   :  { %v300_v43 = vrot.slane %v299_v42, 2 }
 0x12d   :  { %v301_v44 = vadd.f32 %v300_v43, %v299_v42 }
 0x12f   :  { %v302_v45 = vrot.slane %v301_v44, 1 }
 0x131   :  { %v303_v46 = vadd.f32 %v302_v45, %v301_v44 }
 0x133   :  { %v304_v47 = vmul.f32 0.03125, %v303_v46 }
 0x135   :  { %v306_v48 = vadd.f32 1e-05, %v304_v47 }
 0x137   :  { %504 = vrsqrt.f32 %v306_v48 }
 0x141   :  { %v505_v53 = vpop.eup %504 }
 0x142   :  { %v308_v54 = vmul.f32 %v505_v53, %v305_v51 }
 0x144   :  { %v310_v57 = vmul.f32 %v308_v54, %v282_v25  ;;  %v316_v58 = vrot.slane %v308_v54, %v315_v52 }
 0x146   :  { %v311_v59 = vsub.f32 %v309_v56, %v310_v57  ;;  %v320_v60 = vmul.f32 %v316_v58, %v259_v6  ;;  %v321_v61 = vmul.f32 %v316_v58, %v264_v15  ;;  %v318_v63 = vmul.f32 %v316_v58, %v771_v55 }
 0x147   :  { %v319_v0 = vmul.f32 %v316_v58, %v773_v62 }
 0x148   :  { %v326_v1 = vrot.slane %v311_v59, %v315_v52 }
 0x14a   :  { %v328_v2 = vadd.f32 %v326_v1, %v318_v63  ;;  %v329_v3 = vadd.f32 %v326_v1, %v319_v0  ;;  %v330_v4 = vadd.f32 %v326_v1, %v320_v60  ;;  %v331_v5 = vadd.f32 %v326_v1, %v321_v61 }
 0x14c   :  { %vm332_vm1 = vcmp.gt.f32.partialorder %v328_v2, 0.0  ;;  %vm333_vm2 = vcmp.gt.f32.partialorder %v329_v3, 0.0  ;;  %vm334_vm3 = vcmp.gt.f32.partialorder %v330_v4, 0.0  ;;  %vm335_vm4 = vcmp.gt.f32.partialorder %v331_v5, 0.0 }
 0x14d   :  { %v336_v7 = vmul.f32 0.2, %v328_v2  ;;  %v337_v8 = vmul.f32 0.2, %v329_v3  ;;  %v338_v9 = vmul.f32 0.2, %v330_v4 }
 0x14e   :  { %v339_v10 = vmul.f32 0.2, %v331_v5 }
 0x14f   :  { %v340_v11 = vsel %vm332_vm1, %v328_v2, %v336_v7  ;;  %v341_v6 = vsel %vm333_vm2, %v329_v3, %v337_v8  ;;  %v342_v12 = vsel %vm334_vm3, %v330_v4, %v338_v9 }
 0x150   :  { %v343_v13 = vsel %vm335_vm4, %v331_v5, %v339_v10  ;;  %344 = vst.msk [vmem:[%s815_s4] sm:$0xff] %vm267_vm0, %v340_v11  ;;  %345 = vst.msk [vmem:[%s815_s4 + $0x8] sm:$0xff] %vm267_vm0, %v341_v6 }
 0x151   :  { %346 = vst.msk [vmem:[%s815_s4 + $0x10] sm:$0xff] %vm267_vm0, %v342_v12  ;;  %347 = vst.msk [vmem:[%s815_s4 + $0x18] sm:$0xff] %vm267_vm0, %v343_v13 }

// kernel: classifier_forward.9
= control target key start
LH: loop header
LB: loop body
LE: loop exit
PB: predicated region body
PF: predicated region fallthrough
CT: control target
= control target key end

     0   :  { %v933_v47 = vmov 1983009808   ;;  %v155_v49 = vlaneseq  ;;  %vm935_vm0 = vmmov 0   ;;  %vm572_vm1 = vcmask 1024   ;;  %s1416_s1 = inlined_call_operand.vmem [shape: f32[1024,128], index: 1, kind: input, shape index: {}]   ;;  %s1417_s0 = inlined_call_operand.vmem [shape: f32[2,1024], index: 0, kind: input, shape index: {}]   ;;  %s1418_s2 = inlined_call_operand.vmem [shape: f32[128,1], index: 2, kind: input, shape index: {}]   ;;  %s1419_s3 = inlined_call_operand.<no memory space> [shape: f32[1,1], index: 3, kind: input, shape index: {}]   ;;  %s1420_s4 = inlined_call_operand.vmem [shape: f32[2,1], index: 4, kind: output, shape index: {}]  }
   0x1   :  { %v37_v0 = vld [vmem:[%s1416_s1 + $0x80] sm:$0xff]  ;;  %v38_v1 = vld [vmem:[%s1416_s1 + $0x88] sm:$0xff]  ;;  %v39_v11 = vld [vmem:[%s1416_s1 + $0x90] sm:$0xff]  ;;  %v153_v48 = vunpack.c.l.s4 %v933_v47 }
   0x2   :  { %v69_v2 = vld [vmem:[%s1416_s1 + $0x180] sm:$0xff]  ;;  %v771_v3 = vpack.c.bf16 %v38_v1, %v37_v0  ;;  %v70_v4 = vld [vmem:[%s1416_s1 + $0x188] sm:$0xff]  ;;  %v40_v13 = vld [vmem:[%s1416_s1 + $0x98] sm:$0xff]  ;;  %v156_v0 = vshrl.u32 %v155_v49, 7 }
   0x3   :  { %v21_v5 = vld [vmem:[%s1416_s1] sm:$0xff]  ;;  %v22_v6 = vld [vmem:[%s1416_s1 + $0x8] sm:$0xff]  ;;  %v803_v7 = vpack.c.bf16 %v70_v4, %v69_v2  ;;  %v71_v14 = vld [vmem:[%s1416_s1 + $0x190] sm:$0xff]  ;;  %v775_v16 = vpack.c.bf16 %v40_v13, %v39_v11  ;;  %v154_v63 = vunpack.c.0.s8 %v153_v48 }
   0x4   :  { %v773_v8 = vpack.c.bf16 %v22_v6, %v21_v5  ;;  %v53_v9 = vld [vmem:[%s1416_s1 + $0x100] sm:$0xff]  ;;  %v54_v10 = vld [vmem:[%s1416_s1 + $0x108] sm:$0xff]  ;;  %772 = vmatprep.subr.bf16.mxu0 %v771_v3  ;;  %v72_v15 = vld [vmem:[%s1416_s1 + $0x198] sm:$0xff] }
   0x5   :  { %v805_v12 = vpack.c.bf16 %v54_v10, %v53_v9  ;;  %804 = vmatprep.subr.bf16.mxu1 %v803_v7  ;;  %v807_v17 = vpack.c.bf16 %v72_v15, %v71_v14  ;;  %v23_v18 = vld [vmem:[%s1416_s1 + $0x10] sm:$0xff]  ;;  %v24_v19 = vld [vmem:[%s1416_s1 + $0x18] sm:$0xff]  ;;  %v41_v23 = vld [vmem:[%s1416_s1 + $0xa0] sm:$0xff]  ;;  %v157_v13 = vsub.s32 %v154_v63, %v156_v0 }
   0x6   :  { %774 = vmatpush3.bf16.msra.mxu0 %v773_v8  ;;  %v55_v20 = vld [vmem:[%s1416_s1 + $0x110] sm:$0xff]  ;;  %v777_v21 = vpack.c.bf16 %v24_v19, %v23_v18  ;;  %v56_v22 = vld [vmem:[%s1416_s1 + $0x118] sm:$0xff]  ;;  %v42_v24 = vld [vmem:[%s1416_s1 + $0xa8] sm:$0xff] }
   0x7   :  { %806 = vmatpush3.bf16.msra.mxu1 %v805_v12  ;;  %776 = vmatprep.subr.bf16.mxu0 %v775_v16  ;;  %v809_v25 = vpack.c.bf16 %v56_v22, %v55_v20  ;;  %v779_v26 = vpack.c.bf16 %v42_v24, %v41_v23  ;;  %v73_v27 = vld [vmem:[%s1416_s1 + $0x1a0] sm:$0xff]  ;;  %v74_v28 = vld [vmem:[%s1416_s1 + $0x1a8] sm:$0xff]  ;;  %v43_v35 = vld [vmem:[%s1416_s1 + $0xb0] sm:$0xff] }
   0x8   :  { %808 = vmatprep.subr.bf16.mxu1 %v807_v17  ;;  %v25_v29 = vld [vmem:[%s1416_s1 + $0x20] sm:$0xff]  ;;  %v811_v30 = vpack.c.bf16 %v74_v28, %v73_v27  ;;  %v26_v31 = vld [vmem:[%s1416_s1 + $0x28] sm:$0xff]  ;;  %v44_v36 = vld [vmem:[%s1416_s1 + $0xb8] sm:$0xff] }
   0x9   :  { %v57_v32 = vld [vmem:[%s1416_s1 + $0x120] sm:$0xff]  ;;  %v58_v33 = vld [vmem:[%s1416_s1 + $0x128] sm:$0xff]  ;;  %v781_v34 = vpack.c.bf16 %v26_v31, %v25_v29  ;;  %v75_v37 = vld [vmem:[%s1416_s1 + $0x1b0] sm:$0xff]  ;;  %v783_v39 = vpack.c.bf16 %v44_v36, %v43_v35 }
   0xa   :  { %778 = vmatpush3.bf16.msra.mxu0 %v777_v21  ;;  %v813_v38 = vpack.c.bf16 %v58_v33, %v57_v32  ;;  %v76_v40 = vld [vmem:[%s1416_s1 + $0x1b8] sm:$0xff]  ;;  %v27_v41 = vld [vmem:[%s1416_s1 + $0x30] sm:$0xff]  ;;  %v45_v46 = vld [vmem:[%s1416_s1 + $0xc0] sm:$0xff] }
   0xb   :  { %810 = vmatpush3.bf16.msra.mxu1 %v809_v25  ;;  %780 = vmatprep.subr.bf16.mxu0 %v779_v26  ;;  %v28_v42 = vld [vmem:[%s1416_s1 + $0x38] sm:$0xff]  ;;  %v815_v43 = vpack.c.bf16 %v76_v40, %v75_v37  ;;  %v59_v44 = vld [vmem:[%s1416_s1 + $0x130] sm:$0xff]  ;;  %v46_v50 = vld [vmem:[%s1416_s1 + $0xc8] sm:$0xff] }
   0xc   :  { %812 = vmatprep.subr.bf16.mxu1 %v811_v30  ;;  %v60_v45 = vld [vmem:[%s1416_s1 + $0x138] sm:$0xff]  ;;  %v77_v51 = vld [vmem:[%s1416_s1 + $0x1c0] sm:$0xff]  ;;  %v78_v52 = vld [vmem:[%s1416_s1 + $0x1c8] sm:$0xff]  ;;  %v785_v53 = vpack.c.bf16 %v28_v42, %v27_v41  ;;  %v787_v55 = vpack.c.bf16 %v46_v50, %v45_v46 }
   0xd   :  { %v817_v54 = vpack.c.bf16 %v60_v45, %v59_v44  ;;  %v29_v56 = vld [vmem:[%s1416_s1 + $0x40] sm:$0xff]  ;;  %v30_v57 = vld [vmem:[%s1416_s1 + $0x48] sm:$0xff]  ;;  %v819_v59 = vpack.c.bf16 %v78_v52, %v77_v51  ;;  %v47_v61 = vld [vmem:[%s1416_s1 + $0xd0] sm:$0xff] }
   0xe   :  { %782 = vmatpush3.bf16.msra.mxu0 %v781_v34  ;;  %v61_v58 = vld [vmem:[%s1416_s1 + $0x140] sm:$0xff]  ;;  %v62_v60 = vld [vmem:[%s1416_s1 + $0x148] sm:$0xff]  ;;  %v48_v62 = vld [vmem:[%s1416_s1 + $0xd8] sm:$0xff]  ;;  %v789_v3 = vpack.c.bf16 %v30_v57, %v29_v56 }
   0xf   :  { %814 = vmatpush3.bf16.msra.mxu1 %v813_v38  ;;  %784 = vmatprep.subr.bf16.mxu0 %v783_v39  ;;  %v79_v1 = vld [vmem:[%s1416_s1 + $0x1d0] sm:$0xff]  ;;  %v80_v2 = vld [vmem:[%s1416_s1 + $0x1d8] sm:$0xff]  ;;  %v821_v4 = vpack.c.bf16 %v62_v60, %v61_v58  ;;  %v791_v5 = vpack.c.bf16 %v48_v62, %v47_v61  ;;  %v49_v11 = vld [vmem:[%s1416_s1 + $0xe0] sm:$0xff] }
  0x10   :  { %816 = vmatprep.subr.bf16.mxu1 %v815_v43  ;;  %v31_v6 = vld [vmem:[%s1416_s1 + $0x50] sm:$0xff]  ;;  %v32_v7 = vld [vmem:[%s1416_s1 + $0x58] sm:$0xff]  ;;  %v823_v9 = vpack.c.bf16 %v80_v2, %v79_v1  ;;  %v50_v12 = vld [vmem:[%s1416_s1 + $0xe8] sm:$0xff] }
  0x11   :  { %v63_v8 = vld [vmem:[%s1416_s1 + $0x150] sm:$0xff]  ;;  %v64_v10 = vld [vmem:[%s1416_s1 + $0x158] sm:$0xff]  ;;  %v81_v14 = vld [vmem:[%s1416_s1 + $0x1e0] sm:$0xff]  ;;  %v793_v16 = vpack.c.bf16 %v32_v7, %v31_v6  ;;  %v795_v19 = vpack.c.bf16 %v50_v12, %v49_v11 }
  0x12   :  { %786 = vmatpush3.bf16.msra.mxu0 %v785_v53  ;;  %v82_v15 = vld [vmem:[%s1416_s1 + $0x1e8] sm:$0xff]  ;;  %v33_v17 = vld [vmem:[%s1416_s1 + $0x60] sm:$0xff]  ;;  %v825_v18 = vpack.c.bf16 %v64_v10, %v63_v8  ;;  %v51_v25 = vld [vmem:[%s1416_s1 + $0xf0] sm:$0xff] }
  0x13   :  { %818 = vmatpush3.bf16.msra.mxu1 %v817_v54  ;;  %788 = vmatprep.subr.bf16.mxu0 %v787_v55  ;;  %v34_v20 = vld [vmem:[%s1416_s1 + $0x68] sm:$0xff]  ;;  %v65_v21 = vld [vmem:[%s1416_s1 + $0x160] sm:$0xff]  ;;  %v827_v23 = vpack.c.bf16 %v82_v15, %v81_v14  ;;  %v52_v26 = vld [vmem:[%s1416_s1 + $0xf8] sm:$0xff] }
  0x14   :  { %820 = vmatprep.subr.bf16.mxu1 %v819_v59  ;;  %v19_v22 = vld [vmem:[%s1417_s0] sm:$0xff]  ;;  %v66_v24 = vld [vmem:[%s1416_s1 + $0x168] sm:$0xff]  ;;  %v83_v29 = vld [vmem:[%s1416_s1 + $0x1f0] sm:$0xff]  ;;  %v797_v31 = vpack.c.bf16 %v34_v20, %v33_v17  ;;  %v799_v36 = vpack.c.bf16 %v52_v26, %v51_v25 }
  0x15   :  { %v158_v27 = vrot.slane %v19_v22, %v157_v13  ;;  %v151_v28 = vcombine.high %v19_v22, %v19_v22  ;;  %v84_v30 = vld [vmem:[%s1416_s1 + $0x1f8] sm:$0xff]  ;;  %v20_v32 = vld [vmem:[%s1417_s0 + $0x8] sm:$0xff]  ;;  %v829_v35 = vpack.c.bf16 %v66_v24, %v65_v21  ;;  %v35_v37 = vld [vmem:[%s1416_s1 + $0x70] sm:$0xff] }
  0x16   :  { %790 = vmatpush3.bf16.msra.mxu0 %v789_v3  ;;  %v36_v38 = vld [vmem:[%s1416_s1 + $0x78] sm:$0xff]  ;;  %v67_v39 = vld [vmem:[%s1416_s1 + $0x170] sm:$0xff]  ;;  %v831_v40 = vpack.c.bf16 %v84_v30, %v83_v29  ;;  %v101_v43 = vld [vmem:[%s1416_s1 + $0x280] sm:$0xff]  ;;  %v168_v45 = vcombine.high %v20_v32, %v20_v32  ;;  %v1190_v58 = vrot.slane %v20_v32, %v157_v13 }
  0x17   :  { %822 = vmatpush3.bf16.msra.mxu1 %v821_v4  ;;  %792 = vmatprep.subr.bf16.mxu0 %v791_v5  ;;  %v166_v33 = vcombine.high %v158_v27, %v158_v27  ;;  %v165_v34 = vrot.slane %v151_v28, %v157_v13  ;;  %v68_v41 = vld [vmem:[%s1416_s1 + $0x178] sm:$0xff]  ;;  %v102_v44 = vld [vmem:[%s1416_s1 + $0x288] sm:$0xff]  ;;  %v133_v46 = vld [vmem:[%s1416_s1 + $0x380] sm:$0xff]  ;;  %v801_v48 = vpack.c.bf16 %v36_v38, %v35_v37 }
  0x18   :  { %824 = vmatprep.subr.bf16.mxu1 %v823_v9  ;;  %v134_v47 = vld [vmem:[%s1416_s1 + $0x388] sm:$0xff]  ;;  %v833_v49 = vpack.c.bf16 %v68_v41, %v67_v39  ;;  %v835_v50 = vpack.c.bf16 %v102_v44, %v101_v43  ;;  %v85_v51 = vld [vmem:[%s1416_s1 + $0x200] sm:$0xff]  ;;  %v103_v56 = vld [vmem:[%s1416_s1 + $0x290] sm:$0xff]  ;;  %v1198_v61 = vrot.slane %v168_v45, %v157_v13  ;;  %v183_v8 = vcombine.high %v1190_v58, %v1190_v58 }
  0x19   :  { %257 = vmatprep.mubr.f32.mxu0 %v166_v33  ;;  %v167_v42 = vcombine.high %v165_v34, %v165_v34  ;;  %v86_v52 = vld [vmem:[%s1416_s1 + $0x208] sm:$0xff]  ;;  %v117_v53 = vld [vmem:[%s1416_s1 + $0x300] sm:$0xff]  ;;  %v867_v54 = vpack.c.bf16 %v134_v47, %v133_v46  ;;  %v104_v57 = vld [vmem:[%s1416_s1 + $0x298] sm:$0xff] }
  0x1a   :  { %794 = vmatpush3.bf16.msra.mxu0 %v793_v16  ;;  %v118_v55 = vld [vmem:[%s1416_s1 + $0x308] sm:$0xff]  ;;  %v135_v59 = vld [vmem:[%s1416_s1 + $0x390] sm:$0xff]  ;;  %v136_v60 = vld [vmem:[%s1416_s1 + $0x398] sm:$0xff]  ;;  %v837_v62 = vpack.c.bf16 %v86_v52, %v85_v51  ;;  %v839_v0 = vpack.c.bf16 %v104_v57, %v103_v56  ;;  %v184_v11 = vcombine.high %v1198_v61, %v1198_v61 }
  0x1b   :  { %826 = vmatpush3.bf16.msra.mxu1 %v825_v18  ;;  %796 = vmatprep.subr.bf16.mxu0 %v795_v19  ;;  %v869_v63 = vpack.c.bf16 %v118_v55, %v117_v53  ;;  %v87_v1 = vld [vmem:[%s1416_s1 + $0x210] sm:$0xff]  ;;  %v88_v2 = vld [vmem:[%s1416_s1 + $0x218] sm:$0xff]  ;;  %v871_v4 = vpack.c.bf16 %v136_v60, %v135_v59  ;;  %v105_v6 = vld [vmem:[%s1416_s1 + $0x2a0] sm:$0xff] }
  0x1c   :  { %828 = vmatprep.subr.bf16.mxu1 %v827_v23  ;;  %327 = vmatprep.mubr.f32.mxu1 %v167_v42  ;;  %v119_v3 = vld [vmem:[%s1416_s1 + $0x310] sm:$0xff]  ;;  %v120_v5 = vld [vmem:[%s1416_s1 + $0x318] sm:$0xff]  ;;  %v106_v7 = vld [vmem:[%s1416_s1 + $0x2a8] sm:$0xff]  ;;  %v841_v12 = vpack.c.bf16 %v88_v2, %v87_v1 }
  0x1d   :  { %v137_v9 = vld [vmem:[%s1416_s1 + $0x3a0] sm:$0xff]  ;;  %v138_v10 = vld [vmem:[%s1416_s1 + $0x3a8] sm:$0xff]  ;;  %v873_v13 = vpack.c.bf16 %v120_v5, %v119_v3  ;;  %v843_v14 = vpack.c.bf16 %v106_v7, %v105_v6  ;;  %v107_v20 = vld [vmem:[%s1416_s1 + $0x2b0] sm:$0xff] }
  0x1e   :  { %798 = vmatpush3.bf16.msra.mxu0 %v797_v31  ;;  %v89_v15 = vld [vmem:[%s1416_s1 + $0x220] sm:$0xff]  ;;  %v90_v16 = vld [vmem:[%s1416_s1 + $0x228] sm:$0xff]  ;;  %v875_v18 = vpack.c.bf16 %v138_v10, %v137_v9  ;;  %v108_v21 = vld [vmem:[%s1416_s1 + $0x2b8] sm:$0xff] }
  0x1f   :  { %830 = vmatpush3.bf16.msra.mxu1 %v829_v35  ;;  %800 = vmatprep.subr.bf16.mxu0 %v799_v36  ;;  %v121_v17 = vld [vmem:[%s1416_s1 + $0x320] sm:$0xff]  ;;  %v122_v19 = vld [vmem:[%s1416_s1 + $0x328] sm:$0xff]  ;;  %v139_v22 = vld [vmem:[%s1416_s1 + $0x3b0] sm:$0xff]  ;;  %v845_v24 = vpack.c.bf16 %v90_v16, %v89_v15  ;;  %v847_v26 = vpack.c.bf16 %v108_v21, %v107_v20  ;;  %v934_v20 = vmov 0.0|0.0  }
  0x20   :  { %832 = vmatprep.subr.bf16.mxu1 %v831_v40  ;;  %v140_v23 = vld [vmem:[%s1416_s1 + $0x3b8] sm:$0xff]  ;;  %v877_v25 = vpack.c.bf16 %v122_v19, %v121_v17  ;;  %v123_v29 = vld [vmem:[%s1416_s1 + $0x330] sm:$0xff]  ;;  %v109_v32 = vld [vmem:[%s1416_s1 + $0x2c0] sm:$0xff] }
  0x21   :  { %v92_v28 = vld [vmem:[%s1416_s1 + $0x238] sm:$0xff]  ;;  %v879_v30 = vpack.c.bf16 %v140_v23, %v139_v22  ;;  %v110_v33 = vld [vmem:[%s1416_s1 + $0x2c8] sm:$0xff]  ;;  %v93_v39 = vld [vmem:[%s1416_s1 + $0x240] sm:$0xff] }
  0x22   :  { %802 = vmatpush3.bf16.msra.mxu0 %v801_v48  ;;  %v124_v31 = vld [vmem:[%s1416_s1 + $0x338] sm:$0xff]  ;;  %v142_v35 = vld [vmem:[%s1416_s1 + $0x3c8] sm:$0xff]  ;;  %v851_v38 = vpack.c.bf16 %v110_v33, %v109_v32  ;;  %v125_v41 = vld [vmem:[%s1416_s1 + $0x340] sm:$0xff] }
  0x23   :  { %834 = vmatpush3.bf16.msra.mxu1 %v833_v49  ;;  %836 = vmatprep.subr.bf16.mxu0 %v835_v50  ;;  %v881_v37 = vpack.c.bf16 %v124_v31, %v123_v29  ;;  %v94_v40 = vld [vmem:[%s1416_s1 + $0x248] sm:$0xff]  ;;  %v111_v44 = vld [vmem:[%s1416_s1 + $0x2d0] sm:$0xff]  ;;  %v112_v45 = vld [vmem:[%s1416_s1 + $0x2d8] sm:$0xff] }
  0x24   :  { %868 = vmatprep.subr.bf16.mxu1 %v867_v54  ;;  %v126_v43 = vld [vmem:[%s1416_s1 + $0x348] sm:$0xff]  ;;  %v143_v46 = vld [vmem:[%s1416_s1 + $0x3d0] sm:$0xff]  ;;  %v144_v47 = vld [vmem:[%s1416_s1 + $0x3d8] sm:$0xff]  ;;  %v853_v48 = vpack.c.bf16 %v94_v40, %v93_v39  ;;  %v855_v50 = vpack.c.bf16 %v112_v45, %v111_v44  ;;  %v9_v44 = vstv %s1419_s3 }
  0x25   :  { %258 = vmatmul.mubr.f32.vlgmr.msra.gmra.mrb[0].mxu0 %v158_v27  ;;  %v91_v27 = vld [vmem:[%s1416_s1 + $0x230] sm:$0xff]  ;;  %v885_v49 = vpack.c.bf16 %v126_v43, %v125_v41  ;;  %v96_v52 = vld [vmem:[%s1416_s1 + $0x258] sm:$0xff]  ;;  %v887_v54 = vpack.c.bf16 %v144_v47, %v143_v46  ;;  %v113_v56 = vld [vmem:[%s1416_s1 + $0x2e0] sm:$0xff]  ;;  %v936_v43 = vmov 0.0   ;;  %10 = vst [vmem:[#allocation2] sm:$0x1] %v9_v44 }
  0x26   :  { %328 = vmatmul.mubr.f32.vlgmr.msra.gmra.mrb[0].mxu1 %v165_v34  ;;  %838 = vmatpush3.bf16.msra.mxu0 %v837_v62  ;;  %v141_v34 = vld [vmem:[%s1416_s1 + $0x3c0] sm:$0xff]  ;;  %v849_v36 = vpack.c.bf16 %v92_v28, %v91_v27  ;;  %v95_v51 = vld [vmem:[%s1416_s1 + $0x250] sm:$0xff]  ;;  %v128_v55 = vld [vmem:[%s1416_s1 + $0x358] sm:$0xff] }
  0x27   :  { %870 = vmatpush3.bf16.msra.mxu1 %v869_v63  ;;  %840 = vmatprep.subr.bf16.mxu0 %v839_v0  ;;  %v883_v42 = vpack.c.bf16 %v142_v35, %v141_v34  ;;  %v127_v53 = vld [vmem:[%s1416_s1 + $0x350] sm:$0xff]  ;;  %v114_v57 = vld [vmem:[%s1416_s1 + $0x2e8] sm:$0xff]  ;;  %v145_v59 = vld [vmem:[%s1416_s1 + $0x3e0] sm:$0xff]  ;;  %v857_v62 = vpack.c.bf16 %v96_v52, %v95_v51 }
  0x28   :  { %872 = vmatprep.subr.bf16.mxu1 %v871_v4  ;;  %397 = vmatprep.mubr.f32.mxu0 %v183_v8  ;;  %v146_v60 = vld [vmem:[%s1416_s1 + $0x3e8] sm:$0xff]  ;;  %v889_v63 = vpack.c.bf16 %v128_v55, %v127_v53  ;;  %v859_v0 = vpack.c.bf16 %v114_v57, %v113_v56  ;;  %v97_v1 = vld [vmem:[%s1416_s1 + $0x260] sm:$0xff]  ;;  %v115_v6 = vld [vmem:[%s1416_s1 + $0x2f0] sm:$0xff] }
  0x29   :  { %467 = vmatprep.mubr.f32.mxu1 %v184_v11  ;;  %v98_v2 = vld [vmem:[%s1416_s1 + $0x268] sm:$0xff]  ;;  %v129_v3 = vld [vmem:[%s1416_s1 + $0x360] sm:$0xff]  ;;  %v891_v4 = vpack.c.bf16 %v146_v60, %v145_v59  ;;  %v116_v7 = vld [vmem:[%s1416_s1 + $0x2f8] sm:$0xff] }
  0x2a   :  { %842 = vmatpush3.bf16.msra.mxu0 %v841_v12  ;;  %v130_v5 = vld [vmem:[%s1416_s1 + $0x368] sm:$0xff]  ;;  %v147_v8 = vld [vmem:[%s1416_s1 + $0x3f0] sm:$0xff]  ;;  %v148_v9 = vld [vmem:[%s1416_s1 + $0x3f8] sm:$0xff]  ;;  %v861_v10 = vpack.c.bf16 %v98_v2, %v97_v1  ;;  %v863_v12 = vpack.c.bf16 %v116_v7, %v115_v6 }
  0x2b   :  { %874 = vmatpush3.bf16.msra.mxu1 %v873_v13  ;;  %844 = vmatprep.subr.bf16.mxu0 %v843_v14  ;;  %v893_v11 = vpack.c.bf16 %v130_v5, %v129_v3  ;;  %v99_v13 = vld [vmem:[%s1416_s1 + $0x270] sm:$0xff]  ;;  %v100_v14 = vld [vmem:[%s1416_s1 + $0x278] sm:$0xff]  ;;  %v895_v15 = vpack.c.bf16 %v148_v9, %v147_v8  ;;  %v473_v21 = vld [vmem:[%s1418_s2] sm:$0xff] }
  0x2c   :  { %876 = vmatprep.subr.bf16.mxu1 %v875_v18  ;;  %v131_v16 = vld [vmem:[%s1416_s1 + $0x370] sm:$0xff]  ;;  %v132_v17 = vld [vmem:[%s1416_s1 + $0x378] sm:$0xff]  ;;  %v865_v18 = vpack.c.bf16 %v100_v14, %v99_v13  ;;  %v474_v22 = vld [vmem:[%s1418_s2 + $0x8] sm:$0xff] }
  0x2d   :  { %v897_v19 = vpack.c.bf16 %v132_v17, %v131_v16  ;;  %v475_v23 = vld [vmem:[%s1418_s2 + $0x10] sm:$0xff]  ;;  %v480_v29 = vld [vmem:[%s1418_s2 + $0x38] sm:$0xff]  ;;  %v481_v31 = vld [vmem:[%s1418_s2 + $0x40] sm:$0xff] }
  0x2e   :  { %846 = vmatpush3.bf16.msra.mxu0 %v845_v24  ;;  %v900_v24 = vpack.c.bf16 %v474_v22, %v473_v21  ;;  %v479_v28 = vld [vmem:[%s1418_s2 + $0x30] sm:$0xff]  ;;  %v482_v32 = vld [vmem:[%s1418_s2 + $0x48] sm:$0xff]  ;;  %v484_v35 = vld [vmem:[%s1418_s2 + $0x58] sm:$0xff] }
  0x2f   :  { %878 = vmatpush3.bf16.msra.mxu1 %v877_v25  ;;  %848 = vmatprep.subr.bf16.mxu0 %v847_v26  ;;  %v477_v25 = vld [vmem:[%s1418_s2 + $0x20] sm:$0xff]  ;;  %v478_v26 = vld [vmem:[%s1418_s2 + $0x28] sm:$0xff]  ;;  %v912_v33 = vpack.c.bf16 %v482_v32, %v481_v31  ;;  %v483_v34 = vld [vmem:[%s1418_s2 + $0x50] sm:$0xff] }
  0x30   :  { %880 = vmatprep.subr.bf16.mxu1 %v879_v30  ;;  %v906_v27 = vpack.c.bf16 %v478_v26, %v477_v25  ;;  %v909_v30 = vpack.c.bf16 %v480_v29, %v479_v28  ;;  %v487_v40 = vld [vmem:[%s1418_s2 + $0x70] sm:$0xff]  ;;  %v488_v41 = vld [vmem:[%s1418_s2 + $0x78] sm:$0xff] }
  0x32   :  { %850 = vmatpush3.bf16.msra.mxu0 %v849_v36  ;;  %v915_v36 = vpack.c.bf16 %v484_v35, %v483_v34 }
  0x33   :  { %882 = vmatpush3.bf16.msra.mxu1 %v881_v37  ;;  %852 = vmatprep.subr.bf16.mxu0 %v851_v38  ;;  %v485_v37 = vld [vmem:[%s1418_s2 + $0x60] sm:$0xff]  ;;  %v486_v38 = vld [vmem:[%s1418_s2 + $0x68] sm:$0xff] }
  0x34   :  { %884 = vmatprep.subr.bf16.mxu1 %v883_v42  ;;  %v918_v39 = vpack.c.bf16 %v486_v38, %v485_v37  ;;  %v921_v42 = vpack.c.bf16 %v488_v41, %v487_v40 }
  0x36   :  { %854 = vmatpush3.bf16.msra.mxu0 %v853_v48 }
  0x37   :  { %886 = vmatpush3.bf16.msra.mxu1 %v885_v49  ;;  %856 = vmatprep.subr.bf16.mxu0 %v855_v50 }
  0x38   :  { %888 = vmatprep.subr.bf16.mxu1 %v887_v54 }
  0x3a   :  { %858 = vmatpush3.bf16.msra.mxu0 %v857_v62  ;;  %v578_v62 = vld [vmem:[#allocation2] ss:$0 sm:$0xff] }
  0x3b   :  { %890 = vmatpush3.bf16.msra.mxu1 %v889_v63  ;;  %860 = vmatprep.subr.bf16.mxu0 %v859_v0 }
  0x3c   :  { %892 = vmatprep.subr.bf16.mxu1 %v891_v4 }
  0x3e   :  { %862 = vmatpush3.bf16.msra.mxu0 %v861_v10 }
  0x3f   :  { %894 = vmatpush3.bf16.msra.mxu1 %v893_v11  ;;  %864 = vmatprep.subr.bf16.mxu0 %v863_v12 }
  0x40   :  { %896 = vmatprep.subr.bf16.mxu1 %v895_v15 }
  0x42   :  { %866 = vmatpush3.bf16.msra.mxu0 %v865_v18 }
  0x43   :  { %898 = vmatpush3.bf16.msra.mxu1 %v897_v19  ;;  %899 = vmatprep.subr.bf16.mxu0 %v934_v20 }
  0x45   :  { %398 = vmatmul.mubr.f32.vlgmr.msra.gmra.mrb[2].mxu0 %v1190_v58  ;;  %v476_v58 = vld [vmem:[%s1418_s2 + $0x18] sm:$0xff] }
  0x46   :  { %468 = vmatmul.mubr.f32.vlgmr.msra.gmra.mrb[2].mxu1 %v1198_v61  ;;  %901 = vmatpush3.bf16.msra.mxu0 %v900_v24  ;;  %v903_v61 = vpack.c.bf16 %v476_v58, %v475_v23 }
  0x47   :  { %902 = vmatprep.subr.bf16.mxu0 %v934_v20  ;;  %768 = vmatprep.mubr.msk.f32.mxu0 %vm935_vm0, %v936_v43 }
  0x4a   :  { %904 = vmatpush3.bf16.msra.mxu0 %v903_v61 }
  0x4b   :  { %905 = vmatprep.subr.bf16.mxu0 %v934_v20 }
  0x4e   :  { %907 = vmatpush3.bf16.msra.mxu0 %v906_v27 }
  0x4f   :  { %908 = vmatprep.subr.bf16.mxu0 %v934_v20 }
  0x52   :  { %910 = vmatpush3.bf16.msra.mxu0 %v909_v30 }
  0x53   :  { %911 = vmatprep.subr.bf16.mxu0 %v934_v20 }
  0x56   :  { %913 = vmatpush3.bf16.msra.mxu0 %v912_v33 }
  0x57   :  { %914 = vmatprep.subr.bf16.mxu0 %v934_v20 }
  0x5a   :  { %916 = vmatpush3.bf16.msra.mxu0 %v915_v36 }
  0x5b   :  { %917 = vmatprep.subr.bf16.mxu0 %v934_v20 }
  0x5e   :  { %919 = vmatpush3.bf16.msra.mxu0 %v918_v39 }
  0x5f   :  { %920 = vmatprep.subr.bf16.mxu0 %v934_v20 }
  0x62   :  { %922 = vmatpush3.bf16.msra.mxu0 %v921_v42 }
  0xf8   :  { %v611_v45 = vpop.f32.mrb[0].mxu0 }
  0xf9   :  { %v646_v46 = vpop.f32.mrb[0].mxu1  ;;  %v612_v47 = vpop.f32.mrb[1].mxu0 }
  0xfa   :  { %v613_v48 = vadd.f32 %v612_v47, %v611_v45  ;;  %v647_v49 = vpop.f32.mrb[1].mxu1 }
  0xfb   :  { %v648_v50 = vadd.f32 %v647_v49, %v646_v46 }
  0xfd   :  { %v330_v51 = vadd.f32 %v648_v50, %v613_v48 }
 0x118   :  { %v681_v52 = vpop.f32.mrb[2].mxu0 }
 0x119   :  { %v682_v53 = vpop.f32.mrb[3].mxu0  ;;  %v716_v54 = vpop.f32.mrb[2].mxu1 }
 0x11a   :  { %v683_v55 = vadd.f32 %v682_v53, %v681_v52  ;;  %v717_v56 = vpop.f32.mrb[3].mxu1 }
 0x11b   :  { %v718_v57 = vadd.f32 %v717_v56, %v716_v54 }
 0x11c   :  { %v400_v59 = vadd.f32 %v683_v55, %v330_v51 }
 0x11e   :  { %v470_v60 = vadd.f32 %v718_v57, %v400_v59 }
 0x120   :  { %769 = vmatmul.mubr.f32.vlgmr.msra.gmra.mrb[4].mxu0 %v470_v60 }
 0x1f3   :  { %v562_v63 = vpop.f32.mrb[4].mxu0 }
 0x1f4   :  { %v563_v0 = vadd.f32 %v578_v62, %v562_v63  ;;  %v770_v1 = vpop.f32.mrb[5].mxu0 }
 0x1f6   :  { %v566_v2 = vsub.f32 0.0, %v563_v0 }
 0x1f8   :  { %v567_v3 = vmul.f32 1.442695, %v566_v2 }
 0x1fa   :  { %929 = vpow2.f32 %v567_v3 }
 0x204   :  { %v930_v4 = vpop.eup %929 }
 0x205   :  { %v569_v5 = vadd.f32 1.0, %v930_v4 }
 0x207   :  { %931 = vrcp.f32 %v569_v5 }
 0x211   :  { %v932_v6 = vpop.eup %931 }
 0x212   :  { %573 = vst.msk [vmem:[%s1420_s4] sm:$0x3] %vm572_vm1, %v932_v6 }

</bundles_post_ra>
